<compile_context>
chip_gen: v7x
topology: tpu7x:2x2x1
jax: 0.10.0
libtpu: 0.0.40
codegen_flags: <defaults>
</compile_context>

<pallas_src>
import functools
import math

import jax
import jax.numpy as jnp
from jax import lax
from jax.experimental import pallas as pl
from jax.experimental.pallas import tpu as pltpu

PARAM_DTYPE = jnp.float32
# Set to jnp.bfloat16 for the native-MXU path (accumulation stays f32, LayerNorm
# stats / softmax stay f32).  Kept at float32 here so numerics match the fp32
# PyTorch reference exactly.
MATMUL_DTYPE = jnp.float32
LN_EPS = 1e-5
ROW_TILE = 512                       # row tile for the token-parallel kernels
VMEM_LIMIT = 32 * 1024 * 1024        # fits v5e/v6e/v7x scoped-VMEM budgets


def _cparams(n_grid_axes):
    return pltpu.CompilerParams(
        dimension_semantics=("parallel",) * n_grid_axes,
        vmem_limit_bytes=VMEM_LIMIT)


# ---------------------- fused LayerNorm + Linear (+bias) ----------------------
def _ln_linear_kernel(x_ref, g_ref, b_ref, w_ref, bias_ref, o_ref, *, eps, do_ln):
    x = x_ref[...].astype(jnp.float32)
    if do_ln:
        mu = jnp.mean(x, axis=-1, keepdims=True)
        var = jnp.mean((x - mu) ** 2, axis=-1, keepdims=True)
        x = (x - mu) * lax.rsqrt(var + eps)
        x = x * g_ref[...].astype(jnp.float32) + b_ref[...].astype(jnp.float32)
    y = jnp.dot(x.astype(w_ref.dtype), w_ref[...],
                preferred_element_type=jnp.float32)
    y = y + bias_ref[...].astype(jnp.float32)
    o_ref[...] = y.astype(o_ref.dtype)


def ln_linear(x, gamma, beta, w, bias, *, do_ln, row_tile=ROW_TILE):
    """y = LayerNorm(x) @ w + bias.  w is pre-transposed to [In, Out].
    Row-tiled 1-D grid (parallel) with the weight block resident across steps."""
    n, d_in = x.shape
    d_out = w.shape[1]
    rt = min(row_tile, n)
    return pl.pallas_call(
        functools.partial(_ln_linear_kernel, eps=LN_EPS, do_ln=do_ln),
        out_shape=jax.ShapeDtypeStruct((n, d_out), x.dtype),
        grid=(pl.cdiv(n, rt),),
        in_specs=[
            pl.BlockSpec((rt, d_in), lambda i: (i, 0)),      # streamed row tiles
            pl.BlockSpec((1, d_in), lambda i: (0, 0)),       # resident LN gamma
            pl.BlockSpec((1, d_in), lambda i: (0, 0)),       # resident LN beta
            pl.BlockSpec((d_in, d_out), lambda i: (0, 0)),   # resident weight
            pl.BlockSpec((1, d_out), lambda i: (0, 0)),      # resident bias
        ],
        out_specs=pl.BlockSpec((rt, d_out), lambda i: (i, 0)),
        compiler_params=_cparams(1),
    )(x, gamma.reshape(1, -1), beta.reshape(1, -1), w, bias.reshape(1, -1))


# --------------------- fused Linear + bias + residual add ---------------------
def _linear_residual_kernel(a_ref, w_ref, bias_ref, r_ref, o_ref):
    y = jnp.dot(a_ref[...].astype(w_ref.dtype), w_ref[...],
                preferred_element_type=jnp.float32)
    y = y + bias_ref[...].astype(jnp.float32) + r_ref[...].astype(jnp.float32)
    o_ref[...] = y.astype(o_ref.dtype)


def linear_residual(a, w, bias, residual, *, row_tile=ROW_TILE):
    n, d_in = a.shape
    d_out = w.shape[1]
    rt = min(row_tile, n)
    return pl.pallas_call(
        _linear_residual_kernel,
        out_shape=jax.ShapeDtypeStruct((n, d_out), a.dtype),
        grid=(pl.cdiv(n, rt),),
        in_specs=[
            pl.BlockSpec((rt, d_in), lambda i: (i, 0)),
            pl.BlockSpec((d_in, d_out), lambda i: (0, 0)),
            pl.BlockSpec((1, d_out), lambda i: (0, 0)),
            pl.BlockSpec((rt, d_out), lambda i: (i, 0)),
        ],
        out_specs=pl.BlockSpec((rt, d_out), lambda i: (i, 0)),
        compiler_params=_cparams(1),
    )(a, w, bias.reshape(1, -1), residual)


# ---------- fused FFN block: LN -> W1 -> ReLU -> W2 -> +residual --------------
def _ffn_kernel(x_ref, g_ref, b_ref, w1_ref, b1_ref, w2_ref, b2_ref, o_ref, *, eps):
    x = x_ref[...].astype(jnp.float32)
    mu = jnp.mean(x, axis=-1, keepdims=True)
    var = jnp.mean((x - mu) ** 2, axis=-1, keepdims=True)
    h = (x - mu) * lax.rsqrt(var + eps)
    h = h * g_ref[...].astype(jnp.float32) + b_ref[...].astype(jnp.float32)
    # [rows, INNER] intermediate stays on-chip (never written to HBM)
    h = jnp.dot(h.astype(w1_ref.dtype), w1_ref[...],
                preferred_element_type=jnp.float32)
    h = jnp.maximum(h + b1_ref[...].astype(jnp.float32), 0.0)
    y = jnp.dot(h.astype(w2_ref.dtype), w2_ref[...],
                preferred_element_type=jnp.float32)
    y = y + b2_ref[...].astype(jnp.float32) + x          # residual = pre-LN input
    o_ref[...] = y.astype(o_ref.dtype)


def ffn(x, gamma, beta, w1, b1, w2, b2, *, row_tile=ROW_TILE):
    n, h_dim = x.shape
    inner = w1.shape[1]
    rt = min(row_tile, n)
    return pl.pallas_call(
        functools.partial(_ffn_kernel, eps=LN_EPS),
        out_shape=jax.ShapeDtypeStruct((n, h_dim), x.dtype),
        grid=(pl.cdiv(n, rt),),
        in_specs=[
            pl.BlockSpec((rt, h_dim), lambda i: (i, 0)),
            pl.BlockSpec((1, h_dim), lambda i: (0, 0)),
            pl.BlockSpec((1, h_dim), lambda i: (0, 0)),
            pl.BlockSpec((h_dim, inner), lambda i: (0, 0)),
            pl.BlockSpec((1, inner), lambda i: (0, 0)),
            pl.BlockSpec((inner, h_dim), lambda i: (0, 0)),
            pl.BlockSpec((1, h_dim), lambda i: (0, 0)),
        ],
        out_specs=pl.BlockSpec((rt, h_dim), lambda i: (i, 0)),
        compiler_params=_cparams(1),
    )(x, gamma.reshape(1, -1), beta.reshape(1, -1), w1, b1.reshape(1, -1),
      w2, b2.reshape(1, -1))


# ------------------- fused relative self-attention (per batch) ----------------
def _rel_shift_causal(bd):
    """In-register Transformer-XL relative shift.

    Returns y with y[q, k] = bd[q, (k - q - 1) mod T], which equals the exact
    pad+reshape rel_shift on the causal region k <= q.  Positions k > q differ
    from the exact shift but are always removed by the decoder's causal
    mask_tgt, so the attention output is identical.  Implemented as a log2(T)
    stage barrel shifter (static lane slices + per-row selects) so the [T, T]
    score block never leaves VMEM.
    """
    t = bd.shape[-1]
    row = lax.broadcasted_iota(jnp.int32, (bd.shape[0], 1), 0)
    shift = row + 1                                  # right-roll amount per row
    out = bd
    for bit in range(t.bit_length()):
        amt = (1 << bit) % t
        if amt == 0:
            continue
        rolled = jnp.concatenate([out[:, t - amt:], out[:, :t - amt]], axis=1)
        take = jnp.bitwise_and(jnp.right_shift(shift, bit), 1) == 1
        out = jnp.where(take, rolled, out)
    return out


def _rel_self_attn_kernel(qkv_ref, r_ref, rw_ref, rr_ref, m_ref, o_ref,
                          *, nh, scale):
    t, h_dim = r_ref.shape
    d = h_dim // nh
    qkv = qkv_ref[0]                       # [T, 3H]  (this batch element)
    maskf = m_ref[0].astype(jnp.float32)   # [T, T]   (nonzero = masked)
    dims = (((1,), (1,)), ((), ()))
    ctx_heads = []
    # static head loop: NH small; all heads packed into one lane-dense store
    for hd in range(nh):
        base = hd * 3 * d                  # qkv packed as [head][q,k,v][d]
        q = qkv[:, base:base + d].astype(jnp.float32)
        k = qkv[:, base + d:base + 2 * d].astype(jnp.float32)
        v = qkv[:, base + 2 * d:base + 3 * d]
        rh = r_ref[:, hd * d:(hd + 1) * d].astype(jnp.float32)
        rw = rw_ref[hd:hd + 1, :].astype(jnp.float32)      # [1, D]
        rr = rr_ref[hd:hd + 1, :].astype(jnp.float32)      # [1, D]
        ac = lax.dot_general(q + rw, k, dims, preferred_element_type=jnp.float32)
        bd = lax.dot_general(q + rr, rh, dims, preferred_element_type=jnp.float32)
        bd = _rel_shift_causal(bd)
        s = (ac + bd) * scale
        s = jnp.where(maskf > 0.0, -1e30, s)
        s = s - jnp.max(s, axis=-1, keepdims=True)
        e = jnp.exp(s)
        p = e / jnp.sum(e, axis=-1, keepdims=True)
        ctx_heads.append(jnp.dot(p.astype(v.dtype), v,
                                 preferred_element_type=jnp.float32))
    # single lane-dense [T, H] store, heads packed along the feature axis
    o_ref[0] = jnp.concatenate(ctx_heads, axis=-1).astype(o_ref.dtype)


def rel_self_attention(qkv, r, r_w_bias, r_r_bias, mask_tgt, n_heads, scale):
    """qkv: [B, T, 3H], r: [T, H], biases: [NH, D], mask_tgt: [B, T, T] int8."""
    b, t, three_h = qkv.shape
    h_dim = three_h // 3
    d = h_dim // n_heads
    return pl.pallas_call(
        functools.partial(_rel_self_attn_kernel, nh=n_heads, scale=scale),
        out_shape=jax.ShapeDtypeStruct((b, t, h_dim), qkv.dtype),
        grid=(b,),
        in_specs=[
            pl.BlockSpec((1, t, three_h), lambda i: (i, 0, 0)),
            pl.BlockSpec((t, h_dim), lambda i: (0, 0)),
            pl.BlockSpec((n_heads, d), lambda i: (0, 0)),
            pl.BlockSpec((n_heads, d), lambda i: (0, 0)),
            pl.BlockSpec((1, t, t), lambda i: (i, 0, 0)),
        ],
        out_specs=pl.BlockSpec((1, t, h_dim), lambda i: (i, 0, 0)),
        compiler_params=_cparams(1),
    )(qkv, r, r_w_bias, r_r_bias, mask_tgt)


# -------------------- fused encoder-decoder attention (per batch) -------------
def _cross_attn_kernel(q_ref, kv_ref, m_ref, o_ref, cov_ref, *, nh, scale):
    t, h_dim = q_ref.shape[1], q_ref.shape[2]
    d = h_dim // nh
    q_all = q_ref[0]                        # [T, H]
    kv = kv_ref[0]                          # [S, 2H]
    maskf = m_ref[0].astype(jnp.float32)    # [1, S]
    dims = (((1,), (1,)), ((), ()))
    ctx_heads = []
    for hd in range(nh):
        base = hd * 2 * d                   # kv packed as [head][k,v][d]
        q = q_all[:, hd * d:(hd + 1) * d].astype(jnp.float32)
        k = kv[:, base:base + d].astype(jnp.float32)
        v = kv[:, base + d:base + 2 * d]
        s = lax.dot_general(q, k, dims, preferred_element_type=jnp.float32) * scale
        s = jnp.where(maskf > 0.0, -1e30, s)
        s = s - jnp.max(s, axis=-1, keepdims=True)
        e = jnp.exp(s)
        p = e / jnp.sum(e, axis=-1, keepdims=True)
        cov_ref[0, hd] = p.astype(cov_ref.dtype)
        ctx_heads.append(jnp.dot(p.astype(v.dtype), v,
                                 preferred_element_type=jnp.float32))
    o_ref[0] = jnp.concatenate(ctx_heads, axis=-1).astype(o_ref.dtype)


def cross_attention(q, kv, mask_src, n_heads, scale):
    """q: [B, T, H], kv: [B, S, 2H], mask_src: [B, 1, S] int8."""
    b, t, h_dim = q.shape
    s_len = kv.shape[1]
    return pl.pallas_call(
        functools.partial(_cross_attn_kernel, nh=n_heads, scale=scale),
        out_shape=(jax.ShapeDtypeStruct((b, t, h_dim), q.dtype),
                   jax.ShapeDtypeStruct((b, n_heads, t, s_len), jnp.float32)),
        grid=(b,),
        in_specs=[
            pl.BlockSpec((1, t, h_dim), lambda i: (i, 0, 0)),
            pl.BlockSpec((1, s_len, 2 * h_dim), lambda i: (i, 0, 0)),
            pl.BlockSpec((1, 1, s_len), lambda i: (i, 0, 0)),
        ],
        out_specs=(pl.BlockSpec((1, t, h_dim), lambda i: (i, 0, 0)),
                   pl.BlockSpec((1, n_heads, t, s_len), lambda i: (i, 0, 0, 0))),
        compiler_params=_cparams(1),
    )(q, kv, mask_src)


# ------------------------------ parameter prep --------------------------------
def convert_torch_params(torch_params):
    """One-time conversion from torch nn.Linear layout ([Out, In] weights) to the
    kernel layout ([In, Out]) — avoids a per-call XLA transpose of every weight."""
    p = dict(torch_params)
    for k in ('self_in_w', 'self_pos_w', 'self_out_w', 'src_q_w', 'src_kv_w',
              'src_out_w', 'ffn_w1', 'ffn_w2'):
        p[k] = jnp.asarray(torch_params[k], MATMUL_DTYPE).T
    return p


# ------------------------------ full layer forward ----------------------------
def decoder_layer_forward(params, x, context, pos_emb, mask_tgt, mask_src, n_heads):
    """Eval-mode forward.  x: [T, B, H], context: [S, B, H], pos_emb: [T, H],
    mask_tgt: [B, T, T] (nonzero = masked; must include causality),
    mask_src: [B, 1, S] (nonzero = masked).
    Returns (out [T, B, H], coverage [B, NH, T, S])."""
    t, b, h_dim = x.shape
    s_len = context.shape[0]
    assert h_dim % n_heads == 0
    d = h_dim // n_heads
    scale = 1.0 / math.sqrt(d)

    # One-time layout change to batch-major so every kernel sees full
    # (sequence, feature) blocks in its two minor dims; no per-head transposes
    # of intermediates anywhere downstream.
    xb = jnp.transpose(x, (1, 0, 2))                      # [B, T, H]
    cb = jnp.transpose(context, (1, 0, 2))                # [B, S, H]
    x2 = xb.reshape(b * t, h_dim)

    mtgt = (mask_tgt != 0).astype(jnp.int8)               # [B, T, T]
    msrc = (mask_src != 0).astype(jnp.int8)               # [B, 1, S]

    ones_h = jnp.ones((h_dim,), x.dtype)
    zeros_h = jnp.zeros((h_dim,), x.dtype)

    # ---- relative self-attention block: LN > attn > residual (fused) ----
    qkv = ln_linear(x2, params['ln_attn_g'], params['ln_attn_b'],
                    params['self_in_w'], params['self_in_b'], do_ln=True)
    r = ln_linear(pos_emb, ones_h, zeros_h, params['self_pos_w'], zeros_h,
                  do_ln=False)
    attn = rel_self_attention(qkv.reshape(b, t, 3 * h_dim), r,
                              params['r_w_bias'], params['r_r_bias'],
                              mtgt, n_heads, scale)               # [B, T, H]
    x2 = linear_residual(attn.reshape(b * t, h_dim),
                         params['self_out_w'], params['self_out_b'], x2)

    # ---- encoder-decoder attention block: LN > attn > residual (fused) ----
    qp = ln_linear(x2, params['ln_src_g'], params['ln_src_b'],
                   params['src_q_w'], params['src_q_b'], do_ln=True)
    kv = ln_linear(cb.reshape(b * s_len, h_dim), ones_h, zeros_h,
                   params['src_kv_w'], params['src_kv_b'], do_ln=False)
    attn, coverage = cross_attention(qp.reshape(b, t, h_dim),
                                     kv.reshape(b, s_len, 2 * h_dim),
                                     msrc, n_heads, scale)
    x2 = linear_residual(attn.reshape(b * t, h_dim),
                         params['src_out_w'], params['src_out_b'], x2)

    # ---- feed-forward block: LN > W1 > ReLU > W2 > residual (one kernel) ----
    x2 = ffn(x2, params['ln_ffn_g'], params['ln_ffn_b'],
             params['ffn_w1'], params['ffn_b1'],
             params['ffn_w2'], params['ffn_b2'])

    out = jnp.transpose(x2.reshape(b, t, h_dim), (1, 0, 2))       # back to [T,B,H]
    return out, coverage


# --------------------------- pure-JAX reference (check) -----------------------
def _reference_forward(params, x, context, pos_emb, mask_tgt, mask_src, n_heads):
    t, b, h_dim = x.shape
    s_len = context.shape[0]
    d = h_dim // n_heads
    scale = 1.0 / math.sqrt(d)

    def ln(v, g, be):
        mu = v.mean(-1, keepdims=True)
        var = ((v - mu) ** 2).mean(-1, keepdims=True)
        return (v - mu) * lax.rsqrt(var + LN_EPS) * g + be

    x2 = x.reshape(t * b, h_dim)
    q_in = ln(x2, params['ln_attn_g'], params['ln_attn_b'])
    qkv = (q_in @ params['self_in_w'] + params['self_in_b']
           ).reshape(t, b, n_heads, 3, d)
    qh = jnp.transpose(qkv[..., 0, :], (1, 2, 0, 3))
    kh = jnp.transpose(qkv[..., 1, :], (1, 2, 0, 3))
    vh = jnp.transpose(qkv[..., 2, :], (1, 2, 0, 3))
    r = (pos_emb @ params['self_pos_w']).reshape(t, n_heads, d)
    rh = jnp.transpose(r, (1, 0, 2))
    rw = params['r_w_bias'][None, :, None, :]
    rr = params['r_r_bias'][None, :, None, :]
    ac = jnp.einsum('bhqd,bhkd->bhqk', qh + rw, kh)
    bd = jnp.einsum('bhqd,hkd->bhqk', qh + rr, rh)
    zero = jnp.zeros(bd.shape[:-1] + (1,), bd.dtype)
    bdp = jnp.concatenate([zero, bd], axis=-1)
    bdp = bdp.reshape(bd.shape[:-2] + (t + 1, t))
    bd = bdp[..., 1:, :].reshape(bd.shape)                 # exact rel_shift
    s = (ac + bd) * scale
    s = jnp.where(mask_tgt[:, None] > 0, -1e30, s)
    p = jax.nn.softmax(s, axis=-1)
    ctx = jnp.einsum('bhqk,bhkd->bhqd', p, vh)
    ctx = jnp.transpose(ctx, (2, 0, 1, 3)).reshape(t * b, h_dim)
    x2 = ctx @ params['self_out_w'] + params['self_out_b'] + x2

    q_in = ln(x2, params['ln_src_g'], params['ln_src_b'])
    q = (q_in @ params['src_q_w'] + params['src_q_b']).reshape(t, b, n_heads, d)
    kv = (context.reshape(s_len * b, h_dim) @ params['src_kv_w']
          + params['src_kv_b']).reshape(s_len, b, n_heads, 2, d)
    qh = jnp.transpose(q, (1, 2, 0, 3))
    kh = jnp.transpose(kv[..., 0, :], (1, 2, 0, 3))
    vh = jnp.transpose(kv[..., 1, :], (1, 2, 0, 3))
    s = jnp.einsum('bhqd,bhkd->bhqk', qh, kh) * scale
    s = jnp.where(mask_src[:, None] > 0, -1e30, s)
    p = jax.nn.softmax(s, axis=-1)
    coverage = p
    ctx = jnp.einsum('bhqk,bhkd->bhqd', p, vh)
    ctx = jnp.transpose(ctx, (2, 0, 1, 3)).reshape(t * b, h_dim)
    x2 = ctx @ params['src_out_w'] + params['src_out_b'] + x2

    h1 = ln(x2, params['ln_ffn_g'], params['ln_ffn_b'])
    h1 = jnp.maximum(h1 @ params['ffn_w1'] + params['ffn_b1'], 0.0)
    x2 = h1 @ params['ffn_w2'] + params['ffn_b2'] + x2
    return x2.reshape(t, b, h_dim), coverage


# ----------------------------------- main --------------------------------------
if __name__ == "__main__":
    T, B, H, NH, INNER, S = 8, 2, 32, 4, 64, 16
    D = H // NH

    key = jax.random.PRNGKey(0)
    ks = jax.random.split(key, 16)

    def nrm(k, shape, scale=0.02):
        return (scale * jax.random.normal(k, shape)).astype(PARAM_DTYPE)

    torch_params = dict(
        ln_attn_g=jnp.ones((H,), PARAM_DTYPE), ln_attn_b=jnp.zeros((H,), PARAM_DTYPE),
        self_in_w=nrm(ks[0], (3 * H, H)), self_in_b=jnp.zeros((3 * H,), PARAM_DTYPE),
        self_pos_w=nrm(ks[1], (H, H)),
        self_out_w=nrm(ks[2], (H, H)), self_out_b=jnp.zeros((H,), PARAM_DTYPE),
        r_w_bias=nrm(ks[3], (NH, D)), r_r_bias=nrm(ks[4], (NH, D)),
        ln_src_g=jnp.ones((H,), PARAM_DTYPE), ln_src_b=jnp.zeros((H,), PARAM_DTYPE),
        src_q_w=nrm(ks[5], (H, H)), src_q_b=jnp.zeros((H,), PARAM_DTYPE),
        src_kv_w=nrm(ks[6], (2 * H, H)), src_kv_b=jnp.zeros((2 * H,), PARAM_DTYPE),
        src_out_w=nrm(ks[7], (H, H)), src_out_b=jnp.zeros((H,), PARAM_DTYPE),
        ln_ffn_g=jnp.ones((H,), PARAM_DTYPE), ln_ffn_b=jnp.zeros((H,), PARAM_DTYPE),
        ffn_w1=nrm(ks[8], (INNER, H)), ffn_b1=jnp.zeros((INNER,), PARAM_DTYPE),
        ffn_w2=nrm(ks[9], (H, INNER)), ffn_b2=jnp.zeros((H,), PARAM_DTYPE),
    )
    params = convert_torch_params(torch_params)   # one-time [Out,In] -> [In,Out]

    x = jax.random.normal(ks[10], (T, B, H)).astype(PARAM_DTYPE)
    context = jax.random.normal(ks[11], (S, B, H)).astype(PARAM_DTYPE)
    pos_emb = jax.random.normal(ks[12], (T, H)).astype(PARAM_DTYPE)

    # causal target mask (1.0 = masked future position)
    causal = (jnp.arange(T)[None, :] > jnp.arange(T)[:, None]).astype(PARAM_DTYPE)
    mask_tgt = jnp.tile(causal[None], (B, 1, 1))
    # source padding mask: last 3 source positions of sentence 1 are padding
    mask_src = jnp.zeros((B, 1, S), PARAM_DTYPE).at[1, 0, S - 3:].set(1.0)

    fwd = jax.jit(functools.partial(decoder_layer_forward, n_heads=NH))
    out, coverage = fwd(params, x, context, pos_emb, mask_tgt, mask_src)
    jax.block_until_ready((out, coverage))

    assert out.shape == (T, B, H)
    assert coverage.shape == (B, NH, T, S)
    assert bool(jnp.all(jnp.isfinite(out)))
    assert bool(jnp.all(jnp.isfinite(coverage)))

    # correctness check against a pure-JAX (f32) reference of the same math
    with jax.default_matmul_precision("highest"):
        ref_out, ref_cov = _reference_forward(
            params, x, context, pos_emb, mask_tgt, mask_src, NH)
    assert bool(jnp.allclose(out, ref_out, rtol=1e-3, atol=1e-3)), \
        "output mismatch vs reference"
    assert bool(jnp.allclose(coverage, ref_cov, rtol=1e-3, atol=1e-3)), \
        "coverage mismatch vs reference"

    print("KERNEL_OK")
</pallas_src>

<mosaic_0001>
module attributes {stable_mosaic.version = 11 : i64} {
  func.func @_ln_linear_kernel(%arg0: i32, %arg1: memref<8x32xf32, #tpu.memory_space<vmem>>, %arg2: memref<1x32xf32, #tpu.memory_space<vmem>>, %arg3: memref<1x32xf32, #tpu.memory_space<vmem>>, %arg4: memref<32x32xf32, #tpu.memory_space<vmem>>, %arg5: memref<1x32xf32, #tpu.memory_space<vmem>>, %arg6: memref<8x32xf32, #tpu.memory_space<vmem>>) attributes {dimension_semantics = [#tpu.dimension_semantics<parallel>], iteration_bounds = array<i64: 1>, scalar_prefetch = 0 : i64, scratch_operands = 0 : i64, tpu.core_type = #tpu.core_type<tc>, window_params = [{transform_indices = @transform_0, window_bounds = array<i64: 8, 32>}, {pipeline_mode = #tpu.pipeline_mode<synchronous>, transform_indices = @transform_1, window_bounds = array<i64: 1, 32>}, {pipeline_mode = #tpu.pipeline_mode<synchronous>, transform_indices = @transform_2, window_bounds = array<i64: 1, 32>}, {pipeline_mode = #tpu.pipeline_mode<synchronous>, transform_indices = @transform_3, window_bounds = array<i64: 32, 32>}, {pipeline_mode = #tpu.pipeline_mode<synchronous>, transform_indices = @transform_4, window_bounds = array<i64: 1, 32>}, {transform_indices = @transform_5, window_bounds = array<i64: 8, 32>}]} {
    %c0 = arith.constant 0 : index
    %c0_0 = arith.constant 0 : index
    %0 = vector.load %arg1[%c0, %c0_0] : memref<8x32xf32, #tpu.memory_space<vmem>>, vector<8x32xf32>
    %c0_1 = arith.constant 0 : index
    %c0_2 = arith.constant 0 : index
    %1 = vector.load %arg4[%c0_1, %c0_2] : memref<32x32xf32, #tpu.memory_space<vmem>>, vector<32x32xf32>
    %cst = arith.constant dense<0.000000e+00> : vector<8x32xf32>
    %2 = tpu.matmul %0, %1, %cst {dimension_numbers = #tpu.dot_dimension_numbers<[1], [0], [0], [1], [0, 0, 1, 1], [], []>} : vector<8x32xf32>, vector<32x32xf32>, vector<8x32xf32> -> vector<8x32xf32>
    %c0_3 = arith.constant 0 : index
    %c0_4 = arith.constant 0 : index
    %3 = vector.load %arg5[%c0_3, %c0_4] : memref<1x32xf32, #tpu.memory_space<vmem>>, vector<1x32xf32>
    %4 = vector.broadcast %3 : vector<1x32xf32> to vector<8x32xf32>
    %5 = arith.addf %2, %4 : vector<8x32xf32>
    %c0_5 = arith.constant 0 : index
    %c0_6 = arith.constant 0 : index
    %6 = vector.load %arg6[%c0_5, %c0_6] : memref<8x32xf32, #tpu.memory_space<vmem>>, vector<8x32xf32>
    tpu.vector_store %arg6[%c0_5, %c0_6], %5 {strides = array<i32>} : memref<8x32xf32, #tpu.memory_space<vmem>>, vector<8x32xf32>,
    return
  }
  func.func @transform_0(%arg0: i32) -> (i32, i32) {
    %c0_i32 = arith.constant 0 : i32
    %c0_i32_0 = arith.constant 0 : i32
    return %arg0, %c0_i32 : i32, i32
  }
  func.func @transform_1(%arg0: i32) -> (i32, i32) {
    %c0_i32 = arith.constant 0 : i32
    %c0_i32_0 = arith.constant 0 : i32
    %c0_i32_1 = arith.constant 0 : i32
    return %c0_i32, %c0_i32_0 : i32, i32
  }
  func.func @transform_2(%arg0: i32) -> (i32, i32) {
    %c0_i32 = arith.constant 0 : i32
    %c0_i32_0 = arith.constant 0 : i32
    %c0_i32_1 = arith.constant 0 : i32
    return %c0_i32, %c0_i32_0 : i32, i32
  }
  func.func @transform_3(%arg0: i32) -> (i32, i32) {
    %c0_i32 = arith.constant 0 : i32
    %c0_i32_0 = arith.constant 0 : i32
    %c0_i32_1 = arith.constant 0 : i32
    return %c0_i32, %c0_i32_0 : i32, i32
  }
  func.func @transform_4(%arg0: i32) -> (i32, i32) {
    %c0_i32 = arith.constant 0 : i32
    %c0_i32_0 = arith.constant 0 : i32
    %c0_i32_1 = arith.constant 0 : i32
    return %c0_i32, %c0_i32_0 : i32, i32
  }
  func.func @transform_5(%arg0: i32) -> (i32, i32) {
    %c0_i32 = arith.constant 0 : i32
    %c0_i32_0 = arith.constant 0 : i32
    return %arg0, %c0_i32 : i32, i32
  }
}

module attributes {stable_mosaic.version = 11 : i64} {
  func.func @_linear_residual_kernel(%arg0: i32, %arg1: memref<16x32xf32, #tpu.memory_space<vmem>>, %arg2: memref<32x32xf32, #tpu.memory_space<vmem>>, %arg3: memref<1x32xf32, #tpu.memory_space<vmem>>, %arg4: memref<16x32xf32, #tpu.memory_space<vmem>>, %arg5: memref<16x32xf32, #tpu.memory_space<vmem>>) attributes {dimension_semantics = [#tpu.dimension_semantics<parallel>], iteration_bounds = array<i64: 1>, scalar_prefetch = 0 : i64, scratch_operands = 0 : i64, tpu.core_type = #tpu.core_type<tc>, window_params = [{transform_indices = @transform_0, window_bounds = array<i64: 16, 32>}, {pipeline_mode = #tpu.pipeline_mode<synchronous>, transform_indices = @transform_1, window_bounds = array<i64: 32, 32>}, {pipeline_mode = #tpu.pipeline_mode<synchronous>, transform_indices = @transform_2, window_bounds = array<i64: 1, 32>}, {transform_indices = @transform_3, window_bounds = array<i64: 16, 32>}, {transform_indices = @transform_4, window_bounds = array<i64: 16, 32>}]} {
    %c0 = arith.constant 0 : index
    %c0_0 = arith.constant 0 : index
    %0 = vector.load %arg1[%c0, %c0_0] : memref<16x32xf32, #tpu.memory_space<vmem>>, vector<16x32xf32>
    %c0_1 = arith.constant 0 : index
    %c0_2 = arith.constant 0 : index
    %1 = vector.load %arg2[%c0_1, %c0_2] : memref<32x32xf32, #tpu.memory_space<vmem>>, vector<32x32xf32>
    %cst = arith.constant dense<0.000000e+00> : vector<16x32xf32>
    %2 = tpu.matmul %0, %1, %cst {dimension_numbers = #tpu.dot_dimension_numbers<[1], [0], [0], [1], [0, 0, 1, 1], [], []>} : vector<16x32xf32>, vector<32x32xf32>, vector<16x32xf32> -> vector<16x32xf32>
    %c0_3 = arith.constant 0 : index
    %c0_4 = arith.constant 0 : index
    %3 = vector.load %arg3[%c0_3, %c0_4] : memref<1x32xf32, #tpu.memory_space<vmem>>, vector<1x32xf32>
    %4 = vector.broadcast %3 : vector<1x32xf32> to vector<16x32xf32>
    %5 = arith.addf %2, %4 : vector<16x32xf32>
    %c0_5 = arith.constant 0 : index
    %c0_6 = arith.constant 0 : index
    %6 = vector.load %arg4[%c0_5, %c0_6] : memref<16x32xf32, #tpu.memory_space<vmem>>, vector<16x32xf32>
    %7 = arith.addf %5, %6 : vector<16x32xf32>
    %c0_7 = arith.constant 0 : index
    %c0_8 = arith.constant 0 : index
    %8 = vector.load %arg5[%c0_7, %c0_8] : memref<16x32xf32, #tpu.memory_space<vmem>>, vector<16x32xf32>
    tpu.vector_store %arg5[%c0_7, %c0_8], %7 {strides = array<i32>} : memref<16x32xf32, #tpu.memory_space<vmem>>, vector<16x32xf32>,
    return
  }
  func.func @transform_0(%arg0: i32) -> (i32, i32) {
    %c0_i32 = arith.constant 0 : i32
    %c0_i32_0 = arith.constant 0 : i32
    return %arg0, %c0_i32 : i32, i32
  }
  func.func @transform_1(%arg0: i32) -> (i32, i32) {
    %c0_i32 = arith.constant 0 : i32
    %c0_i32_0 = arith.constant 0 : i32
    %c0_i32_1 = arith.constant 0 : i32
    return %c0_i32, %c0_i32_0 : i32, i32
  }
  func.func @transform_2(%arg0: i32) -> (i32, i32) {
    %c0_i32 = arith.constant 0 : i32
    %c0_i32_0 = arith.constant 0 : i32
    %c0_i32_1 = arith.constant 0 : i32
    return %c0_i32, %c0_i32_0 : i32, i32
  }
  func.func @transform_3(%arg0: i32) -> (i32, i32) {
    %c0_i32 = arith.constant 0 : i32
    %c0_i32_0 = arith.constant 0 : i32
    return %arg0, %c0_i32 : i32, i32
  }
  func.func @transform_4(%arg0: i32) -> (i32, i32) {
    %c0_i32 = arith.constant 0 : i32
    %c0_i32_0 = arith.constant 0 : i32
    return %arg0, %c0_i32 : i32, i32
  }
}

module attributes {stable_mosaic.version = 11 : i64} {
  func.func @_ln_linear_kernel(%arg0: i32, %arg1: memref<16x32xf32, #tpu.memory_space<vmem>>, %arg2: memref<1x32xf32, #tpu.memory_space<vmem>>, %arg3: memref<1x32xf32, #tpu.memory_space<vmem>>, %arg4: memref<32x96xf32, #tpu.memory_space<vmem>>, %arg5: memref<1x96xf32, #tpu.memory_space<vmem>>, %arg6: memref<16x96xf32, #tpu.memory_space<vmem>>) attributes {dimension_semantics = [#tpu.dimension_semantics<parallel>], iteration_bounds = array<i64: 1>, scalar_prefetch = 0 : i64, scratch_operands = 0 : i64, tpu.core_type = #tpu.core_type<tc>, window_params = [{transform_indices = @transform_0, window_bounds = array<i64: 16, 32>}, {pipeline_mode = #tpu.pipeline_mode<synchronous>, transform_indices = @transform_1, window_bounds = array<i64: 1, 32>}, {pipeline_mode = #tpu.pipeline_mode<synchronous>, transform_indices = @transform_2, window_bounds = array<i64: 1, 32>}, {pipeline_mode = #tpu.pipeline_mode<synchronous>, transform_indices = @transform_3, window_bounds = array<i64: 32, 96>}, {pipeline_mode = #tpu.pipeline_mode<synchronous>, transform_indices = @transform_4, window_bounds = array<i64: 1, 96>}, {transform_indices = @transform_5, window_bounds = array<i64: 16, 96>}]} {
    %c0 = arith.constant 0 : index
    %c0_0 = arith.constant 0 : index
    %0 = vector.load %arg1[%c0, %c0_0] : memref<16x32xf32, #tpu.memory_space<vmem>>, vector<16x32xf32>
    %cst = arith.constant dense<0.000000e+00> : vector<16xf32>
    %1 = vector.multi_reduction <add>, %0, %cst [1] : vector<16x32xf32> to vector<16xf32>
    %2 = vector.shape_cast %1 : vector<16xf32> to vector<16x1xf32>
    %cst_1 = arith.constant 3.200000e+01 : f32
    %3 = vector.broadcast %cst_1 : f32 to vector<16x1xf32>
    %4 = arith.divf %2, %3 : vector<16x1xf32>
    %5 = vector.broadcast %4 : vector<16x1xf32> to vector<16x32xf32>
    %6 = arith.subf %0, %5 : vector<16x32xf32>
    %7 = arith.mulf %6, %6 : vector<16x32xf32>
    %cst_2 = arith.constant dense<0.000000e+00> : vector<16xf32>
    %8 = vector.multi_reduction <add>, %7, %cst_2 [1] : vector<16x32xf32> to vector<16xf32>
    %9 = vector.shape_cast %8 : vector<16xf32> to vector<16x1xf32>
    %cst_3 = arith.constant 3.200000e+01 : f32
    %10 = vector.broadcast %cst_3 : f32 to vector<16x1xf32>
    %11 = arith.divf %9, %10 : vector<16x1xf32>
    %12 = vector.broadcast %4 : vector<16x1xf32> to vector<16x32xf32>
    %13 = arith.subf %0, %12 : vector<16x32xf32>
    %cst_4 = arith.constant 9.99999974E-6 : f32
    %14 = vector.broadcast %cst_4 : f32 to vector<16x1xf32>
    %15 = arith.addf %11, %14 : vector<16x1xf32>
    %16 = math.rsqrt %15 : vector<16x1xf32>
    %17 = vector.broadcast %16 : vector<16x1xf32> to vector<16x32xf32>
    %18 = arith.mulf %13, %17 : vector<16x32xf32>
    %c0_5 = arith.constant 0 : index
    %c0_6 = arith.constant 0 : index
    %19 = vector.load %arg2[%c0_5, %c0_6] : memref<1x32xf32, #tpu.memory_space<vmem>>, vector<1x32xf32>
    %20 = vector.broadcast %19 : vector<1x32xf32> to vector<16x32xf32>
    %21 = arith.mulf %18, %20 : vector<16x32xf32>
    %c0_7 = arith.constant 0 : index
    %c0_8 = arith.constant 0 : index
    %22 = vector.load %arg3[%c0_7, %c0_8] : memref<1x32xf32, #tpu.memory_space<vmem>>, vector<1x32xf32>
    %23 = vector.broadcast %22 : vector<1x32xf32> to vector<16x32xf32>
    %24 = arith.addf %21, %23 : vector<16x32xf32>
    %c0_9 = arith.constant 0 : index
    %c0_10 = arith.constant 0 : index
    %25 = vector.load %arg4[%c0_9, %c0_10] : memref<32x96xf32, #tpu.memory_space<vmem>>, vector<32x96xf32>
    %cst_11 = arith.constant dense<0.000000e+00> : vector<16x96xf32>
    %26 = tpu.matmul %24, %25, %cst_11 {dimension_numbers = #tpu.dot_dimension_numbers<[1], [0], [0], [1], [0, 0, 1, 1], [], []>} : vector<16x32xf32>, vector<32x96xf32>, vector<16x96xf32> -> vector<16x96xf32>
    %c0_12 = arith.constant 0 : index
    %c0_13 = arith.constant 0 : index
    %27 = vector.load %arg5[%c0_12, %c0_13] : memref<1x96xf32, #tpu.memory_space<vmem>>, vector<1x96xf32>
    %28 = vector.broadcast %27 : vector<1x96xf32> to vector<16x96xf32>
    %29 = arith.addf %26, %28 : vector<16x96xf32>
    %c0_14 = arith.constant 0 : index
    %c0_15 = arith.constant 0 : index
    %30 = vector.load %arg6[%c0_14, %c0_15] : memref<16x96xf32, #tpu.memory_space<vmem>>, vector<16x96xf32>
    tpu.vector_store %arg6[%c0_14, %c0_15], %29 {strides = array<i32>} : memref<16x96xf32, #tpu.memory_space<vmem>>, vector<16x96xf32>,
    return
  }
  func.func @transform_0(%arg0: i32) -> (i32, i32) {
    %c0_i32 = arith.constant 0 : i32
    %c0_i32_0 = arith.constant 0 : i32
    return %arg0, %c0_i32 : i32, i32
  }
  func.func @transform_1(%arg0: i32) -> (i32, i32) {
    %c0_i32 = arith.constant 0 : i32
    %c0_i32_0 = arith.constant 0 : i32
    %c0_i32_1 = arith.constant 0 : i32
    return %c0_i32, %c0_i32_0 : i32, i32
  }
  func.func @transform_2(%arg0: i32) -> (i32, i32) {
    %c0_i32 = arith.constant 0 : i32
    %c0_i32_0 = arith.constant 0 : i32
    %c0_i32_1 = arith.constant 0 : i32
    return %c0_i32, %c0_i32_0 : i32, i32
  }
  func.func @transform_3(%arg0: i32) -> (i32, i32) {
    %c0_i32 = arith.constant 0 : i32
    %c0_i32_0 = arith.constant 0 : i32
    %c0_i32_1 = arith.constant 0 : i32
    return %c0_i32, %c0_i32_0 : i32, i32
  }
  func.func @transform_4(%arg0: i32) -> (i32, i32) {
    %c0_i32 = arith.constant 0 : i32
    %c0_i32_0 = arith.constant 0 : i32
    %c0_i32_1 = arith.constant 0 : i32
    return %c0_i32, %c0_i32_0 : i32, i32
  }
  func.func @transform_5(%arg0: i32) -> (i32, i32) {
    %c0_i32 = arith.constant 0 : i32
    %c0_i32_0 = arith.constant 0 : i32
    return %arg0, %c0_i32 : i32, i32
  }
}

module attributes {stable_mosaic.version = 11 : i64} {
  func.func @_rel_self_attn_kernel(%arg0: i32, %arg1: memref<1x8x96xf32, #tpu.memory_space<vmem>>, %arg2: memref<8x32xf32, #tpu.memory_space<vmem>>, %arg3: memref<4x8xf32, #tpu.memory_space<vmem>>, %arg4: memref<4x8xf32, #tpu.memory_space<vmem>>, %arg5: memref<1x8x8xi8, #tpu.memory_space<vmem>>, %arg6: memref<1x8x32xf32, #tpu.memory_space<vmem>>) attributes {dimension_semantics = [#tpu.dimension_semantics<parallel>], iteration_bounds = array<i64: 2>, scalar_prefetch = 0 : i64, scratch_operands = 0 : i64, tpu.core_type = #tpu.core_type<tc>, window_params = [{transform_indices = @transform_0, window_bounds = array<i64: 1, 8, 96>}, {pipeline_mode = #tpu.pipeline_mode<synchronous>, transform_indices = @transform_1, window_bounds = array<i64: 8, 32>}, {pipeline_mode = #tpu.pipeline_mode<synchronous>, transform_indices = @transform_2, window_bounds = array<i64: 4, 8>}, {pipeline_mode = #tpu.pipeline_mode<synchronous>, transform_indices = @transform_3, window_bounds = array<i64: 4, 8>}, {transform_indices = @transform_4, window_bounds = array<i64: 1, 8, 8>}, {transform_indices = @transform_5, window_bounds = array<i64: 1, 8, 32>}]} {
    %c0 = arith.constant 0 : index
    %c0_0 = arith.constant 0 : index
    %c0_1 = arith.constant 0 : index
    %0 = vector.load %arg1[%c0, %c0_0, %c0_1] : memref<1x8x96xf32, #tpu.memory_space<vmem>>, vector<1x8x96xf32>
    %1 = vector.shape_cast %0 : vector<1x8x96xf32> to vector<8x96xf32>
    %c0_2 = arith.constant 0 : index
    %c0_3 = arith.constant 0 : index
    %c0_4 = arith.constant 0 : index
    %2 = vector.load %arg5[%c0_2, %c0_3, %c0_4] : memref<1x8x8xi8, #tpu.memory_space<vmem>>, vector<1x8x8xi8>
    %3 = vector.shape_cast %2 : vector<1x8x8xi8> to vector<8x8xi8>
    %4 = arith.sitofp %3 : vector<8x8xi8> to vector<8x8xf32>
    %5 = vector.extract_strided_slice %1 {offsets = [0, 0], sizes = [8, 8], strides = [1, 1]} : vector<8x96xf32> to vector<8x8xf32>
    %6 = vector.extract_strided_slice %1 {offsets = [0, 8], sizes = [8, 8], strides = [1, 1]} : vector<8x96xf32> to vector<8x8xf32>
    %7 = vector.extract_strided_slice %1 {offsets = [0, 16], sizes = [8, 8], strides = [1, 1]} : vector<8x96xf32> to vector<8x8xf32>
    %c0_5 = arith.constant 0 : index
    %c0_6 = arith.constant 0 : index
    %8 = vector.load %arg2[%c0_5, %c0_6] : memref<8x32xf32, #tpu.memory_space<vmem>>, vector<8x8xf32>
    %c0_7 = arith.constant 0 : index
    %c0_8 = arith.constant 0 : index
    %9 = vector.load %arg3[%c0_7, %c0_8] : memref<4x8xf32, #tpu.memory_space<vmem>>, vector<1x8xf32>
    %c0_9 = arith.constant 0 : index
    %c0_10 = arith.constant 0 : index
    %10 = vector.load %arg4[%c0_9, %c0_10] : memref<4x8xf32, #tpu.memory_space<vmem>>, vector<1x8xf32>
    %11 = vector.broadcast %9 : vector<1x8xf32> to vector<8x8xf32>
    %12 = arith.addf %5, %11 : vector<8x8xf32>
    %cst = arith.constant dense<0.000000e+00> : vector<8x8xf32>
    %13 = tpu.matmul %12, %6, %cst {dimension_numbers = #tpu.dot_dimension_numbers<[1], [1], [0], [0], [0, 0, 1, 0], [], []>} : vector<8x8xf32>, vector<8x8xf32>, vector<8x8xf32> -> vector<8x8xf32>
    %14 = vector.broadcast %10 : vector<1x8xf32> to vector<8x8xf32>
    %15 = arith.addf %5, %14 : vector<8x8xf32>
    %cst_11 = arith.constant dense<0.000000e+00> : vector<8x8xf32>
    %16 = tpu.matmul %15, %8, %cst_11 {dimension_numbers = #tpu.dot_dimension_numbers<[1], [1], [0], [0], [0, 0, 1, 0], [], []>} : vector<8x8xf32>, vector<8x8xf32>, vector<8x8xf32> -> vector<8x8xf32>
    %17 = tpu.iota {dimensions = array<i32: 0>} : vector<8x1xi32>
    %c1_i32 = arith.constant 1 : i32
    %18 = vector.broadcast %c1_i32 : i32 to vector<8x1xi32>
    %19 = arith.addi %17, %18 : vector<8x1xi32>
    %20 = vector.extract_strided_slice %16 {offsets = [0, 7], sizes = [8, 1], strides = [1, 1]} : vector<8x8xf32> to vector<8x1xf32>
    %21 = vector.extract_strided_slice %16 {offsets = [0, 0], sizes = [8, 7], strides = [1, 1]} : vector<8x8xf32> to vector<8x7xf32>
    %22 = tpu.concatenate %20, %21 in 1 : vector<8x1xf32>, vector<8x7xf32> -> vector<8x8xf32>
    %c0_i32 = arith.constant 0 : i32
    %23 = vector.broadcast %c0_i32 : i32 to vector<8x1xi32>
    %24 = arith.shrsi %19, %23 : vector<8x1xi32>
    %c1_i32_12 = arith.constant 1 : i32
    %25 = vector.broadcast %c1_i32_12 : i32 to vector<8x1xi32>
    %26 = arith.andi %24, %25 : vector<8x1xi32>
    %c1_i32_13 = arith.constant 1 : i32
    %27 = vector.broadcast %c1_i32_13 : i32 to vector<8x1xi32>
    %28 = arith.cmpi eq, %26, %27 : vector<8x1xi32>
    %29 = vector.shape_cast %28 : vector<8x1xi1> to vector<8x1xi1>
    %30 = vector.broadcast %29 : vector<8x1xi1> to vector<8x8xi1>
    %31 = arith.select %30, %22, %16 : vector<8x8xi1>, vector<8x8xf32>
    %32 = vector.extract_strided_slice %31 {offsets = [0, 6], sizes = [8, 2], strides = [1, 1]} : vector<8x8xf32> to vector<8x2xf32>
    %33 = vector.extract_strided_slice %31 {offsets = [0, 0], sizes = [8, 6], strides = [1, 1]} : vector<8x8xf32> to vector<8x6xf32>
    %34 = tpu.concatenate %32, %33 in 1 : vector<8x2xf32>, vector<8x6xf32> -> vector<8x8xf32>
    %c1_i32_14 = arith.constant 1 : i32
    %35 = vector.broadcast %c1_i32_14 : i32 to vector<8x1xi32>
    %36 = arith.shrsi %19, %35 : vector<8x1xi32>
    %c1_i32_15 = arith.constant 1 : i32
    %37 = vector.broadcast %c1_i32_15 : i32 to vector<8x1xi32>
    %38 = arith.andi %36, %37 : vector<8x1xi32>
    %c1_i32_16 = arith.constant 1 : i32
    %39 = vector.broadcast %c1_i32_16 : i32 to vector<8x1xi32>
    %40 = arith.cmpi eq, %38, %39 : vector<8x1xi32>
    %41 = vector.shape_cast %40 : vector<8x1xi1> to vector<8x1xi1>
    %42 = vector.broadcast %41 : vector<8x1xi1> to vector<8x8xi1>
    %43 = arith.select %42, %34, %31 : vector<8x8xi1>, vector<8x8xf32>
    %44 = vector.extract_strided_slice %43 {offsets = [0, 4], sizes = [8, 4], strides = [1, 1]} : vector<8x8xf32> to vector<8x4xf32>
    %45 = vector.extract_strided_slice %43 {offsets = [0, 0], sizes = [8, 4], strides = [1, 1]} : vector<8x8xf32> to vector<8x4xf32>
    %46 = tpu.concatenate %44, %45 in 1 : vector<8x4xf32>, vector<8x4xf32> -> vector<8x8xf32>
    %c2_i32 = arith.constant 2 : i32
    %47 = vector.broadcast %c2_i32 : i32 to vector<8x1xi32>
    %48 = arith.shrsi %19, %47 : vector<8x1xi32>
    %c1_i32_17 = arith.constant 1 : i32
    %49 = vector.broadcast %c1_i32_17 : i32 to vector<8x1xi32>
    %50 = arith.andi %48, %49 : vector<8x1xi32>
    %c1_i32_18 = arith.constant 1 : i32
    %51 = vector.broadcast %c1_i32_18 : i32 to vector<8x1xi32>
    %52 = arith.cmpi eq, %50, %51 : vector<8x1xi32>
    %53 = vector.shape_cast %52 : vector<8x1xi1> to vector<8x1xi1>
    %54 = vector.broadcast %53 : vector<8x1xi1> to vector<8x8xi1>
    %55 = arith.select %54, %46, %43 : vector<8x8xi1>, vector<8x8xf32>
    %56 = arith.addf %13, %55 : vector<8x8xf32>
    %cst_19 = arith.constant 0.353553385 : f32
    %57 = vector.broadcast %cst_19 : f32 to vector<8x8xf32>
    %58 = arith.mulf %56, %57 : vector<8x8xf32>
    %cst_20 = arith.constant 0.000000e+00 : f32
    %59 = vector.broadcast %cst_20 : f32 to vector<8x8xf32>
    %60 = arith.cmpf ogt, %4, %59 : vector<8x8xf32>
    %cst_21 = arith.constant -1.000000e+30 : f32
    %61 = vector.broadcast %cst_21 : f32 to vector<8x8xf32>
    %62 = arith.select %60, %61, %58 : vector<8x8xi1>, vector<8x8xf32>
    %cst_22 = arith.constant dense<0xFF800000> : vector<8xf32>
    %63 = vector.multi_reduction <maximumf>, %62, %cst_22 [1] : vector<8x8xf32> to vector<8xf32>
    %64 = vector.shape_cast %63 : vector<8xf32> to vector<8x1xf32>
    %65 = vector.broadcast %64 : vector<8x1xf32> to vector<8x8xf32>
    %66 = arith.subf %62, %65 : vector<8x8xf32>
    %67 = math.exp %66 : vector<8x8xf32>
    %cst_23 = arith.constant dense<0.000000e+00> : vector<8xf32>
    %68 = vector.multi_reduction <add>, %67, %cst_23 [1] : vector<8x8xf32> to vector<8xf32>
    %69 = vector.shape_cast %68 : vector<8xf32> to vector<8x1xf32>
    %70 = vector.broadcast %69 : vector<8x1xf32> to vector<8x8xf32>
    %71 = arith.divf %67, %70 : vector<8x8xf32>
    %cst_24 = arith.constant dense<0.000000e+00> : vector<8x8xf32>
    %72 = tpu.matmul %71, %7, %cst_24 {dimension_numbers = #tpu.dot_dimension_numbers<[1], [0], [0], [1], [0, 0, 1, 1], [], []>} : vector<8x8xf32>, vector<8x8xf32>, vector<8x8xf32> -> vector<8x8xf32>
    %73 = vector.extract_strided_slice %1 {offsets = [0, 24], sizes = [8, 8], strides = [1, 1]} : vector<8x96xf32> to vector<8x8xf32>
    %74 = vector.extract_strided_slice %1 {offsets = [0, 32], sizes = [8, 8], strides = [1, 1]} : vector<8x96xf32> to vector<8x8xf32>
    %75 = vector.extract_strided_slice %1 {offsets = [0, 40], sizes = [8, 8], strides = [1, 1]} : vector<8x96xf32> to vector<8x8xf32>
    %c0_25 = arith.constant 0 : index
    %c8 = arith.constant 8 : index
    %76 = vector.load %arg2[%c0_25, %c8] : memref<8x32xf32, #tpu.memory_space<vmem>>, vector<8x8xf32>
    %c1 = arith.constant 1 : index
    %c0_26 = arith.constant 0 : index
    %77 = vector.load %arg3[%c1, %c0_26] : memref<4x8xf32, #tpu.memory_space<vmem>>, vector<1x8xf32>
    %c1_27 = arith.constant 1 : index
    %c0_28 = arith.constant 0 : index
    %78 = vector.load %arg4[%c1_27, %c0_28] : memref<4x8xf32, #tpu.memory_space<vmem>>, vector<1x8xf32>
    %79 = vector.broadcast %77 : vector<1x8xf32> to vector<8x8xf32>
    %80 = arith.addf %73, %79 : vector<8x8xf32>
    %cst_29 = arith.constant dense<0.000000e+00> : vector<8x8xf32>
    %81 = tpu.matmul %80, %74, %cst_29 {dimension_numbers = #tpu.dot_dimension_numbers<[1], [1], [0], [0], [0, 0, 1, 0], [], []>} : vector<8x8xf32>, vector<8x8xf32>, vector<8x8xf32> -> vector<8x8xf32>
    %82 = vector.broadcast %78 : vector<1x8xf32> to vector<8x8xf32>
    %83 = arith.addf %73, %82 : vector<8x8xf32>
    %cst_30 = arith.constant dense<0.000000e+00> : vector<8x8xf32>
    %84 = tpu.matmul %83, %76, %cst_30 {dimension_numbers = #tpu.dot_dimension_numbers<[1], [1], [0], [0], [0, 0, 1, 0], [], []>} : vector<8x8xf32>, vector<8x8xf32>, vector<8x8xf32> -> vector<8x8xf32>
    %85 = tpu.iota {dimensions = array<i32: 0>} : vector<8x1xi32>
    %c1_i32_31 = arith.constant 1 : i32
    %86 = vector.broadcast %c1_i32_31 : i32 to vector<8x1xi32>
    %87 = arith.addi %85, %86 : vector<8x1xi32>
    %88 = vector.extract_strided_slice %84 {offsets = [0, 7], sizes = [8, 1], strides = [1, 1]} : vector<8x8xf32> to vector<8x1xf32>
    %89 = vector.extract_strided_slice %84 {offsets = [0, 0], sizes = [8, 7], strides = [1, 1]} : vector<8x8xf32> to vector<8x7xf32>
    %90 = tpu.concatenate %88, %89 in 1 : vector<8x1xf32>, vector<8x7xf32> -> vector<8x8xf32>
    %c0_i32_32 = arith.constant 0 : i32
    %91 = vector.broadcast %c0_i32_32 : i32 to vector<8x1xi32>
    %92 = arith.shrsi %87, %91 : vector<8x1xi32>
    %c1_i32_33 = arith.constant 1 : i32
    %93 = vector.broadcast %c1_i32_33 : i32 to vector<8x1xi32>
    %94 = arith.andi %92, %93 : vector<8x1xi32>
    %c1_i32_34 = arith.constant 1 : i32
    %95 = vector.broadcast %c1_i32_34 : i32 to vector<8x1xi32>
    %96 = arith.cmpi eq, %94, %95 : vector<8x1xi32>
    %97 = vector.shape_cast %96 : vector<8x1xi1> to vector<8x1xi1>
    %98 = vector.broadcast %97 : vector<8x1xi1> to vector<8x8xi1>
    %99 = arith.select %98, %90, %84 : vector<8x8xi1>, vector<8x8xf32>
    %100 = vector.extract_strided_slice %99 {offsets = [0, 6], sizes = [8, 2], strides = [1, 1]} : vector<8x8xf32> to vector<8x2xf32>
    %101 = vector.extract_strided_slice %99 {offsets = [0, 0], sizes = [8, 6], strides = [1, 1]} : vector<8x8xf32> to vector<8x6xf32>
    %102 = tpu.concatenate %100, %101 in 1 : vector<8x2xf32>, vector<8x6xf32> -> vector<8x8xf32>
    %c1_i32_35 = arith.constant 1 : i32
    %103 = vector.broadcast %c1_i32_35 : i32 to vector<8x1xi32>
    %104 = arith.shrsi %87, %103 : vector<8x1xi32>
    %c1_i32_36 = arith.constant 1 : i32
    %105 = vector.broadcast %c1_i32_36 : i32 to vector<8x1xi32>
    %106 = arith.andi %104, %105 : vector<8x1xi32>
    %c1_i32_37 = arith.constant 1 : i32
    %107 = vector.broadcast %c1_i32_37 : i32 to vector<8x1xi32>
    %108 = arith.cmpi eq, %106, %107 : vector<8x1xi32>
    %109 = vector.shape_cast %108 : vector<8x1xi1> to vector<8x1xi1>
    %110 = vector.broadcast %109 : vector<8x1xi1> to vector<8x8xi1>
    %111 = arith.select %110, %102, %99 : vector<8x8xi1>, vector<8x8xf32>
    %112 = vector.extract_strided_slice %111 {offsets = [0, 4], sizes = [8, 4], strides = [1, 1]} : vector<8x8xf32> to vector<8x4xf32>
    %113 = vector.extract_strided_slice %111 {offsets = [0, 0], sizes = [8, 4], strides = [1, 1]} : vector<8x8xf32> to vector<8x4xf32>
    %114 = tpu.concatenate %112, %113 in 1 : vector<8x4xf32>, vector<8x4xf32> -> vector<8x8xf32>
    %c2_i32_38 = arith.constant 2 : i32
    %115 = vector.broadcast %c2_i32_38 : i32 to vector<8x1xi32>
    %116 = arith.shrsi %87, %115 : vector<8x1xi32>
    %c1_i32_39 = arith.constant 1 : i32
    %117 = vector.broadcast %c1_i32_39 : i32 to vector<8x1xi32>
    %118 = arith.andi %116, %117 : vector<8x1xi32>
    %c1_i32_40 = arith.constant 1 : i32
    %119 = vector.broadcast %c1_i32_40 : i32 to vector<8x1xi32>
    %120 = arith.cmpi eq, %118, %119 : vector<8x1xi32>
    %121 = vector.shape_cast %120 : vector<8x1xi1> to vector<8x1xi1>
    %122 = vector.broadcast %121 : vector<8x1xi1> to vector<8x8xi1>
    %123 = arith.select %122, %114, %111 : vector<8x8xi1>, vector<8x8xf32>
    %124 = arith.addf %81, %123 : vector<8x8xf32>
    %cst_41 = arith.constant 0.353553385 : f32
    %125 = vector.broadcast %cst_41 : f32 to vector<8x8xf32>
    %126 = arith.mulf %124, %125 : vector<8x8xf32>
    %cst_42 = arith.constant 0.000000e+00 : f32
    %127 = vector.broadcast %cst_42 : f32 to vector<8x8xf32>
    %128 = arith.cmpf ogt, %4, %127 : vector<8x8xf32>
    %cst_43 = arith.constant -1.000000e+30 : f32
    %129 = vector.broadcast %cst_43 : f32 to vector<8x8xf32>
    %130 = arith.select %128, %129, %126 : vector<8x8xi1>, vector<8x8xf32>
    %cst_44 = arith.constant dense<0xFF800000> : vector<8xf32>
    %131 = vector.multi_reduction <maximumf>, %130, %cst_44 [1] : vector<8x8xf32> to vector<8xf32>
    %132 = vector.shape_cast %131 : vector<8xf32> to vector<8x1xf32>
    %133 = vector.broadcast %132 : vector<8x1xf32> to vector<8x8xf32>
    %134 = arith.subf %130, %133 : vector<8x8xf32>
    %135 = math.exp %134 : vector<8x8xf32>
    %cst_45 = arith.constant dense<0.000000e+00> : vector<8xf32>
    %136 = vector.multi_reduction <add>, %135, %cst_45 [1] : vector<8x8xf32> to vector<8xf32>
    %137 = vector.shape_cast %136 : vector<8xf32> to vector<8x1xf32>
    %138 = vector.broadcast %137 : vector<8x1xf32> to vector<8x8xf32>
    %139 = arith.divf %135, %138 : vector<8x8xf32>
    %cst_46 = arith.constant dense<0.000000e+00> : vector<8x8xf32>
    %140 = tpu.matmul %139, %75, %cst_46 {dimension_numbers = #tpu.dot_dimension_numbers<[1], [0], [0], [1], [0, 0, 1, 1], [], []>} : vector<8x8xf32>, vector<8x8xf32>, vector<8x8xf32> -> vector<8x8xf32>
    %141 = vector.extract_strided_slice %1 {offsets = [0, 48], sizes = [8, 8], strides = [1, 1]} : vector<8x96xf32> to vector<8x8xf32>
    %142 = vector.extract_strided_slice %1 {offsets = [0, 56], sizes = [8, 8], strides = [1, 1]} : vector<8x96xf32> to vector<8x8xf32>
    %143 = vector.extract_strided_slice %1 {offsets = [0, 64], sizes = [8, 8], strides = [1, 1]} : vector<8x96xf32> to vector<8x8xf32>
    %c0_47 = arith.constant 0 : index
    %c16 = arith.constant 16 : index
    %144 = vector.load %arg2[%c0_47, %c16] : memref<8x32xf32, #tpu.memory_space<vmem>>, vector<8x8xf32>
    %c2 = arith.constant 2 : index
    %c0_48 = arith.constant 0 : index
    %145 = vector.load %arg3[%c2, %c0_48] : memref<4x8xf32, #tpu.memory_space<vmem>>, vector<1x8xf32>
    %c2_49 = arith.constant 2 : index
    %c0_50 = arith.constant 0 : index
    %146 = vector.load %arg4[%c2_49, %c0_50] : memref<4x8xf32, #tpu.memory_space<vmem>>, vector<1x8xf32>
    %147 = vector.broadcast %145 : vector<1x8xf32> to vector<8x8xf32>
    %148 = arith.addf %141, %147 : vector<8x8xf32>
    %cst_51 = arith.constant dense<0.000000e+00> : vector<8x8xf32>
    %149 = tpu.matmul %148, %142, %cst_51 {dimension_numbers = #tpu.dot_dimension_numbers<[1], [1], [0], [0], [0, 0, 1, 0], [], []>} : vector<8x8xf32>, vector<8x8xf32>, vector<8x8xf32> -> vector<8x8xf32>
    %150 = vector.broadcast %146 : vector<1x8xf32> to vector<8x8xf32>
    %151 = arith.addf %141, %150 : vector<8x8xf32>
    %cst_52 = arith.constant dense<0.000000e+00> : vector<8x8xf32>
    %152 = tpu.matmul %151, %144, %cst_52 {dimension_numbers = #tpu.dot_dimension_numbers<[1], [1], [0], [0], [0, 0, 1, 0], [], []>} : vector<8x8xf32>, vector<8x8xf32>, vector<8x8xf32> -> vector<8x8xf32>
    %153 = tpu.iota {dimensions = array<i32: 0>} : vector<8x1xi32>
    %c1_i32_53 = arith.constant 1 : i32
    %154 = vector.broadcast %c1_i32_53 : i32 to vector<8x1xi32>
    %155 = arith.addi %153, %154 : vector<8x1xi32>
    %156 = vector.extract_strided_slice %152 {offsets = [0, 7], sizes = [8, 1], strides = [1, 1]} : vector<8x8xf32> to vector<8x1xf32>
    %157 = vector.extract_strided_slice %152 {offsets = [0, 0], sizes = [8, 7], strides = [1, 1]} : vector<8x8xf32> to vector<8x7xf32>
    %158 = tpu.concatenate %156, %157 in 1 : vector<8x1xf32>, vector<8x7xf32> -> vector<8x8xf32>
    %c0_i32_54 = arith.constant 0 : i32
    %159 = vector.broadcast %c0_i32_54 : i32 to vector<8x1xi32>
    %160 = arith.shrsi %155, %159 : vector<8x1xi32>
    %c1_i32_55 = arith.constant 1 : i32
    %161 = vector.broadcast %c1_i32_55 : i32 to vector<8x1xi32>
    %162 = arith.andi %160, %161 : vector<8x1xi32>
    %c1_i32_56 = arith.constant 1 : i32
    %163 = vector.broadcast %c1_i32_56 : i32 to vector<8x1xi32>
    %164 = arith.cmpi eq, %162, %163 : vector<8x1xi32>
    %165 = vector.shape_cast %164 : vector<8x1xi1> to vector<8x1xi1>
    %166 = vector.broadcast %165 : vector<8x1xi1> to vector<8x8xi1>
    %167 = arith.select %166, %158, %152 : vector<8x8xi1>, vector<8x8xf32>
    %168 = vector.extract_strided_slice %167 {offsets = [0, 6], sizes = [8, 2], strides = [1, 1]} : vector<8x8xf32> to vector<8x2xf32>
    %169 = vector.extract_strided_slice %167 {offsets = [0, 0], sizes = [8, 6], strides = [1, 1]} : vector<8x8xf32> to vector<8x6xf32>
    %170 = tpu.concatenate %168, %169 in 1 : vector<8x2xf32>, vector<8x6xf32> -> vector<8x8xf32>
    %c1_i32_57 = arith.constant 1 : i32
    %171 = vector.broadcast %c1_i32_57 : i32 to vector<8x1xi32>
    %172 = arith.shrsi %155, %171 : vector<8x1xi32>
    %c1_i32_58 = arith.constant 1 : i32
    %173 = vector.broadcast %c1_i32_58 : i32 to vector<8x1xi32>
    %174 = arith.andi %172, %173 : vector<8x1xi32>
    %c1_i32_59 = arith.constant 1 : i32
    %175 = vector.broadcast %c1_i32_59 : i32 to vector<8x1xi32>
    %176 = arith.cmpi eq, %174, %175 : vector<8x1xi32>
    %177 = vector.shape_cast %176 : vector<8x1xi1> to vector<8x1xi1>
    %178 = vector.broadcast %177 : vector<8x1xi1> to vector<8x8xi1>
    %179 = arith.select %178, %170, %167 : vector<8x8xi1>, vector<8x8xf32>
    %180 = vector.extract_strided_slice %179 {offsets = [0, 4], sizes = [8, 4], strides = [1, 1]} : vector<8x8xf32> to vector<8x4xf32>
    %181 = vector.extract_strided_slice %179 {offsets = [0, 0], sizes = [8, 4], strides = [1, 1]} : vector<8x8xf32> to vector<8x4xf32>
    %182 = tpu.concatenate %180, %181 in 1 : vector<8x4xf32>, vector<8x4xf32> -> vector<8x8xf32>
    %c2_i32_60 = arith.constant 2 : i32
    %183 = vector.broadcast %c2_i32_60 : i32 to vector<8x1xi32>
    %184 = arith.shrsi %155, %183 : vector<8x1xi32>
    %c1_i32_61 = arith.constant 1 : i32
    %185 = vector.broadcast %c1_i32_61 : i32 to vector<8x1xi32>
    %186 = arith.andi %184, %185 : vector<8x1xi32>
    %c1_i32_62 = arith.constant 1 : i32
    %187 = vector.broadcast %c1_i32_62 : i32 to vector<8x1xi32>
    %188 = arith.cmpi eq, %186, %187 : vector<8x1xi32>
    %189 = vector.shape_cast %188 : vector<8x1xi1> to vector<8x1xi1>
    %190 = vector.broadcast %189 : vector<8x1xi1> to vector<8x8xi1>
    %191 = arith.select %190, %182, %179 : vector<8x8xi1>, vector<8x8xf32>
    %192 = arith.addf %149, %191 : vector<8x8xf32>
    %cst_63 = arith.constant 0.353553385 : f32
    %193 = vector.broadcast %cst_63 : f32 to vector<8x8xf32>
    %194 = arith.mulf %192, %193 : vector<8x8xf32>
    %cst_64 = arith.constant 0.000000e+00 : f32
    %195 = vector.broadcast %cst_64 : f32 to vector<8x8xf32>
    %196 = arith.cmpf ogt, %4, %195 : vector<8x8xf32>
    %cst_65 = arith.constant -1.000000e+30 : f32
    %197 = vector.broadcast %cst_65 : f32 to vector<8x8xf32>
    %198 = arith.select %196, %197, %194 : vector<8x8xi1>, vector<8x8xf32>
    %cst_66 = arith.constant dense<0xFF800000> : vector<8xf32>
    %199 = vector.multi_reduction <maximumf>, %198, %cst_66 [1] : vector<8x8xf32> to vector<8xf32>
    %200 = vector.shape_cast %199 : vector<8xf32> to vector<8x1xf32>
    %201 = vector.broadcast %200 : vector<8x1xf32> to vector<8x8xf32>
    %202 = arith.subf %198, %201 : vector<8x8xf32>
    %203 = math.exp %202 : vector<8x8xf32>
    %cst_67 = arith.constant dense<0.000000e+00> : vector<8xf32>
    %204 = vector.multi_reduction <add>, %203, %cst_67 [1] : vector<8x8xf32> to vector<8xf32>
    %205 = vector.shape_cast %204 : vector<8xf32> to vector<8x1xf32>
    %206 = vector.broadcast %205 : vector<8x1xf32> to vector<8x8xf32>
    %207 = arith.divf %203, %206 : vector<8x8xf32>
    %cst_68 = arith.constant dense<0.000000e+00> : vector<8x8xf32>
    %208 = tpu.matmul %207, %143, %cst_68 {dimension_numbers = #tpu.dot_dimension_numbers<[1], [0], [0], [1], [0, 0, 1, 1], [], []>} : vector<8x8xf32>, vector<8x8xf32>, vector<8x8xf32> -> vector<8x8xf32>
    %209 = vector.extract_strided_slice %1 {offsets = [0, 72], sizes = [8, 8], strides = [1, 1]} : vector<8x96xf32> to vector<8x8xf32>
    %210 = vector.extract_strided_slice %1 {offsets = [0, 80], sizes = [8, 8], strides = [1, 1]} : vector<8x96xf32> to vector<8x8xf32>
    %211 = vector.extract_strided_slice %1 {offsets = [0, 88], sizes = [8, 8], strides = [1, 1]} : vector<8x96xf32> to vector<8x8xf32>
    %c0_69 = arith.constant 0 : index
    %c24 = arith.constant 24 : index
    %212 = vector.load %arg2[%c0_69, %c24] : memref<8x32xf32, #tpu.memory_space<vmem>>, vector<8x8xf32>
    %c3 = arith.constant 3 : index
    %c0_70 = arith.constant 0 : index
    %213 = vector.load %arg3[%c3, %c0_70] : memref<4x8xf32, #tpu.memory_space<vmem>>, vector<1x8xf32>
    %c3_71 = arith.constant 3 : index
    %c0_72 = arith.constant 0 : index
    %214 = vector.load %arg4[%c3_71, %c0_72] : memref<4x8xf32, #tpu.memory_space<vmem>>, vector<1x8xf32>
    %215 = vector.broadcast %213 : vector<1x8xf32> to vector<8x8xf32>
    %216 = arith.addf %209, %215 : vector<8x8xf32>
    %cst_73 = arith.constant dense<0.000000e+00> : vector<8x8xf32>
    %217 = tpu.matmul %216, %210, %cst_73 {dimension_numbers = #tpu.dot_dimension_numbers<[1], [1], [0], [0], [0, 0, 1, 0], [], []>} : vector<8x8xf32>, vector<8x8xf32>, vector<8x8xf32> -> vector<8x8xf32>
    %218 = vector.broadcast %214 : vector<1x8xf32> to vector<8x8xf32>
    %219 = arith.addf %209, %218 : vector<8x8xf32>
    %cst_74 = arith.constant dense<0.000000e+00> : vector<8x8xf32>
    %220 = tpu.matmul %219, %212, %cst_74 {dimension_numbers = #tpu.dot_dimension_numbers<[1], [1], [0], [0], [0, 0, 1, 0], [], []>} : vector<8x8xf32>, vector<8x8xf32>, vector<8x8xf32> -> vector<8x8xf32>
    %221 = tpu.iota {dimensions = array<i32: 0>} : vector<8x1xi32>
    %c1_i32_75 = arith.constant 1 : i32
    %222 = vector.broadcast %c1_i32_75 : i32 to vector<8x1xi32>
    %223 = arith.addi %221, %222 : vector<8x1xi32>
    %224 = vector.extract_strided_slice %220 {offsets = [0, 7], sizes = [8, 1], strides = [1, 1]} : vector<8x8xf32> to vector<8x1xf32>
    %225 = vector.extract_strided_slice %220 {offsets = [0, 0], sizes = [8, 7], strides = [1, 1]} : vector<8x8xf32> to vector<8x7xf32>
    %226 = tpu.concatenate %224, %225 in 1 : vector<8x1xf32>, vector<8x7xf32> -> vector<8x8xf32>
    %c0_i32_76 = arith.constant 0 : i32
    %227 = vector.broadcast %c0_i32_76 : i32 to vector<8x1xi32>
    %228 = arith.shrsi %223, %227 : vector<8x1xi32>
    %c1_i32_77 = arith.constant 1 : i32
    %229 = vector.broadcast %c1_i32_77 : i32 to vector<8x1xi32>
    %230 = arith.andi %228, %229 : vector<8x1xi32>
    %c1_i32_78 = arith.constant 1 : i32
    %231 = vector.broadcast %c1_i32_78 : i32 to vector<8x1xi32>
    %232 = arith.cmpi eq, %230, %231 : vector<8x1xi32>
    %233 = vector.shape_cast %232 : vector<8x1xi1> to vector<8x1xi1>
    %234 = vector.broadcast %233 : vector<8x1xi1> to vector<8x8xi1>
    %235 = arith.select %234, %226, %220 : vector<8x8xi1>, vector<8x8xf32>
    %236 = vector.extract_strided_slice %235 {offsets = [0, 6], sizes = [8, 2], strides = [1, 1]} : vector<8x8xf32> to vector<8x2xf32>
    %237 = vector.extract_strided_slice %235 {offsets = [0, 0], sizes = [8, 6], strides = [1, 1]} : vector<8x8xf32> to vector<8x6xf32>
    %238 = tpu.concatenate %236, %237 in 1 : vector<8x2xf32>, vector<8x6xf32> -> vector<8x8xf32>
    %c1_i32_79 = arith.constant 1 : i32
    %239 = vector.broadcast %c1_i32_79 : i32 to vector<8x1xi32>
    %240 = arith.shrsi %223, %239 : vector<8x1xi32>
    %c1_i32_80 = arith.constant 1 : i32
    %241 = vector.broadcast %c1_i32_80 : i32 to vector<8x1xi32>
    %242 = arith.andi %240, %241 : vector<8x1xi32>
    %c1_i32_81 = arith.constant 1 : i32
    %243 = vector.broadcast %c1_i32_81 : i32 to vector<8x1xi32>
    %244 = arith.cmpi eq, %242, %243 : vector<8x1xi32>
    %245 = vector.shape_cast %244 : vector<8x1xi1> to vector<8x1xi1>
    %246 = vector.broadcast %245 : vector<8x1xi1> to vector<8x8xi1>
    %247 = arith.select %246, %238, %235 : vector<8x8xi1>, vector<8x8xf32>
    %248 = vector.extract_strided_slice %247 {offsets = [0, 4], sizes = [8, 4], strides = [1, 1]} : vector<8x8xf32> to vector<8x4xf32>
    %249 = vector.extract_strided_slice %247 {offsets = [0, 0], sizes = [8, 4], strides = [1, 1]} : vector<8x8xf32> to vector<8x4xf32>
    %250 = tpu.concatenate %248, %249 in 1 : vector<8x4xf32>, vector<8x4xf32> -> vector<8x8xf32>
    %c2_i32_82 = arith.constant 2 : i32
    %251 = vector.broadcast %c2_i32_82 : i32 to vector<8x1xi32>
    %252 = arith.shrsi %223, %251 : vector<8x1xi32>
    %c1_i32_83 = arith.constant 1 : i32
    %253 = vector.broadcast %c1_i32_83 : i32 to vector<8x1xi32>
    %254 = arith.andi %252, %253 : vector<8x1xi32>
    %c1_i32_84 = arith.constant 1 : i32
    %255 = vector.broadcast %c1_i32_84 : i32 to vector<8x1xi32>
    %256 = arith.cmpi eq, %254, %255 : vector<8x1xi32>
    %257 = vector.shape_cast %256 : vector<8x1xi1> to vector<8x1xi1>
    %258 = vector.broadcast %257 : vector<8x1xi1> to vector<8x8xi1>
    %259 = arith.select %258, %250, %247 : vector<8x8xi1>, vector<8x8xf32>
    %260 = arith.addf %217, %259 : vector<8x8xf32>
    %cst_85 = arith.constant 0.353553385 : f32
    %261 = vector.broadcast %cst_85 : f32 to vector<8x8xf32>
    %262 = arith.mulf %260, %261 : vector<8x8xf32>
    %cst_86 = arith.constant 0.000000e+00 : f32
    %263 = vector.broadcast %cst_86 : f32 to vector<8x8xf32>
    %264 = arith.cmpf ogt, %4, %263 : vector<8x8xf32>
    %cst_87 = arith.constant -1.000000e+30 : f32
    %265 = vector.broadcast %cst_87 : f32 to vector<8x8xf32>
    %266 = arith.select %264, %265, %262 : vector<8x8xi1>, vector<8x8xf32>
    %cst_88 = arith.constant dense<0xFF800000> : vector<8xf32>
    %267 = vector.multi_reduction <maximumf>, %266, %cst_88 [1] : vector<8x8xf32> to vector<8xf32>
    %268 = vector.shape_cast %267 : vector<8xf32> to vector<8x1xf32>
    %269 = vector.broadcast %268 : vector<8x1xf32> to vector<8x8xf32>
    %270 = arith.subf %266, %269 : vector<8x8xf32>
    %271 = math.exp %270 : vector<8x8xf32>
    %cst_89 = arith.constant dense<0.000000e+00> : vector<8xf32>
    %272 = vector.multi_reduction <add>, %271, %cst_89 [1] : vector<8x8xf32> to vector<8xf32>
    %273 = vector.shape_cast %272 : vector<8xf32> to vector<8x1xf32>
    %274 = vector.broadcast %273 : vector<8x1xf32> to vector<8x8xf32>
    %275 = arith.divf %271, %274 : vector<8x8xf32>
    %cst_90 = arith.constant dense<0.000000e+00> : vector<8x8xf32>
    %276 = tpu.matmul %275, %211, %cst_90 {dimension_numbers = #tpu.dot_dimension_numbers<[1], [0], [0], [1], [0, 0, 1, 1], [], []>} : vector<8x8xf32>, vector<8x8xf32>, vector<8x8xf32> -> vector<8x8xf32>
    %277 = tpu.concatenate %72, %140, %208, %276 in 1 : vector<8x8xf32>, vector<8x8xf32>, vector<8x8xf32>, vector<8x8xf32> -> vector<8x32xf32>
    %c0_91 = arith.constant 0 : index
    %c0_92 = arith.constant 0 : index
    %c0_93 = arith.constant 0 : index
    %278 = vector.load %arg6[%c0_91, %c0_92, %c0_93] : memref<1x8x32xf32, #tpu.memory_space<vmem>>, vector<1x8x32xf32>
    %279 = vector.shape_cast %278 : vector<1x8x32xf32> to vector<8x32xf32>
    %280 = vector.shape_cast %277 : vector<8x32xf32> to vector<1x8x32xf32>
    tpu.vector_store %arg6[%c0_91, %c0_92, %c0_93], %280 {strides = array<i32>} : memref<1x8x32xf32, #tpu.memory_space<vmem>>, vector<1x8x32xf32>,
    return
  }
  func.func @transform_0(%arg0: i32) -> (i32, i32, i32) {
    %c0_i32 = arith.constant 0 : i32
    %c0_i32_0 = arith.constant 0 : i32
    %c0_i32_1 = arith.constant 0 : i32
    return %arg0, %c0_i32, %c0_i32_0 : i32, i32, i32
  }
  func.func @transform_1(%arg0: i32) -> (i32, i32) {
    %c0_i32 = arith.constant 0 : i32
    %c0_i32_0 = arith.constant 0 : i32
    %c0_i32_1 = arith.constant 0 : i32
    return %c0_i32, %c0_i32_0 : i32, i32
  }
  func.func @transform_2(%arg0: i32) -> (i32, i32) {
    %c0_i32 = arith.constant 0 : i32
    %c0_i32_0 = arith.constant 0 : i32
    %c0_i32_1 = arith.constant 0 : i32
    return %c0_i32, %c0_i32_0 : i32, i32
  }
  func.func @transform_3(%arg0: i32) -> (i32, i32) {
    %c0_i32 = arith.constant 0 : i32
    %c0_i32_0 = arith.constant 0 : i32
    %c0_i32_1 = arith.constant 0 : i32
    return %c0_i32, %c0_i32_0 : i32, i32
  }
  func.func @transform_4(%arg0: i32) -> (i32, i32, i32) {
    %c0_i32 = arith.constant 0 : i32
    %c0_i32_0 = arith.constant 0 : i32
    %c0_i32_1 = arith.constant 0 : i32
    return %arg0, %c0_i32, %c0_i32_0 : i32, i32, i32
  }
  func.func @transform_5(%arg0: i32) -> (i32, i32, i32) {
    %c0_i32 = arith.constant 0 : i32
    %c0_i32_0 = arith.constant 0 : i32
    %c0_i32_1 = arith.constant 0 : i32
    return %arg0, %c0_i32, %c0_i32_0 : i32, i32, i32
  }
}

module attributes {stable_mosaic.version = 11 : i64} {
  func.func @_ln_linear_kernel(%arg0: i32, %arg1: memref<16x32xf32, #tpu.memory_space<vmem>>, %arg2: memref<1x32xf32, #tpu.memory_space<vmem>>, %arg3: memref<1x32xf32, #tpu.memory_space<vmem>>, %arg4: memref<32x32xf32, #tpu.memory_space<vmem>>, %arg5: memref<1x32xf32, #tpu.memory_space<vmem>>, %arg6: memref<16x32xf32, #tpu.memory_space<vmem>>) attributes {dimension_semantics = [#tpu.dimension_semantics<parallel>], iteration_bounds = array<i64: 1>, scalar_prefetch = 0 : i64, scratch_operands = 0 : i64, tpu.core_type = #tpu.core_type<tc>, window_params = [{transform_indices = @transform_0, window_bounds = array<i64: 16, 32>}, {pipeline_mode = #tpu.pipeline_mode<synchronous>, transform_indices = @transform_1, window_bounds = array<i64: 1, 32>}, {pipeline_mode = #tpu.pipeline_mode<synchronous>, transform_indices = @transform_2, window_bounds = array<i64: 1, 32>}, {pipeline_mode = #tpu.pipeline_mode<synchronous>, transform_indices = @transform_3, window_bounds = array<i64: 32, 32>}, {pipeline_mode = #tpu.pipeline_mode<synchronous>, transform_indices = @transform_4, window_bounds = array<i64: 1, 32>}, {transform_indices = @transform_5, window_bounds = array<i64: 16, 32>}]} {
    %c0 = arith.constant 0 : index
    %c0_0 = arith.constant 0 : index
    %0 = vector.load %arg1[%c0, %c0_0] : memref<16x32xf32, #tpu.memory_space<vmem>>, vector<16x32xf32>
    %cst = arith.constant dense<0.000000e+00> : vector<16xf32>
    %1 = vector.multi_reduction <add>, %0, %cst [1] : vector<16x32xf32> to vector<16xf32>
    %2 = vector.shape_cast %1 : vector<16xf32> to vector<16x1xf32>
    %cst_1 = arith.constant 3.200000e+01 : f32
    %3 = vector.broadcast %cst_1 : f32 to vector<16x1xf32>
    %4 = arith.divf %2, %3 : vector<16x1xf32>
    %5 = vector.broadcast %4 : vector<16x1xf32> to vector<16x32xf32>
    %6 = arith.subf %0, %5 : vector<16x32xf32>
    %7 = arith.mulf %6, %6 : vector<16x32xf32>
    %cst_2 = arith.constant dense<0.000000e+00> : vector<16xf32>
    %8 = vector.multi_reduction <add>, %7, %cst_2 [1] : vector<16x32xf32> to vector<16xf32>
    %9 = vector.shape_cast %8 : vector<16xf32> to vector<16x1xf32>
    %cst_3 = arith.constant 3.200000e+01 : f32
    %10 = vector.broadcast %cst_3 : f32 to vector<16x1xf32>
    %11 = arith.divf %9, %10 : vector<16x1xf32>
    %12 = vector.broadcast %4 : vector<16x1xf32> to vector<16x32xf32>
    %13 = arith.subf %0, %12 : vector<16x32xf32>
    %cst_4 = arith.constant 9.99999974E-6 : f32
    %14 = vector.broadcast %cst_4 : f32 to vector<16x1xf32>
    %15 = arith.addf %11, %14 : vector<16x1xf32>
    %16 = math.rsqrt %15 : vector<16x1xf32>
    %17 = vector.broadcast %16 : vector<16x1xf32> to vector<16x32xf32>
    %18 = arith.mulf %13, %17 : vector<16x32xf32>
    %c0_5 = arith.constant 0 : index
    %c0_6 = arith.constant 0 : index
    %19 = vector.load %arg2[%c0_5, %c0_6] : memref<1x32xf32, #tpu.memory_space<vmem>>, vector<1x32xf32>
    %20 = vector.broadcast %19 : vector<1x32xf32> to vector<16x32xf32>
    %21 = arith.mulf %18, %20 : vector<16x32xf32>
    %c0_7 = arith.constant 0 : index
    %c0_8 = arith.constant 0 : index
    %22 = vector.load %arg3[%c0_7, %c0_8] : memref<1x32xf32, #tpu.memory_space<vmem>>, vector<1x32xf32>
    %23 = vector.broadcast %22 : vector<1x32xf32> to vector<16x32xf32>
    %24 = arith.addf %21, %23 : vector<16x32xf32>
    %c0_9 = arith.constant 0 : index
    %c0_10 = arith.constant 0 : index
    %25 = vector.load %arg4[%c0_9, %c0_10] : memref<32x32xf32, #tpu.memory_space<vmem>>, vector<32x32xf32>
    %cst_11 = arith.constant dense<0.000000e+00> : vector<16x32xf32>
    %26 = tpu.matmul %24, %25, %cst_11 {dimension_numbers = #tpu.dot_dimension_numbers<[1], [0], [0], [1], [0, 0, 1, 1], [], []>} : vector<16x32xf32>, vector<32x32xf32>, vector<16x32xf32> -> vector<16x32xf32>
    %c0_12 = arith.constant 0 : index
    %c0_13 = arith.constant 0 : index
    %27 = vector.load %arg5[%c0_12, %c0_13] : memref<1x32xf32, #tpu.memory_space<vmem>>, vector<1x32xf32>
    %28 = vector.broadcast %27 : vector<1x32xf32> to vector<16x32xf32>
    %29 = arith.addf %26, %28 : vector<16x32xf32>
    %c0_14 = arith.constant 0 : index
    %c0_15 = arith.constant 0 : index
    %30 = vector.load %arg6[%c0_14, %c0_15] : memref<16x32xf32, #tpu.memory_space<vmem>>, vector<16x32xf32>
    tpu.vector_store %arg6[%c0_14, %c0_15], %29 {strides = array<i32>} : memref<16x32xf32, #tpu.memory_space<vmem>>, vector<16x32xf32>,
    return
  }
  func.func @transform_0(%arg0: i32) -> (i32, i32) {
    %c0_i32 = arith.constant 0 : i32
    %c0_i32_0 = arith.constant 0 : i32
    return %arg0, %c0_i32 : i32, i32
  }
  func.func @transform_1(%arg0: i32) -> (i32, i32) {
    %c0_i32 = arith.constant 0 : i32
    %c0_i32_0 = arith.constant 0 : i32
    %c0_i32_1 = arith.constant 0 : i32
    return %c0_i32, %c0_i32_0 : i32, i32
  }
  func.func @transform_2(%arg0: i32) -> (i32, i32) {
    %c0_i32 = arith.constant 0 : i32
    %c0_i32_0 = arith.constant 0 : i32
    %c0_i32_1 = arith.constant 0 : i32
    return %c0_i32, %c0_i32_0 : i32, i32
  }
  func.func @transform_3(%arg0: i32) -> (i32, i32) {
    %c0_i32 = arith.constant 0 : i32
    %c0_i32_0 = arith.constant 0 : i32
    %c0_i32_1 = arith.constant 0 : i32
    return %c0_i32, %c0_i32_0 : i32, i32
  }
  func.func @transform_4(%arg0: i32) -> (i32, i32) {
    %c0_i32 = arith.constant 0 : i32
    %c0_i32_0 = arith.constant 0 : i32
    %c0_i32_1 = arith.constant 0 : i32
    return %c0_i32, %c0_i32_0 : i32, i32
  }
  func.func @transform_5(%arg0: i32) -> (i32, i32) {
    %c0_i32 = arith.constant 0 : i32
    %c0_i32_0 = arith.constant 0 : i32
    return %arg0, %c0_i32 : i32, i32
  }
}

module attributes {stable_mosaic.version = 11 : i64} {
  func.func @_ln_linear_kernel(%arg0: i32, %arg1: memref<32x32xf32, #tpu.memory_space<vmem>>, %arg2: memref<1x32xf32, #tpu.memory_space<vmem>>, %arg3: memref<1x32xf32, #tpu.memory_space<vmem>>, %arg4: memref<32x64xf32, #tpu.memory_space<vmem>>, %arg5: memref<1x64xf32, #tpu.memory_space<vmem>>, %arg6: memref<32x64xf32, #tpu.memory_space<vmem>>) attributes {dimension_semantics = [#tpu.dimension_semantics<parallel>], iteration_bounds = array<i64: 1>, scalar_prefetch = 0 : i64, scratch_operands = 0 : i64, tpu.core_type = #tpu.core_type<tc>, window_params = [{transform_indices = @transform_0, window_bounds = array<i64: 32, 32>}, {pipeline_mode = #tpu.pipeline_mode<synchronous>, transform_indices = @transform_1, window_bounds = array<i64: 1, 32>}, {pipeline_mode = #tpu.pipeline_mode<synchronous>, transform_indices = @transform_2, window_bounds = array<i64: 1, 32>}, {pipeline_mode = #tpu.pipeline_mode<synchronous>, transform_indices = @transform_3, window_bounds = array<i64: 32, 64>}, {pipeline_mode = #tpu.pipeline_mode<synchronous>, transform_indices = @transform_4, window_bounds = array<i64: 1, 64>}, {transform_indices = @transform_5, window_bounds = array<i64: 32, 64>}]} {
    %c0 = arith.constant 0 : index
    %c0_0 = arith.constant 0 : index
    %0 = vector.load %arg1[%c0, %c0_0] : memref<32x32xf32, #tpu.memory_space<vmem>>, vector<32x32xf32>
    %c0_1 = arith.constant 0 : index
    %c0_2 = arith.constant 0 : index
    %1 = vector.load %arg4[%c0_1, %c0_2] : memref<32x64xf32, #tpu.memory_space<vmem>>, vector<32x64xf32>
    %cst = arith.constant dense<0.000000e+00> : vector<32x64xf32>
    %2 = tpu.matmul %0, %1, %cst {dimension_numbers = #tpu.dot_dimension_numbers<[1], [0], [0], [1], [0, 0, 1, 1], [], []>} : vector<32x32xf32>, vector<32x64xf32>, vector<32x64xf32> -> vector<32x64xf32>
    %c0_3 = arith.constant 0 : index
    %c0_4 = arith.constant 0 : index
    %3 = vector.load %arg5[%c0_3, %c0_4] : memref<1x64xf32, #tpu.memory_space<vmem>>, vector<1x64xf32>
    %4 = vector.broadcast %3 : vector<1x64xf32> to vector<32x64xf32>
    %5 = arith.addf %2, %4 : vector<32x64xf32>
    %c0_5 = arith.constant 0 : index
    %c0_6 = arith.constant 0 : index
    %6 = vector.load %arg6[%c0_5, %c0_6] : memref<32x64xf32, #tpu.memory_space<vmem>>, vector<32x64xf32>
    tpu.vector_store %arg6[%c0_5, %c0_6], %5 {strides = array<i32>} : memref<32x64xf32, #tpu.memory_space<vmem>>, vector<32x64xf32>,
    return
  }
  func.func @transform_0(%arg0: i32) -> (i32, i32) {
    %c0_i32 = arith.constant 0 : i32
    %c0_i32_0 = arith.constant 0 : i32
    return %arg0, %c0_i32 : i32, i32
  }
  func.func @transform_1(%arg0: i32) -> (i32, i32) {
    %c0_i32 = arith.constant 0 : i32
    %c0_i32_0 = arith.constant 0 : i32
    %c0_i32_1 = arith.constant 0 : i32
    return %c0_i32, %c0_i32_0 : i32, i32
  }
  func.func @transform_2(%arg0: i32) -> (i32, i32) {
    %c0_i32 = arith.constant 0 : i32
    %c0_i32_0 = arith.constant 0 : i32
    %c0_i32_1 = arith.constant 0 : i32
    return %c0_i32, %c0_i32_0 : i32, i32
  }
  func.func @transform_3(%arg0: i32) -> (i32, i32) {
    %c0_i32 = arith.constant 0 : i32
    %c0_i32_0 = arith.constant 0 : i32
    %c0_i32_1 = arith.constant 0 : i32
    return %c0_i32, %c0_i32_0 : i32, i32
  }
  func.func @transform_4(%arg0: i32) -> (i32, i32) {
    %c0_i32 = arith.constant 0 : i32
    %c0_i32_0 = arith.constant 0 : i32
    %c0_i32_1 = arith.constant 0 : i32
    return %c0_i32, %c0_i32_0 : i32, i32
  }
  func.func @transform_5(%arg0: i32) -> (i32, i32) {
    %c0_i32 = arith.constant 0 : i32
    %c0_i32_0 = arith.constant 0 : i32
    return %arg0, %c0_i32 : i32, i32
  }
}

module attributes {stable_mosaic.version = 11 : i64} {
  func.func @_cross_attn_kernel(%arg0: i32, %arg1: memref<1x8x32xf32, #tpu.memory_space<vmem>>, %arg2: memref<1x16x64xf32, #tpu.memory_space<vmem>>, %arg3: memref<1x1x16xi8, #tpu.memory_space<vmem>>, %arg4: memref<1x8x32xf32, #tpu.memory_space<vmem>>, %arg5: memref<1x4x8x16xf32, #tpu.memory_space<vmem>>) attributes {dimension_semantics = [#tpu.dimension_semantics<parallel>], iteration_bounds = array<i64: 2>, scalar_prefetch = 0 : i64, scratch_operands = 0 : i64, tpu.core_type = #tpu.core_type<tc>, window_params = [{transform_indices = @transform_0, window_bounds = array<i64: 1, 8, 32>}, {transform_indices = @transform_1, window_bounds = array<i64: 1, 16, 64>}, {transform_indices = @transform_2, window_bounds = array<i64: 1, 1, 16>}, {transform_indices = @transform_3, window_bounds = array<i64: 1, 8, 32>}, {transform_indices = @transform_4, window_bounds = array<i64: 1, 4, 8, 16>}]} {
    %c0 = arith.constant 0 : index
    %c0_0 = arith.constant 0 : index
    %c0_1 = arith.constant 0 : index
    %0 = vector.load %arg1[%c0, %c0_0, %c0_1] : memref<1x8x32xf32, #tpu.memory_space<vmem>>, vector<1x8x32xf32>
    %1 = vector.shape_cast %0 : vector<1x8x32xf32> to vector<8x32xf32>
    %c0_2 = arith.constant 0 : index
    %c0_3 = arith.constant 0 : index
    %c0_4 = arith.constant 0 : index
    %2 = vector.load %arg2[%c0_2, %c0_3, %c0_4] : memref<1x16x64xf32, #tpu.memory_space<vmem>>, vector<1x16x64xf32>
    %3 = vector.shape_cast %2 : vector<1x16x64xf32> to vector<16x64xf32>
    %c0_5 = arith.constant 0 : index
    %c0_6 = arith.constant 0 : index
    %c0_7 = arith.constant 0 : index
    %4 = vector.load %arg3[%c0_5, %c0_6, %c0_7] : memref<1x1x16xi8, #tpu.memory_space<vmem>>, vector<1x1x16xi8>
    %5 = vector.shape_cast %4 : vector<1x1x16xi8> to vector<1x16xi8>
    %6 = arith.sitofp %5 : vector<1x16xi8> to vector<1x16xf32>
    %7 = vector.extract_strided_slice %1 {offsets = [0, 0], sizes = [8, 8], strides = [1, 1]} : vector<8x32xf32> to vector<8x8xf32>
    %8 = vector.extract_strided_slice %3 {offsets = [0, 0], sizes = [16, 8], strides = [1, 1]} : vector<16x64xf32> to vector<16x8xf32>
    %9 = vector.extract_strided_slice %3 {offsets = [0, 8], sizes = [16, 8], strides = [1, 1]} : vector<16x64xf32> to vector<16x8xf32>
    %cst = arith.constant dense<0.000000e+00> : vector<8x16xf32>
    %10 = tpu.matmul %7, %8, %cst {dimension_numbers = #tpu.dot_dimension_numbers<[1], [1], [0], [0], [0, 0, 1, 0], [], []>} : vector<8x8xf32>, vector<16x8xf32>, vector<8x16xf32> -> vector<8x16xf32>
    %cst_8 = arith.constant 0.353553385 : f32
    %11 = vector.broadcast %cst_8 : f32 to vector<8x16xf32>
    %12 = arith.mulf %10, %11 : vector<8x16xf32>
    %cst_9 = arith.constant 0.000000e+00 : f32
    %13 = vector.broadcast %cst_9 : f32 to vector<1x16xf32>
    %14 = arith.cmpf ogt, %6, %13 : vector<1x16xf32>
    %cst_10 = arith.constant -1.000000e+30 : f32
    %15 = vector.shape_cast %14 : vector<1x16xi1> to vector<1x16xi1>
    %16 = vector.broadcast %15 : vector<1x16xi1> to vector<8x16xi1>
    %17 = vector.broadcast %cst_10 : f32 to vector<8x16xf32>
    %18 = arith.select %16, %17, %12 : vector<8x16xi1>, vector<8x16xf32>
    %cst_11 = arith.constant dense<0xFF800000> : vector<8xf32>
    %19 = vector.multi_reduction <maximumf>, %18, %cst_11 [1] : vector<8x16xf32> to vector<8xf32>
    %20 = vector.shape_cast %19 : vector<8xf32> to vector<8x1xf32>
    %21 = vector.broadcast %20 : vector<8x1xf32> to vector<8x16xf32>
    %22 = arith.subf %18, %21 : vector<8x16xf32>
    %23 = math.exp %22 : vector<8x16xf32>
    %cst_12 = arith.constant dense<0.000000e+00> : vector<8xf32>
    %24 = vector.multi_reduction <add>, %23, %cst_12 [1] : vector<8x16xf32> to vector<8xf32>
    %25 = vector.shape_cast %24 : vector<8xf32> to vector<8x1xf32>
    %26 = vector.broadcast %25 : vector<8x1xf32> to vector<8x16xf32>
    %27 = arith.divf %23, %26 : vector<8x16xf32>
    %c0_13 = arith.constant 0 : index
    %c0_14 = arith.constant 0 : index
    %c0_15 = arith.constant 0 : index
    %c0_16 = arith.constant 0 : index
    %28 = vector.load %arg5[%c0_13, %c0_14, %c0_15, %c0_16] : memref<1x4x8x16xf32, #tpu.memory_space<vmem>>, vector<1x1x8x16xf32>
    %29 = vector.shape_cast %28 : vector<1x1x8x16xf32> to vector<8x16xf32>
    %30 = vector.shape_cast %27 : vector<8x16xf32> to vector<1x1x8x16xf32>
    tpu.vector_store %arg5[%c0_13, %c0_14, %c0_15, %c0_16], %30 {strides = array<i32>} : memref<1x4x8x16xf32, #tpu.memory_space<vmem>>, vector<1x1x8x16xf32>,
    %cst_17 = arith.constant dense<0.000000e+00> : vector<8x8xf32>
    %31 = tpu.matmul %27, %9, %cst_17 {dimension_numbers = #tpu.dot_dimension_numbers<[1], [0], [0], [1], [0, 0, 1, 1], [], []>} : vector<8x16xf32>, vector<16x8xf32>, vector<8x8xf32> -> vector<8x8xf32>
    %32 = vector.extract_strided_slice %1 {offsets = [0, 8], sizes = [8, 8], strides = [1, 1]} : vector<8x32xf32> to vector<8x8xf32>
    %33 = vector.extract_strided_slice %3 {offsets = [0, 16], sizes = [16, 8], strides = [1, 1]} : vector<16x64xf32> to vector<16x8xf32>
    %34 = vector.extract_strided_slice %3 {offsets = [0, 24], sizes = [16, 8], strides = [1, 1]} : vector<16x64xf32> to vector<16x8xf32>
    %cst_18 = arith.constant dense<0.000000e+00> : vector<8x16xf32>
    %35 = tpu.matmul %32, %33, %cst_18 {dimension_numbers = #tpu.dot_dimension_numbers<[1], [1], [0], [0], [0, 0, 1, 0], [], []>} : vector<8x8xf32>, vector<16x8xf32>, vector<8x16xf32> -> vector<8x16xf32>
    %cst_19 = arith.constant 0.353553385 : f32
    %36 = vector.broadcast %cst_19 : f32 to vector<8x16xf32>
    %37 = arith.mulf %35, %36 : vector<8x16xf32>
    %cst_20 = arith.constant 0.000000e+00 : f32
    %38 = vector.broadcast %cst_20 : f32 to vector<1x16xf32>
    %39 = arith.cmpf ogt, %6, %38 : vector<1x16xf32>
    %cst_21 = arith.constant -1.000000e+30 : f32
    %40 = vector.shape_cast %39 : vector<1x16xi1> to vector<1x16xi1>
    %41 = vector.broadcast %40 : vector<1x16xi1> to vector<8x16xi1>
    %42 = vector.broadcast %cst_21 : f32 to vector<8x16xf32>
    %43 = arith.select %41, %42, %37 : vector<8x16xi1>, vector<8x16xf32>
    %cst_22 = arith.constant dense<0xFF800000> : vector<8xf32>
    %44 = vector.multi_reduction <maximumf>, %43, %cst_22 [1] : vector<8x16xf32> to vector<8xf32>
    %45 = vector.shape_cast %44 : vector<8xf32> to vector<8x1xf32>
    %46 = vector.broadcast %45 : vector<8x1xf32> to vector<8x16xf32>
    %47 = arith.subf %43, %46 : vector<8x16xf32>
    %48 = math.exp %47 : vector<8x16xf32>
    %cst_23 = arith.constant dense<0.000000e+00> : vector<8xf32>
    %49 = vector.multi_reduction <add>, %48, %cst_23 [1] : vector<8x16xf32> to vector<8xf32>
    %50 = vector.shape_cast %49 : vector<8xf32> to vector<8x1xf32>
    %51 = vector.broadcast %50 : vector<8x1xf32> to vector<8x16xf32>
    %52 = arith.divf %48, %51 : vector<8x16xf32>
    %c0_24 = arith.constant 0 : index
    %c1 = arith.constant 1 : index
    %c0_25 = arith.constant 0 : index
    %c0_26 = arith.constant 0 : index
    %53 = vector.load %arg5[%c0_24, %c1, %c0_25, %c0_26] : memref<1x4x8x16xf32, #tpu.memory_space<vmem>>, vector<1x1x8x16xf32>
    %54 = vector.shape_cast %53 : vector<1x1x8x16xf32> to vector<8x16xf32>
    %55 = vector.shape_cast %52 : vector<8x16xf32> to vector<1x1x8x16xf32>
    tpu.vector_store %arg5[%c0_24, %c1, %c0_25, %c0_26], %55 {strides = array<i32>} : memref<1x4x8x16xf32, #tpu.memory_space<vmem>>, vector<1x1x8x16xf32>,
    %cst_27 = arith.constant dense<0.000000e+00> : vector<8x8xf32>
    %56 = tpu.matmul %52, %34, %cst_27 {dimension_numbers = #tpu.dot_dimension_numbers<[1], [0], [0], [1], [0, 0, 1, 1], [], []>} : vector<8x16xf32>, vector<16x8xf32>, vector<8x8xf32> -> vector<8x8xf32>
    %57 = vector.extract_strided_slice %1 {offsets = [0, 16], sizes = [8, 8], strides = [1, 1]} : vector<8x32xf32> to vector<8x8xf32>
    %58 = vector.extract_strided_slice %3 {offsets = [0, 32], sizes = [16, 8], strides = [1, 1]} : vector<16x64xf32> to vector<16x8xf32>
    %59 = vector.extract_strided_slice %3 {offsets = [0, 40], sizes = [16, 8], strides = [1, 1]} : vector<16x64xf32> to vector<16x8xf32>
    %cst_28 = arith.constant dense<0.000000e+00> : vector<8x16xf32>
    %60 = tpu.matmul %57, %58, %cst_28 {dimension_numbers = #tpu.dot_dimension_numbers<[1], [1], [0], [0], [0, 0, 1, 0], [], []>} : vector<8x8xf32>, vector<16x8xf32>, vector<8x16xf32> -> vector<8x16xf32>
    %cst_29 = arith.constant 0.353553385 : f32
    %61 = vector.broadcast %cst_29 : f32 to vector<8x16xf32>
    %62 = arith.mulf %60, %61 : vector<8x16xf32>
    %cst_30 = arith.constant 0.000000e+00 : f32
    %63 = vector.broadcast %cst_30 : f32 to vector<1x16xf32>
    %64 = arith.cmpf ogt, %6, %63 : vector<1x16xf32>
    %cst_31 = arith.constant -1.000000e+30 : f32
    %65 = vector.shape_cast %64 : vector<1x16xi1> to vector<1x16xi1>
    %66 = vector.broadcast %65 : vector<1x16xi1> to vector<8x16xi1>
    %67 = vector.broadcast %cst_31 : f32 to vector<8x16xf32>
    %68 = arith.select %66, %67, %62 : vector<8x16xi1>, vector<8x16xf32>
    %cst_32 = arith.constant dense<0xFF800000> : vector<8xf32>
    %69 = vector.multi_reduction <maximumf>, %68, %cst_32 [1] : vector<8x16xf32> to vector<8xf32>
    %70 = vector.shape_cast %69 : vector<8xf32> to vector<8x1xf32>
    %71 = vector.broadcast %70 : vector<8x1xf32> to vector<8x16xf32>
    %72 = arith.subf %68, %71 : vector<8x16xf32>
    %73 = math.exp %72 : vector<8x16xf32>
    %cst_33 = arith.constant dense<0.000000e+00> : vector<8xf32>
    %74 = vector.multi_reduction <add>, %73, %cst_33 [1] : vector<8x16xf32> to vector<8xf32>
    %75 = vector.shape_cast %74 : vector<8xf32> to vector<8x1xf32>
    %76 = vector.broadcast %75 : vector<8x1xf32> to vector<8x16xf32>
    %77 = arith.divf %73, %76 : vector<8x16xf32>
    %c0_34 = arith.constant 0 : index
    %c2 = arith.constant 2 : index
    %c0_35 = arith.constant 0 : index
    %c0_36 = arith.constant 0 : index
    %78 = vector.load %arg5[%c0_34, %c2, %c0_35, %c0_36] : memref<1x4x8x16xf32, #tpu.memory_space<vmem>>, vector<1x1x8x16xf32>
    %79 = vector.shape_cast %78 : vector<1x1x8x16xf32> to vector<8x16xf32>
    %80 = vector.shape_cast %77 : vector<8x16xf32> to vector<1x1x8x16xf32>
    tpu.vector_store %arg5[%c0_34, %c2, %c0_35, %c0_36], %80 {strides = array<i32>} : memref<1x4x8x16xf32, #tpu.memory_space<vmem>>, vector<1x1x8x16xf32>,
    %cst_37 = arith.constant dense<0.000000e+00> : vector<8x8xf32>
    %81 = tpu.matmul %77, %59, %cst_37 {dimension_numbers = #tpu.dot_dimension_numbers<[1], [0], [0], [1], [0, 0, 1, 1], [], []>} : vector<8x16xf32>, vector<16x8xf32>, vector<8x8xf32> -> vector<8x8xf32>
    %82 = vector.extract_strided_slice %1 {offsets = [0, 24], sizes = [8, 8], strides = [1, 1]} : vector<8x32xf32> to vector<8x8xf32>
    %83 = vector.extract_strided_slice %3 {offsets = [0, 48], sizes = [16, 8], strides = [1, 1]} : vector<16x64xf32> to vector<16x8xf32>
    %84 = vector.extract_strided_slice %3 {offsets = [0, 56], sizes = [16, 8], strides = [1, 1]} : vector<16x64xf32> to vector<16x8xf32>
    %cst_38 = arith.constant dense<0.000000e+00> : vector<8x16xf32>
    %85 = tpu.matmul %82, %83, %cst_38 {dimension_numbers = #tpu.dot_dimension_numbers<[1], [1], [0], [0], [0, 0, 1, 0], [], []>} : vector<8x8xf32>, vector<16x8xf32>, vector<8x16xf32> -> vector<8x16xf32>
    %cst_39 = arith.constant 0.353553385 : f32
    %86 = vector.broadcast %cst_39 : f32 to vector<8x16xf32>
    %87 = arith.mulf %85, %86 : vector<8x16xf32>
    %cst_40 = arith.constant 0.000000e+00 : f32
    %88 = vector.broadcast %cst_40 : f32 to vector<1x16xf32>
    %89 = arith.cmpf ogt, %6, %88 : vector<1x16xf32>
    %cst_41 = arith.constant -1.000000e+30 : f32
    %90 = vector.shape_cast %89 : vector<1x16xi1> to vector<1x16xi1>
    %91 = vector.broadcast %90 : vector<1x16xi1> to vector<8x16xi1>
    %92 = vector.broadcast %cst_41 : f32 to vector<8x16xf32>
    %93 = arith.select %91, %92, %87 : vector<8x16xi1>, vector<8x16xf32>
    %cst_42 = arith.constant dense<0xFF800000> : vector<8xf32>
    %94 = vector.multi_reduction <maximumf>, %93, %cst_42 [1] : vector<8x16xf32> to vector<8xf32>
    %95 = vector.shape_cast %94 : vector<8xf32> to vector<8x1xf32>
    %96 = vector.broadcast %95 : vector<8x1xf32> to vector<8x16xf32>
    %97 = arith.subf %93, %96 : vector<8x16xf32>
    %98 = math.exp %97 : vector<8x16xf32>
    %cst_43 = arith.constant dense<0.000000e+00> : vector<8xf32>
    %99 = vector.multi_reduction <add>, %98, %cst_43 [1] : vector<8x16xf32> to vector<8xf32>
    %100 = vector.shape_cast %99 : vector<8xf32> to vector<8x1xf32>
    %101 = vector.broadcast %100 : vector<8x1xf32> to vector<8x16xf32>
    %102 = arith.divf %98, %101 : vector<8x16xf32>
    %c0_44 = arith.constant 0 : index
    %c3 = arith.constant 3 : index
    %c0_45 = arith.constant 0 : index
    %c0_46 = arith.constant 0 : index
    %103 = vector.load %arg5[%c0_44, %c3, %c0_45, %c0_46] : memref<1x4x8x16xf32, #tpu.memory_space<vmem>>, vector<1x1x8x16xf32>
    %104 = vector.shape_cast %103 : vector<1x1x8x16xf32> to vector<8x16xf32>
    %105 = vector.shape_cast %102 : vector<8x16xf32> to vector<1x1x8x16xf32>
    tpu.vector_store %arg5[%c0_44, %c3, %c0_45, %c0_46], %105 {strides = array<i32>} : memref<1x4x8x16xf32, #tpu.memory_space<vmem>>, vector<1x1x8x16xf32>,
    %cst_47 = arith.constant dense<0.000000e+00> : vector<8x8xf32>
    %106 = tpu.matmul %102, %84, %cst_47 {dimension_numbers = #tpu.dot_dimension_numbers<[1], [0], [0], [1], [0, 0, 1, 1], [], []>} : vector<8x16xf32>, vector<16x8xf32>, vector<8x8xf32> -> vector<8x8xf32>
    %107 = tpu.concatenate %31, %56, %81, %106 in 1 : vector<8x8xf32>, vector<8x8xf32>, vector<8x8xf32>, vector<8x8xf32> -> vector<8x32xf32>
    %c0_48 = arith.constant 0 : index
    %c0_49 = arith.constant 0 : index
    %c0_50 = arith.constant 0 : index
    %108 = vector.load %arg4[%c0_48, %c0_49, %c0_50] : memref<1x8x32xf32, #tpu.memory_space<vmem>>, vector<1x8x32xf32>
    %109 = vector.shape_cast %108 : vector<1x8x32xf32> to vector<8x32xf32>
    %110 = vector.shape_cast %107 : vector<8x32xf32> to vector<1x8x32xf32>
    tpu.vector_store %arg4[%c0_48, %c0_49, %c0_50], %110 {strides = array<i32>} : memref<1x8x32xf32, #tpu.memory_space<vmem>>, vector<1x8x32xf32>,
    return
  }
  func.func @transform_0(%arg0: i32) -> (i32, i32, i32) {
    %c0_i32 = arith.constant 0 : i32
    %c0_i32_0 = arith.constant 0 : i32
    %c0_i32_1 = arith.constant 0 : i32
    return %arg0, %c0_i32, %c0_i32_0 : i32, i32, i32
  }
  func.func @transform_1(%arg0: i32) -> (i32, i32, i32) {
    %c0_i32 = arith.constant 0 : i32
    %c0_i32_0 = arith.constant 0 : i32
    %c0_i32_1 = arith.constant 0 : i32
    return %arg0, %c0_i32, %c0_i32_0 : i32, i32, i32
  }
  func.func @transform_2(%arg0: i32) -> (i32, i32, i32) {
    %c0_i32 = arith.constant 0 : i32
    %c0_i32_0 = arith.constant 0 : i32
    %c0_i32_1 = arith.constant 0 : i32
    return %arg0, %c0_i32, %c0_i32_0 : i32, i32, i32
  }
  func.func @transform_3(%arg0: i32) -> (i32, i32, i32) {
    %c0_i32 = arith.constant 0 : i32
    %c0_i32_0 = arith.constant 0 : i32
    %c0_i32_1 = arith.constant 0 : i32
    return %arg0, %c0_i32, %c0_i32_0 : i32, i32, i32
  }
  func.func @transform_4(%arg0: i32) -> (i32, i32, i32, i32) {
    %c0_i32 = arith.constant 0 : i32
    %c0_i32_0 = arith.constant 0 : i32
    %c0_i32_1 = arith.constant 0 : i32
    %c0_i32_2 = arith.constant 0 : i32
    return %arg0, %c0_i32, %c0_i32_0, %c0_i32_1 : i32, i32, i32, i32
  }
}

module attributes {stable_mosaic.version = 11 : i64} {
  func.func @_ffn_kernel(%arg0: i32, %arg1: memref<16x32xf32, #tpu.memory_space<vmem>>, %arg2: memref<1x32xf32, #tpu.memory_space<vmem>>, %arg3: memref<1x32xf32, #tpu.memory_space<vmem>>, %arg4: memref<32x64xf32, #tpu.memory_space<vmem>>, %arg5: memref<1x64xf32, #tpu.memory_space<vmem>>, %arg6: memref<64x32xf32, #tpu.memory_space<vmem>>, %arg7: memref<1x32xf32, #tpu.memory_space<vmem>>, %arg8: memref<16x32xf32, #tpu.memory_space<vmem>>) attributes {dimension_semantics = [#tpu.dimension_semantics<parallel>], iteration_bounds = array<i64: 1>, scalar_prefetch = 0 : i64, scratch_operands = 0 : i64, tpu.core_type = #tpu.core_type<tc>, window_params = [{transform_indices = @transform_0, window_bounds = array<i64: 16, 32>}, {pipeline_mode = #tpu.pipeline_mode<synchronous>, transform_indices = @transform_1, window_bounds = array<i64: 1, 32>}, {pipeline_mode = #tpu.pipeline_mode<synchronous>, transform_indices = @transform_2, window_bounds = array<i64: 1, 32>}, {pipeline_mode = #tpu.pipeline_mode<synchronous>, transform_indices = @transform_3, window_bounds = array<i64: 32, 64>}, {pipeline_mode = #tpu.pipeline_mode<synchronous>, transform_indices = @transform_4, window_bounds = array<i64: 1, 64>}, {pipeline_mode = #tpu.pipeline_mode<synchronous>, transform_indices = @transform_5, window_bounds = array<i64: 64, 32>}, {pipeline_mode = #tpu.pipeline_mode<synchronous>, transform_indices = @transform_6, window_bounds = array<i64: 1, 32>}, {transform_indices = @transform_7, window_bounds = array<i64: 16, 32>}]} {
    %c0 = arith.constant 0 : index
    %c0_0 = arith.constant 0 : index
    %0 = vector.load %arg1[%c0, %c0_0] : memref<16x32xf32, #tpu.memory_space<vmem>>, vector<16x32xf32>
    %cst = arith.constant dense<0.000000e+00> : vector<16xf32>
    %1 = vector.multi_reduction <add>, %0, %cst [1] : vector<16x32xf32> to vector<16xf32>
    %2 = vector.shape_cast %1 : vector<16xf32> to vector<16x1xf32>
    %cst_1 = arith.constant 3.200000e+01 : f32
    %3 = vector.broadcast %cst_1 : f32 to vector<16x1xf32>
    %4 = arith.divf %2, %3 : vector<16x1xf32>
    %5 = vector.broadcast %4 : vector<16x1xf32> to vector<16x32xf32>
    %6 = arith.subf %0, %5 : vector<16x32xf32>
    %7 = arith.mulf %6, %6 : vector<16x32xf32>
    %cst_2 = arith.constant dense<0.000000e+00> : vector<16xf32>
    %8 = vector.multi_reduction <add>, %7, %cst_2 [1] : vector<16x32xf32> to vector<16xf32>
    %9 = vector.shape_cast %8 : vector<16xf32> to vector<16x1xf32>
    %cst_3 = arith.constant 3.200000e+01 : f32
    %10 = vector.broadcast %cst_3 : f32 to vector<16x1xf32>
    %11 = arith.divf %9, %10 : vector<16x1xf32>
    %12 = vector.broadcast %4 : vector<16x1xf32> to vector<16x32xf32>
    %13 = arith.subf %0, %12 : vector<16x32xf32>
    %cst_4 = arith.constant 9.99999974E-6 : f32
    %14 = vector.broadcast %cst_4 : f32 to vector<16x1xf32>
    %15 = arith.addf %11, %14 : vector<16x1xf32>
    %16 = math.rsqrt %15 : vector<16x1xf32>
    %17 = vector.broadcast %16 : vector<16x1xf32> to vector<16x32xf32>
    %18 = arith.mulf %13, %17 : vector<16x32xf32>
    %c0_5 = arith.constant 0 : index
    %c0_6 = arith.constant 0 : index
    %19 = vector.load %arg2[%c0_5, %c0_6] : memref<1x32xf32, #tpu.memory_space<vmem>>, vector<1x32xf32>
    %20 = vector.broadcast %19 : vector<1x32xf32> to vector<16x32xf32>
    %21 = arith.mulf %18, %20 : vector<16x32xf32>
    %c0_7 = arith.constant 0 : index
    %c0_8 = arith.constant 0 : index
    %22 = vector.load %arg3[%c0_7, %c0_8] : memref<1x32xf32, #tpu.memory_space<vmem>>, vector<1x32xf32>
    %23 = vector.broadcast %22 : vector<1x32xf32> to vector<16x32xf32>
    %24 = arith.addf %21, %23 : vector<16x32xf32>
    %c0_9 = arith.constant 0 : index
    %c0_10 = arith.constant 0 : index
    %25 = vector.load %arg4[%c0_9, %c0_10] : memref<32x64xf32, #tpu.memory_space<vmem>>, vector<32x64xf32>
    %cst_11 = arith.constant dense<0.000000e+00> : vector<16x64xf32>
    %26 = tpu.matmul %24, %25, %cst_11 {dimension_numbers = #tpu.dot_dimension_numbers<[1], [0], [0], [1], [0, 0, 1, 1], [], []>} : vector<16x32xf32>, vector<32x64xf32>, vector<16x64xf32> -> vector<16x64xf32>
    %c0_12 = arith.constant 0 : index
    %c0_13 = arith.constant 0 : index
    %27 = vector.load %arg5[%c0_12, %c0_13] : memref<1x64xf32, #tpu.memory_space<vmem>>, vector<1x64xf32>
    %28 = vector.broadcast %27 : vector<1x64xf32> to vector<16x64xf32>
    %29 = arith.addf %26, %28 : vector<16x64xf32>
    %cst_14 = arith.constant 0.000000e+00 : f32
    %30 = vector.broadcast %cst_14 : f32 to vector<16x64xf32>
    %31 = arith.maximumf %29, %30 : vector<16x64xf32>
    %c0_15 = arith.constant 0 : index
    %c0_16 = arith.constant 0 : index
    %32 = vector.load %arg6[%c0_15, %c0_16] : memref<64x32xf32, #tpu.memory_space<vmem>>, vector<64x32xf32>
    %cst_17 = arith.constant dense<0.000000e+00> : vector<16x32xf32>
    %33 = tpu.matmul %31, %32, %cst_17 {dimension_numbers = #tpu.dot_dimension_numbers<[1], [0], [0], [1], [0, 0, 1, 1], [], []>} : vector<16x64xf32>, vector<64x32xf32>, vector<16x32xf32> -> vector<16x32xf32>
    %c0_18 = arith.constant 0 : index
    %c0_19 = arith.constant 0 : index
    %34 = vector.load %arg7[%c0_18, %c0_19] : memref<1x32xf32, #tpu.memory_space<vmem>>, vector<1x32xf32>
    %35 = vector.broadcast %34 : vector<1x32xf32> to vector<16x32xf32>
    %36 = arith.addf %33, %35 : vector<16x32xf32>
    %37 = arith.addf %36, %0 : vector<16x32xf32>
    %c0_20 = arith.constant 0 : index
    %c0_21 = arith.constant 0 : index
    %38 = vector.load %arg8[%c0_20, %c0_21] : memref<16x32xf32, #tpu.memory_space<vmem>>, vector<16x32xf32>
    tpu.vector_store %arg8[%c0_20, %c0_21], %37 {strides = array<i32>} : memref<16x32xf32, #tpu.memory_space<vmem>>, vector<16x32xf32>,
    return
  }
  func.func @transform_0(%arg0: i32) -> (i32, i32) {
    %c0_i32 = arith.constant 0 : i32
    %c0_i32_0 = arith.constant 0 : i32
    return %arg0, %c0_i32 : i32, i32
  }
  func.func @transform_1(%arg0: i32) -> (i32, i32) {
    %c0_i32 = arith.constant 0 : i32
    %c0_i32_0 = arith.constant 0 : i32
    %c0_i32_1 = arith.constant 0 : i32
    return %c0_i32, %c0_i32_0 : i32, i32
  }
  func.func @transform_2(%arg0: i32) -> (i32, i32) {
    %c0_i32 = arith.constant 0 : i32
    %c0_i32_0 = arith.constant 0 : i32
    %c0_i32_1 = arith.constant 0 : i32
    return %c0_i32, %c0_i32_0 : i32, i32
  }
  func.func @transform_3(%arg0: i32) -> (i32, i32) {
    %c0_i32 = arith.constant 0 : i32
    %c0_i32_0 = arith.constant 0 : i32
    %c0_i32_1 = arith.constant 0 : i32
    return %c0_i32, %c0_i32_0 : i32, i32
  }
  func.func @transform_4(%arg0: i32) -> (i32, i32) {
    %c0_i32 = arith.constant 0 : i32
    %c0_i32_0 = arith.constant 0 : i32
    %c0_i32_1 = arith.constant 0 : i32
    return %c0_i32, %c0_i32_0 : i32, i32
  }
  func.func @transform_5(%arg0: i32) -> (i32, i32) {
    %c0_i32 = arith.constant 0 : i32
    %c0_i32_0 = arith.constant 0 : i32
    %c0_i32_1 = arith.constant 0 : i32
    return %c0_i32, %c0_i32_0 : i32, i32
  }
  func.func @transform_6(%arg0: i32) -> (i32, i32) {
    %c0_i32 = arith.constant 0 : i32
    %c0_i32_0 = arith.constant 0 : i32
    %c0_i32_1 = arith.constant 0 : i32
    return %c0_i32, %c0_i32_0 : i32, i32
  }
  func.func @transform_7(%arg0: i32) -> (i32, i32) {
    %c0_i32 = arith.constant 0 : i32
    %c0_i32_0 = arith.constant 0 : i32
    return %arg0, %c0_i32 : i32, i32
  }
}

</mosaic_0001>

<bundles_post_ra>
// kernel: decoder_layer_forward.12
= control target key start
LH: loop header
LB: loop body
LE: loop exit
PB: predicated region body
PF: predicated region fallthrough
CT: control target
= control target key end

     0   :  { %vm30_vm0 = vcmask 261120   ;;  %s212_s1 = inlined_call_operand.vmem [shape: f32[32,32], index: 1, kind: input, shape index: {}]   ;;  %s213_s0 = inlined_call_operand.vmem [shape: f32[16,32], index: 0, kind: input, shape index: {}]   ;;  %s214_s2 = inlined_call_operand.vmem [shape: f32[1,32], index: 2, kind: input, shape index: {}]   ;;  %s215_s3 = inlined_call_operand.vmem [shape: f32[16,32], index: 3, kind: input, shape index: {}]   ;;  %s216_s4 = inlined_call_operand.vmem [shape: f32[16,32], index: 4, kind: output, shape index: {}]  }
   0x1   :  { %v19_v0 = vld [vmem:[%s212_s1] sm:$0xff]  ;;  %v20_v1 = vld [vmem:[%s212_s1 + $0x8] sm:$0xff]  ;;  %v21_v2 = vld [vmem:[%s212_s1 + $0x10] sm:$0xff] }
   0x2   :  { %v142_v3 = vpack.c.bf16 %v20_v1, %v19_v0  ;;  %v22_v4 = vld [vmem:[%s212_s1 + $0x18] sm:$0xff]  ;;  %v17_v5 = vld [vmem:[%s213_s0] sm:$0xff]  ;;  %v18_v7 = vld [vmem:[%s213_s0 + $0x8] sm:$0xff] }
   0x3   :  { %v146_v6 = vpack.c.bf16 %v22_v4, %v21_v2  ;;  %139 = vmatprep.mubr.msk.f32.mxu0 %vm30_vm0, %v17_v5  ;;  %v122_v8 = vld [vmem:[%s214_s2] ss:$0 sm:$0xff]  ;;  %v113_v10 = vld [vmem:[%s215_s3 + $0x8] sm:$0xff] }
   0x4   :  { %143 = vmatprep.subr.bf16.mxu0 %v142_v3  ;;  %v112_v13 = vld [vmem:[%s215_s3] sm:$0xff] }
   0x5   :  { %145 = vmatpush3.bf16.msra.mxu0 %v142_v3 }
   0x6   :  { %147 = vmatprep.subr.bf16.mxu0 %v146_v6 }
   0x9   :  { %149 = vmatpush3.bf16.msra.mxu0 %v146_v6 }
   0xc   :  { %140 = vmatmul.mubr.msk.f32.vlgmr.msra.gmra.mrb[0].mxu0 %vm30_vm0, %v18_v7 }
  0xdf   :  { %v141_v9 = vpop.f32.mrb[0].mxu0 }
  0xe0   :  { %v109_v11 = vadd.f32 %v141_v9, %v122_v8  ;;  %v103_v12 = vpop.f32.mrb[1].mxu0 }
  0xe1   :  { %v104_v14 = vadd.f32 %v122_v8, %v103_v12 }
  0xe2   :  { %v115_v15 = vadd.f32 %v113_v10, %v109_v11 }
  0xe3   :  { %v114_v16 = vadd.f32 %v112_v13, %v104_v14 }
  0xe4   :  { %117 = vst.msk [vmem:[%s216_s4 + $0x8] sm:$0xff] %vm30_vm0, %v115_v15 }
  0xe5   :  { %116 = vst.msk [vmem:[%s216_s4] sm:$0xff] %vm30_vm0, %v114_v16 }

// kernel: decoder_layer_forward.10
= control target key start
LH: loop header
LB: loop body
LE: loop exit
PB: predicated region body
PF: predicated region fallthrough
CT: control target
= control target key end

     0   :  { %v138_v0 = vmov 0.0|0.0   ;;  %vm139_vm0 = vmmov 0   ;;  %v140_v4 = vmov 0.0   ;;  %vm32_vm1 = vcmask 261120   ;;  %s192_s1 = inlined_call_operand.vmem [shape: f32[1,32], index: 1, kind: input, shape index: {}]   ;;  %s193_s2 = inlined_call_operand.vmem [shape: f32[1,32], index: 2, kind: input, shape index: {}, may-alias: {2,4}]   ;;  %s194_s3 = inlined_call_operand.vmem [shape: f32[32,32], index: 3, kind: input, shape index: {}]   ;;  %s195_s0 = inlined_call_operand.vmem [shape: f32[8,32], index: 0, kind: input, shape index: {}]   ;;  %s196_s4 = inlined_call_operand.vmem [shape: f32[1,32], index: 4, kind: input, shape index: {}, may-alias: {2,4}]   ;;  %s197_s5 = inlined_call_operand.vmem [shape: f32[8,32], index: 5, kind: output, shape index: {}]  }
   0x1   :  { %129 = vmatprep.subr.bf16.mxu0 %v138_v0  ;;  %v21_v1 = vld [vmem:[%s194_s3] sm:$0xff]  ;;  %v22_v2 = vld [vmem:[%s194_s3 + $0x8] sm:$0xff]  ;;  %v23_v3 = vld [vmem:[%s194_s3 + $0x10] sm:$0xff]  ;;  %126 = vmatprep.mubr.msk.f32.mxu0 %vm139_vm0, %v140_v4 }
   0x2   :  { %v130_v5 = vpack.c.bf16 %v22_v2, %v21_v1  ;;  %v24_v6 = vld [vmem:[%s194_s3 + $0x18] sm:$0xff]  ;;  %v20_v8 = vld [vmem:[%s195_s0] sm:$0xff] }
   0x3   :  { %v133_v7 = vpack.c.bf16 %v24_v6, %v23_v3  ;;  %v111_v9 = vld [vmem:[%s196_s4] ss:$0 sm:$0xff] }
   0x4   :  { %131 = vmatpush3.bf16.msra.mxu0 %v130_v5 }
   0x5   :  { %132 = vmatprep.subr.bf16.mxu0 %v138_v0 }
   0x8   :  { %134 = vmatpush3.bf16.msra.mxu0 %v133_v7 }
   0xb   :  { %127 = vmatmul.mubr.msk.f32.vlgmr.msra.gmra.mrb[0].mxu0 %vm32_vm1, %v20_v8 }
  0xde   :  { %v102_v10 = vpop.f32.mrb[0].mxu0 }
  0xdf   :  { %v103_v11 = vadd.f32 %v111_v9, %v102_v10  ;;  %v128_v12 = vpop.f32.mrb[1].mxu0 }
  0xe1   :  { %106 = vst.msk [vmem:[%s197_s5] sm:$0xff] %vm32_vm1, %v103_v11 }

// kernel: decoder_layer_forward.9
= control target key start
LH: loop header
LB: loop body
LE: loop exit
PB: predicated region body
PF: predicated region fallthrough
CT: control target
= control target key end

     0   :  { %vm22_vm0 = vcmask 261120   ;;  %vm160_vm1 = vcmask 785408   ;;  %s270_s0 = inlined_call_operand.vmem [shape: f32[16,32], index: 0, kind: input, shape index: {}]   ;;  %s271_s3 = inlined_call_operand.vmem [shape: f32[32,96], index: 3, kind: input, shape index: {}]   ;;  %s272_s1 = inlined_call_operand.vmem [shape: f32[1,32], index: 1, kind: input, shape index: {}]   ;;  %s273_s2 = inlined_call_operand.vmem [shape: f32[1,32], index: 2, kind: input, shape index: {}]   ;;  %s274_s4 = inlined_call_operand.vmem [shape: f32[1,96], index: 4, kind: input, shape index: {}]   ;;  %s275_s5 = inlined_call_operand.vmem [shape: f32[16,96], index: 5, kind: output, shape index: {}]  }
   0x1   :  { %v20_v0 = vld [vmem:[%s270_s0] sm:$0xff]  ;;  %v21_v1 = vld [vmem:[%s270_s0 + $0x8] sm:$0xff]  ;;  %v70_v16 = vld [vmem:[%s271_s3 + $0x10] sm:$0xff] }
   0x2   :  { %v23_v2 = vsel %vm22_vm0, %v20_v0, 0.0  ;;  %v26_v3 = vsel %vm22_vm0, %v21_v1, 0.0  ;;  %v68_v14 = vld [vmem:[%s271_s3] sm:$0xff]  ;;  %v69_v15 = vld [vmem:[%s271_s3 + $0x8] sm:$0xff]  ;;  %v71_v18 = vld [vmem:[%s271_s3 + $0x18] sm:$0xff] }
   0x3   :  { %24 = vadd.xlane.f32.xlu0 %v23_v2  ;;  %v189_v17 = vpack.c.bf16 %v69_v15, %v68_v14  ;;  %v193_v19 = vpack.c.bf16 %v71_v18, %v70_v16  ;;  %v167_v27 = vld [vmem:[%s272_s1] ss:$0 sm:$0xff] }
   0x4   :  { %v168_v29 = vld [vmem:[%s273_s2] ss:$0 sm:$0xff] }
   0x5   :  { %190 = vmatprep.subr.bf16.mxu0 %v189_v17  ;;  %v169_v36 = vld [vmem:[%s274_s4] ss:$0 sm:$0xff] }
   0x6   :  { %192 = vmatpush3.bf16.msra.mxu0 %v189_v17 }
   0x7   :  { %27 = vadd.xlane.f32.xlu0 %v26_v3  ;;  %194 = vmatprep.subr.bf16.mxu0 %v193_v19 }
   0xa   :  { %196 = vmatpush3.bf16.msra.mxu0 %v193_v19 }
  0x90   :  { %v25_v4 = vpop.xlane.xlu0 %24 }
  0x91   :  { %v30_v5 = vmul.f32 0.03125, %v25_v4 }
  0x93   :  { %v32_v6 = vsub.f32 %v20_v0, %v30_v5 }
  0x94   :  { %v28_v7 = vpop.xlane.xlu0 %27 }
  0x95   :  { %v31_v8 = vmul.f32 0.03125, %v28_v7  ;;  %v34_v9 = vmul.f32 %v32_v6, %v32_v6 }
  0x97   :  { %v33_v10 = vsub.f32 %v21_v1, %v31_v8  ;;  %v36_v11 = vsel %vm22_vm0, %v34_v9, 0.0 }
  0x98   :  { %37 = vadd.xlane.f32.xlu1 %v36_v11 }
  0x99   :  { %v35_v12 = vmul.f32 %v33_v10, %v33_v10 }
  0x9b   :  { %v39_v13 = vsel %vm22_vm0, %v35_v12, 0.0 }
  0x9c   :  { %40 = vadd.xlane.f32.xlu1 %v39_v13 }
 0x125   :  { %v38_v20 = vpop.xlane.xlu1 %37 }
 0x126   :  { %v42_v21 = vmul.f32 0.03125, %v38_v20 }
 0x128   :  { %v44_v22 = vadd.f32 1e-05, %v42_v21 }
 0x129   :  { %v41_v23 = vpop.xlane.xlu1 %40 }
 0x12a   :  { %197 = vrsqrt.f32 %v44_v22  ;;  %v43_v24 = vmul.f32 0.03125, %v41_v23 }
 0x12c   :  { %v45_v25 = vadd.f32 1e-05, %v43_v24 }
 0x12e   :  { %199 = vrsqrt.f32 %v45_v25 }
 0x134   :  { %v198_v26 = vpop.eup %197 }
 0x135   :  { %v48_v28 = vmul.f32 %v198_v26, %v32_v6 }
 0x137   :  { %v57_v30 = vmul.f32 %v167_v27, %v48_v28 }
 0x138   :  { %v200_v31 = vpop.eup %199 }
 0x139   :  { %v49_v32 = vmul.f32 %v200_v31, %v33_v10  ;;  %v66_v33 = vadd.f32 %v168_v29, %v57_v30 }
 0x13b   :  { %v58_v34 = vmul.f32 %v167_v27, %v49_v32  ;;  %186 = vmatprep.mubr.msk.f32.mxu0 %vm22_vm0, %v66_v33 }
 0x13d   :  { %v67_v35 = vadd.f32 %v168_v29, %v58_v34 }
 0x13f   :  { %187 = vmatmul.mubr.msk.f32.vlgmr.msra.gmra.mrb[0].mxu0 %vm22_vm0, %v67_v35 }
 0x212   :  { %v188_v37 = vpop.f32.mrb[0].mxu0 }
 0x213   :  { %v157_v38 = vadd.f32 %v188_v37, %v169_v36  ;;  %v151_v39 = vpop.f32.mrb[1].mxu0 }
 0x214   :  { %v152_v40 = vadd.f32 %v169_v36, %v151_v39 }
 0x215   :  { %162 = vst.msk [vmem:[%s275_s5 + $0x8] sm:$0xff] %vm160_vm1, %v157_v38 }
 0x216   :  { %161 = vst.msk [vmem:[%s275_s5] sm:$0xff] %vm160_vm1, %v152_v40 }

// kernel: decoder_layer_forward.11
= control target key start
LH: loop header
LB: loop body
LE: loop exit
PB: predicated region body
PF: predicated region fallthrough
CT: control target
= control target key end

     0   :  { %s1740_s18 = smov 0   ;;  %s1987_s0 = inlined_call_operand.vmem [shape: f32[2,8,96], index: 0, kind: input, shape index: {}]   ;;  %s1988_s1 = inlined_call_operand.vmem [shape: f32[8,32], index: 1, kind: input, shape index: {}]   ;;  %s1989_s2 = inlined_call_operand.vmem [shape: f32[4,8], index: 2, kind: input, shape index: {}]   ;;  %s1990_s3 = inlined_call_operand.vmem [shape: f32[4,8], index: 3, kind: input, shape index: {}]   ;;  %s1991_s4 = inlined_call_operand.vmem [shape: s8[2,8,8], index: 4, kind: input, shape index: {}]   ;;  %s1992_s5 = inlined_call_operand.vmem [shape: f32[2,8,32], index: 5, kind: output, shape index: {}]  }
   0x1 LB: > { %s1512_s19 = sadd.s32 4294967295, %s1686_s18   ;;  %p1516_p0 = scmp.ge.s32.totalorder %s1686_s18, 1  ;;  %s1686_s18 = sphi %s1740_s18, %s15_s18  }
   0x2   : > { %p195_p1 = scmp.lt.s32.totalorder %s1686_s18, 3 }
   0x4   : > { %p196_p2 = pnand %p1516_p0, %p195_p1 }
   0x5   : > { %v1751_v0 = vld [vmem:[%s1988_s1] sm:$0xff] (!%p196_p2)  ;;  %vm254_vm0 = vcmask (!%p196_p2), 64512   ;;  %p225_p3 = scmp.lt.s32.totalorder (!%p196_p2), %s1512_s19, 1  ;;  %v1688_v1 = vmov (!%p196_p2), 0.0   ;;  %vm1689_vm1 = vmmov (!%p196_p2), 0   ;;  %s1690_s28 = smov (!%p196_p2), 120   ;;  %v331_v10 = vlaneseq (!%p196_p2) }
   0x6   : > { %199 = sbr.rel (%p196_p2) target bundleno = 2934 (0xb76), region = 40  ;;  %1574 = vmatprep.subr.mxu0 (!%p196_p2), %v1688_v1  ;;  %1576 = vmatprep.mubr.msk.f32.mxu0 (!%p196_p2), %vm1689_vm1, %v1688_v1  ;;  %v1521_v2 = vld [vmem:[%s1990_s3] ss:$0 sm:$0xff] (!%p196_p2)  ;;  %s1691_s6 = smov (!%p196_p2), 1   ;;  %vm341_vm2 = vcmask (!%p196_p2), 7168   ;;  %vm355_vm4 = vcmask (!%p196_p2), 15360  }
   0x7   : > { %1575 = vmatpush3.xpose.msk.msra.mxu0 (!%p196_p2), %vm254_vm0, %v1751_v0  ;;  %1579 = vmatprep.subr.mxu1 (!%p196_p2), %v1688_v1  ;;  %v1520_v6 = vld [vmem:[%s1989_s2] ss:$0 sm:$0xff] (!%p196_p2)  ;;  %s1692_s7 = smov (!%p196_p2), 121   ;;  %v332_v11 = vshrl.u32 (!%p196_p2), %v331_v10, 7  ;;  %s1693_s8 = smov (!%p196_p2), 2   ;;  %vm370_vm6 = vcmask (!%p196_p2), 31744  }
   0x8   : > { %1581 = vmatprep.mubr.msk.f32.mxu1 (!%p196_p2), %vm1689_vm1, %v1688_v1  ;;  %1584 = vmatprep.subr.mxu0 (!%p196_p2), %v1688_v1  ;;  %s1694_s9 = smov (!%p196_p2), 122   ;;  %v1528_v19 = vld [vmem:[%s1990_s3 + $0x1] ss:$0 sm:$0xff] (!%p196_p2)  ;;  %s1695_s12 = smov (!%p196_p2), 24   ;;  %vm1441_vm9 = vcmask (!%p196_p2), 130048   ;;  %vm1443_vm10 = vcmask (!%p196_p2), 195584  }
   0x9   : > { %v333_v12 = vadd.s32 (!%p196_p2), 1, %v332_v11  ;;  %s1696_s13 = smov (!%p196_p2), 4   ;;  %s1697_s14 = smov (!%p196_p2), 124   ;;  %v1527_v30 = vld [vmem:[%s1989_s2 + $0x1] ss:$0 sm:$0xff] (!%p196_p2)  ;;  %vm1445_vm11 = vcmask (!%p196_p2), 261120  }
   0xa   : > { %s1698_s15 = smov (!%p196_p2), 104   ;;  %s1699_s25 = smov (!%p196_p2), 112   ;;  %v1534_v11 = vld [vmem:[%s1989_s2 + $0x2] ss:$0 sm:$0xff] (!%p196_p2) }
   0xb   : > { %v343_v13 = vand.u32 (!%p196_p2), 1, %v333_v12  ;;  %v357_v20 = vshra.s32 (!%p196_p2), %v333_v12, 1  ;;  %v372_v31 = vshra.s32 (!%p196_p2), %v333_v12, 2  ;;  %s1700_s26 = smov (!%p196_p2), 96   ;;  %s1701_s29 = smov (!%p196_p2), 48  }
   0xc   : > { %s1702_s30 = smov (!%p196_p2), 80   ;;  %s1703_s16 = smov (!%p196_p2), 88  }
   0xd   : > { %s1996_s19 = smov (!%p225_p3, %s1512_s19), 1  ;;  %vm1792_vm3 = vcmp.eq.s32.totalorder %v343_v13, 1  ;;  %v1805_v23 = vand.u32 1, %v357_v20  ;;  %v1825_v33 = vand.u32 1, %v372_v31  ;;  %s1704_s17 = smov 72  }
   0xe   : > { %s1517_s22 = sshll.u32 %s1996_s19, 3  ;;  %s1518_s20 = sshll.u32 %s1996_s19, 1 }
   0xf   : > { %s228_s27 = scalar_lea.vmem %s1987_s0, %s1517_s22  ;;  %vm359_vm5 = vcmp.eq.s32.totalorder %v1805_v23, 1  ;;  %s232_s24 = scalar_lea.vmem %s1991_s4, %s1518_s20  ;;  %vm374_vm7 = vcmp.eq.s32.totalorder %v1825_v33, 1 }
  0x10   : > { %v1773_v3 = vld [vmem:[%s228_s27] sm:$0xff]  ;;  %s1705_s23 = smov 56  }
  0x11   : > { %v253_v4 = vadd.f32 %v1521_v2, %v1773_v3  ;;  %379 = vrot.lane.b32.xlu0 %v1773_v3, %s1690_s28  ;;  %v248_v7 = vadd.f32 %v1520_v6, %v1773_v3  ;;  %v238_v32 = vld [vmem:[%s232_s24] sm:$0x3] }
  0x12   : > { %v239_v34 = vunpack.c.0.s8 %v238_v32 }
  0x13   : > { %1577 = vmatmul.mubr.msk.f32.vlgmr.msra.gmra.mrb[0].mxu0 %vm254_vm0, %v253_v4  ;;  %v1535_v4 = vld [vmem:[%s1990_s3 + $0x2] ss:$0 sm:$0xff] }
  0x14   : > { %1586 = vmatprep.mubr.msk.f32.mxu0 %vm1689_vm1, %v1688_v1  ;;  %v1828_v37 = vcvt.s32.f32 %v239_v34 }
  0x16   : > { %vm457_vm8 = vcmp.gt.f32.partialorder %v1828_v37, 0.0 }
  0x83   : > { %v380_v5 = vpop.permute.xlu0 %379 }
  0x84   : > { %1580 = vmatpush3.xpose.msk.msra.mxu1 %vm254_vm0, %v380_v5 }
  0x85   : > { %1589 = vmatprep.subr.mxu1 %v1688_v1 }
  0x87   : > { %1582 = vmatmul.mubr.msk.f32.vlgmr.msra.gmra.mrb[0].mxu1 %vm254_vm0, %v248_v7 }
  0x88   : > { %1591 = vmatprep.mubr.msk.f32.mxu1 %vm1689_vm1, %v1688_v1 }
  0xe6   : > { %v327_v8 = vpop.f32.mrb[0].mxu0 }
  0xe7   : > { %338 = vrot.lane.b32.xlu1 %v327_v8, %s1691_s6  ;;  %335 = vrot.lane.b32.xlu0 %v327_v8, %s1692_s7  ;;  %v1578_v9 = vpop.f32.mrb[1].mxu0 }
 0x159   : > { %v339_v15 = vpop.permute.xlu1 %338  ;;  %v336_v16 = vpop.permute.xlu0 %335 }
 0x15a   : > { %v342_v17 = vsel %vm341_vm2, %v336_v16, %v339_v15  ;;  %v452_v21 = vpop.f32.mrb[0].mxu1 }
 0x15b   : > { %v347_v18 = vsel %vm1792_vm3, %v342_v17, %v327_v8  ;;  %v1583_v22 = vpop.f32.mrb[1].mxu1 }
 0x15c   : > { %352 = vrot.lane.b32.xlu0 %v347_v18, %s1693_s8  ;;  %349 = vrot.lane.b32.xlu1 %v347_v18, %s1694_s9 }
 0x160   : > { %562 = vrot.lane.b32.xlu1 %v1528_v19, %s1695_s12 }
 0x1ce   : > { %v353_v24 = vpop.permute.xlu0 %352  ;;  %v350_v25 = vpop.permute.xlu1 %349 }
 0x1cf   : > { %v356_v26 = vsel %vm355_vm4, %v350_v25, %v353_v24 }
 0x1d0   : > { %v362_v27 = vsel %vm359_vm5, %v356_v26, %v347_v18 }
 0x1d1   : > { %367 = vrot.lane.b32.xlu1 %v362_v27, %s1696_s13  ;;  %364 = vrot.lane.b32.xlu0 %v362_v27, %s1697_s14 }
 0x1d2   : > { %v563_v28 = vpop.permute.xlu1 %562 }
 0x1d3   : > { %v565_v29 = vadd.f32 %v563_v28, %v1773_v3 }
 0x1d5   : > { %569 = vrot.lane.b32.xlu0 %v1751_v0, %s1690_s28  ;;  %567 = vrot.lane.b32.xlu1 %v565_v29, %s1698_s15 }
 0x1d9   : > { %553 = vrot.lane.b32.xlu1 %v1527_v30, %s1695_s12 }
 0x243   : > { %v365_v35 = vpop.permute.xlu0 %364  ;;  %v368_v36 = vpop.permute.xlu1 %367 }
 0x244   : > { %v371_v38 = vsel %vm370_vm6, %v365_v35, %v368_v36 }
 0x245   : > { %v377_v39 = vsel %vm374_vm7, %v371_v38, %v362_v27 }
 0x246   : > { %v453_v40 = vadd.f32 %v452_v21, %v377_v39 }
 0x247   : > { %v570_v41 = vpop.permute.xlu0 %569  ;;  %v568_v43 = vpop.permute.xlu1 %567 }
 0x248   : > { %v456_v42 = vmul.f32 0.35355338, %v453_v40  ;;  %1590 = vmatpush3.xpose.msk.msra.mxu1 %vm254_vm0, %v570_v41 }
 0x249   : > { %1599 = vmatprep.subr.mxu1 %v1688_v1 }
 0x24a   : > { %v458_v44 = vsel %vm457_vm8, -1e+30, %v456_v42 }
 0x24b   : > { %1592 = vmatmul.mubr.msk.f32.vlgmr.msra.gmra.mrb[2].mxu1 %vm254_vm0, %v568_v43  ;;  %v459_v45 = vsel %vm254_vm0, %v458_v44, -inf  ;;  %v554_v46 = vpop.permute.xlu1 %553 }
 0x24c   : > { %460 = vmax.xlane.f32.xlu0 %v459_v45  ;;  %1601 = vmatprep.mubr.msk.f32.mxu1 %vm1689_vm1, %v1688_v1  ;;  %v556_v47 = vadd.f32 %v554_v46, %v1773_v3 }
 0x262   : > { %470 = vrot.lane.b32.xlu0 %v1773_v3, %s1699_s25 }
 0x266   : > { %673 = vrot.lane.b32.xlu0 %v556_v47, %s1698_s15 }
 0x2d9   : > { %v461_v48 = vpop.xlane.xlu0 %460 }
 0x2da   : > { %v462_v49 = vsub.f32 %v458_v44, %v461_v48 }
 0x2dc   : > { %v463_v50 = vmul.f32 1.442695, %v462_v49  ;;  %v1542_v49 = vld [vmem:[%s1990_s3 + $0x3] ss:$0 sm:$0xff] }
 0x2dd   : > { %v471_v53 = vpop.permute.xlu0 %470 }
 0x2de   : > { %1664 = vpow2.f32 %v463_v50  ;;  %1585 = vmatpush3.msra.mxu0 %v471_v53 }
 0x2df   : > { %1594 = vmatprep.subr.mxu0 %v1688_v1 }
 0x2e1   : > { %v674_v60 = vpop.permute.xlu0 %673 }
 0x2e8   : > { %v1665_v51 = vpop.eup %1664 }
 0x2e9   : > { %v465_v52 = vsel %vm254_vm0, %v1665_v51, 0.0 }
 0x2ea   : > { %466 = vadd.xlane.f32.xlu1 %v465_v52 }
 0x2fb   : > { %675 = vrot.lane.b32.xlu1 %v1773_v3, %s1700_s26 }
 0x31e   : > { %v641_v54 = vpop.f32.mrb[2].mxu1 }
 0x31f   : > { %649 = vrot.lane.b32.xlu1 %v641_v54, %s1691_s6  ;;  %646 = vrot.lane.b32.xlu0 %v641_v54, %s1692_s7  ;;  %v1593_v55 = vpop.f32.mrb[3].mxu1 }
 0x377   : > { %v467_v56 = vpop.xlane.xlu1 %466 }
 0x378   : > { %1666 = vrcp.f32 %v467_v56  ;;  %v1541_v56 = vld [vmem:[%s1989_s2 + $0x3] ss:$0 sm:$0xff] }
 0x37b   : > { %v676_v59 = vpop.permute.xlu1 %675 }
 0x382   : > { %v1667_v57 = vpop.eup %1666 }
 0x383   : > { %v469_v58 = vmul.f32 %v1667_v57, %v1665_v51 }
 0x385   : > { %1587 = vmatmul.mubr.msk.f32.vlgmr.msra.gmra.mrb[2].mxu0 %vm254_vm0, %v469_v58 }
 0x386   : > { %1595 = vmatpush3.xpose.msk.msra.mxu0 %vm254_vm0, %v676_v59  ;;  %1596 = vmatprep.mubr.msk.f32.mxu0 %vm1689_vm1, %v1688_v1 }
 0x387   : > { %1604 = vmatprep.subr.mxu0 %v1688_v1 }
 0x389   : > { %1597 = vmatmul.mubr.msk.f32.vlgmr.msra.gmra.mrb[4].mxu0 %vm254_vm0, %v674_v60 }
 0x38a   : > { %1606 = vmatprep.mubr.msk.f32.mxu0 %vm1689_vm1, %v1688_v1 }
 0x391   : > { %v650_v61 = vpop.permute.xlu1 %649  ;;  %v647_v62 = vpop.permute.xlu0 %646 }
 0x392   : > { %v652_v63 = vsel %vm341_vm2, %v647_v62, %v650_v61 }
 0x393   : > { %v653_v2 = vsel %vm1792_vm3, %v652_v63, %v641_v54 }
 0x394   : > { %658 = vrot.lane.b32.xlu1 %v653_v2, %s1693_s8  ;;  %655 = vrot.lane.b32.xlu0 %v653_v2, %s1694_s9 }
 0x398   : > { %856 = vrot.lane.b32.xlu0 %v1535_v4, %s1701_s29 }
 0x406   : > { %v659_v5 = vpop.permute.xlu1 %658  ;;  %v656_v6 = vpop.permute.xlu0 %655 }
 0x407   : > { %v661_v7 = vsel %vm355_vm4, %v656_v6, %v659_v5 }
 0x408   : > { %v662_v8 = vsel %vm359_vm5, %v661_v7, %v653_v2 }
 0x409   : > { %667 = vrot.lane.b32.xlu0 %v662_v8, %s1696_s13  ;;  %664 = vrot.lane.b32.xlu1 %v662_v8, %s1697_s14 }
 0x40a   : > { %v857_v9 = vpop.permute.xlu0 %856 }
 0x40b   : > { %v859_v10 = vadd.f32 %v857_v9, %v1773_v3 }
 0x40d   : > { %863 = vrot.lane.b32.xlu1 %v1751_v0, %s1699_s25  ;;  %861 = vrot.lane.b32.xlu0 %v859_v10, %s1702_s30 }
 0x411   : > { %847 = vrot.lane.b32.xlu0 %v1534_v11, %s1701_s29 }
 0x458   : > { %v1880_v12 = vpop.f32.mrb[2].mxu0 }
 0x459   : > { %v1588_v13 = vpop.f32.mrb[3].mxu0 }
 0x45c   : > { %v747_v15 = vpop.f32.mrb[4].mxu0 }
 0x45d   : > { %v1598_v16 = vpop.f32.mrb[5].mxu0 }
 0x47b   : > { %v665_v17 = vpop.permute.xlu1 %664  ;;  %v668_v18 = vpop.permute.xlu0 %667 }
 0x47c   : > { %v670_v19 = vsel %vm370_vm6, %v665_v17, %v668_v18 }
 0x47d   : > { %v671_v20 = vsel %vm374_vm7, %v670_v19, %v662_v8 }
 0x47e   : > { %v748_v21 = vadd.f32 %v747_v15, %v671_v20 }
 0x47f   : > { %v864_v22 = vpop.permute.xlu1 %863  ;;  %v862_v24 = vpop.permute.xlu0 %861 }
 0x480   : > { %1605 = vmatpush3.xpose.msk.msra.mxu0 %vm254_vm0, %v864_v22  ;;  %v751_v25 = vmul.f32 0.35355338, %v748_v21 }
 0x481   : > { %1614 = vmatprep.subr.mxu0 %v1688_v1 }
 0x482   : > { %v752_v26 = vsel %vm457_vm8, -1e+30, %v751_v25 }
 0x483   : > { %1607 = vmatmul.mubr.msk.f32.vlgmr.msra.gmra.mrb[6].mxu0 %vm254_vm0, %v862_v24  ;;  %v753_v27 = vsel %vm254_vm0, %v752_v26, -inf  ;;  %v848_v28 = vpop.permute.xlu0 %847 }
 0x484   : > { %754 = vmax.xlane.f32.xlu1 %v753_v27  ;;  %1616 = vmatprep.mubr.msk.f32.mxu0 %vm1689_vm1, %v1688_v1  ;;  %v850_v29 = vadd.f32 %v848_v28, %v1773_v3 }
 0x495   : > { %764 = vrot.lane.b32.xlu1 %v1773_v3, %s1703_s16 }
 0x499   : > { %967 = vrot.lane.b32.xlu1 %v850_v29, %s1702_s30 }
 0x511   : > { %v755_v30 = vpop.xlane.xlu1 %754 }
 0x512   : > { %v756_v31 = vsub.f32 %v752_v26, %v755_v30 }
 0x514   : > { %v757_v32 = vmul.f32 1.442695, %v756_v31 }
 0x515   : > { %v765_v36 = vpop.permute.xlu1 %764 }
 0x516   : > { %1668 = vpow2.f32 %v757_v32  ;;  %1600 = vmatpush3.msra.mxu1 %v765_v36 }
 0x517   : > { %1609 = vmatprep.subr.mxu1 %v1688_v1 }
 0x519   : > { %v968_v44 = vpop.permute.xlu1 %967 }
 0x520   : > { %v1669_v34 = vpop.eup %1668 }
 0x521   : > { %v759_v35 = vsel %vm254_vm0, %v1669_v34, 0.0 }
 0x522   : > { %760 = vadd.xlane.f32.xlu0 %v759_v35 }
 0x538   : > { %969 = vrot.lane.b32.xlu0 %v1773_v3, %s1704_s17 }
 0x556   : > { %v935_v38 = vpop.f32.mrb[6].mxu0 }
 0x557   : > { %943 = vrot.lane.b32.xlu0 %v935_v38, %s1691_s6  ;;  %v1608_v39 = vpop.f32.mrb[7].mxu0  ;;  %940 = vrot.lane.b32.xlu1 %v935_v38, %s1692_s7 }
 0x5af   : > { %v761_v40 = vpop.xlane.xlu0 %760 }
 0x5b0   : > { %1670 = vrcp.f32 %v761_v40 }
 0x5b3   : > { %v970_v43 = vpop.permute.xlu0 %969 }
 0x5ba   : > { %v1671_v41 = vpop.eup %1670 }
 0x5bb   : > { %v763_v42 = vmul.f32 %v1671_v41, %v1669_v34 }
 0x5bd   : > { %1602 = vmatmul.mubr.msk.f32.vlgmr.msra.gmra.mrb[4].mxu1 %vm254_vm0, %v763_v42 }
 0x5be   : > { %1610 = vmatpush3.xpose.msk.msra.mxu1 %vm254_vm0, %v970_v43  ;;  %1611 = vmatprep.mubr.msk.f32.mxu1 %vm1689_vm1, %v1688_v1 }
 0x5bf   : > { %1619 = vmatprep.subr.mxu1 %v1688_v1 }
 0x5c1   : > { %1612 = vmatmul.mubr.msk.f32.vlgmr.msra.gmra.mrb[6].mxu1 %vm254_vm0, %v968_v44 }
 0x5c2   : > { %1621 = vmatprep.mubr.msk.f32.mxu1 %vm1689_vm1, %v1688_v1 }
 0x5c9   : > { %v941_v45 = vpop.permute.xlu1 %940  ;;  %v944_v46 = vpop.permute.xlu0 %943 }
 0x5ca   : > { %v946_v47 = vsel %vm341_vm2, %v941_v45, %v944_v46 }
 0x5cb   : > { %v947_v48 = vsel %vm1792_vm3, %v946_v47, %v935_v38 }
 0x5cc   : > { %952 = vrot.lane.b32.xlu0 %v947_v48, %s1693_s8  ;;  %949 = vrot.lane.b32.xlu1 %v947_v48, %s1694_s9 }
 0x5d0   : > { %1150 = vrot.lane.b32.xlu1 %v1542_v49, %s1704_s17 }
 0x63e   : > { %v953_v50 = vpop.permute.xlu0 %952  ;;  %v950_v51 = vpop.permute.xlu1 %949 }
 0x63f   : > { %v955_v52 = vsel %vm355_vm4, %v950_v51, %v953_v50 }
 0x640   : > { %v956_v53 = vsel %vm359_vm5, %v955_v52, %v947_v48 }
 0x641   : > { %961 = vrot.lane.b32.xlu1 %v956_v53, %s1696_s13  ;;  %958 = vrot.lane.b32.xlu0 %v956_v53, %s1697_s14 }
 0x642   : > { %v1151_v54 = vpop.permute.xlu1 %1150 }
 0x643   : > { %v1153_v55 = vadd.f32 %v1151_v54, %v1773_v3 }
 0x645   : > { %1157 = vrot.lane.b32.xlu0 %v1751_v0, %s1698_s15  ;;  %1155 = vrot.lane.b32.xlu1 %v1153_v55, %s1705_s23  ;;  %s1706_s15 = smov 64  }
 0x649   : > { %1141 = vrot.lane.b32.xlu1 %v1541_v56, %s1704_s17 }
 0x690   : > { %v1930_v57 = vpop.f32.mrb[4].mxu1 }
 0x691   : > { %v1603_v58 = vpop.f32.mrb[5].mxu1 }
 0x694   : > { %v1041_v59 = vpop.f32.mrb[6].mxu1 }
 0x695   : > { %v1613_v60 = vpop.f32.mrb[7].mxu1 }
 0x6b3   : > { %v959_v61 = vpop.permute.xlu0 %958  ;;  %v962_v62 = vpop.permute.xlu1 %961 }
 0x6b4   : > { %v964_v63 = vsel %vm370_vm6, %v959_v61, %v962_v62 }
 0x6b5   : > { %v965_v0 = vsel %vm374_vm7, %v964_v63, %v956_v53 }
 0x6b6   : > { %v1042_v2 = vadd.f32 %v1041_v59, %v965_v0 }
 0x6b7   : > { %v1158_v4 = vpop.permute.xlu0 %1157  ;;  %v1156_v5 = vpop.permute.xlu1 %1155 }
 0x6b8   : > { %1620 = vmatpush3.xpose.msk.msra.mxu1 %vm254_vm0, %v1158_v4  ;;  %v1045_v6 = vmul.f32 0.35355338, %v1042_v2 }
 0x6b9   : > { %1629 = vmatprep.subr.mxu1 %v1688_v1 }
 0x6ba   : > { %v1046_v7 = vsel %vm457_vm8, -1e+30, %v1045_v6 }
 0x6bb   : > { %1622 = vmatmul.mubr.msk.f32.vlgmr.msra.gmra.mrb[8].mxu1 %vm254_vm0, %v1156_v5  ;;  %v1047_v8 = vsel %vm254_vm0, %v1046_v7, -inf  ;;  %v1142_v9 = vpop.permute.xlu1 %1141 }
 0x6bc   : > { %1048 = vmax.xlane.f32.xlu0 %v1047_v8  ;;  %1631 = vmatprep.mubr.msk.f32.mxu1 %vm1689_vm1, %v1688_v1  ;;  %v1144_v10 = vadd.f32 %v1142_v9, %v1773_v3 }
 0x6d2   : > { %1058 = vrot.lane.b32.xlu0 %v1773_v3, %s1706_s15 }
 0x6d6   : > { %1261 = vrot.lane.b32.xlu0 %v1144_v10, %s1705_s23 }
 0x749   : > { %v1049_v11 = vpop.xlane.xlu0 %1048 }
 0x74a   : > { %v1050_v13 = vsub.f32 %v1046_v7, %v1049_v11 }
 0x74c   : > { %v1051_v15 = vmul.f32 1.442695, %v1050_v13 }
 0x74d   : > { %v1059_v18 = vpop.permute.xlu0 %1058 }
 0x74e   : > { %1672 = vpow2.f32 %v1051_v15  ;;  %1615 = vmatpush3.msra.mxu0 %v1059_v18 }
 0x74f   : > { %1624 = vmatprep.subr.mxu0 %v1688_v1 }
 0x751   : > { %v1262_v26 = vpop.permute.xlu0 %1261 }
 0x758   : > { %v1673_v16 = vpop.eup %1672 }
 0x759   : > { %v1053_v17 = vsel %vm254_vm0, %v1673_v16, 0.0 }
 0x75a   : > { %1054 = vadd.xlane.f32.xlu1 %v1053_v17 }
 0x76b   : > { %1263 = vrot.lane.b32.xlu1 %v1773_v3, %s1701_s29 }
 0x78e   : > { %v1229_v19 = vpop.f32.mrb[8].mxu1 }
 0x78f   : > { %1237 = vrot.lane.b32.xlu1 %v1229_v19, %s1691_s6  ;;  %1234 = vrot.lane.b32.xlu0 %v1229_v19, %s1692_s7  ;;  %v1623_v20 = vpop.f32.mrb[9].mxu1  ;;  %s1707_s6 = smov 40   ;;  %s1708_s7 = smov 16  }
 0x7e7   : > { %v1055_v21 = vpop.xlane.xlu1 %1054 }
 0x7e8   : > { %1674 = vrcp.f32 %v1055_v21 }
 0x7eb   : > { %v1264_v25 = vpop.permute.xlu1 %1263 }
 0x7f2   : > { %v1675_v22 = vpop.eup %1674 }
 0x7f3   : > { %v1057_v24 = vmul.f32 %v1675_v22, %v1673_v16 }
 0x7f5   : > { %1617 = vmatmul.mubr.msk.f32.vlgmr.msra.gmra.mrb[8].mxu0 %vm254_vm0, %v1057_v24 }
 0x7f6   : > { %1625 = vmatpush3.xpose.msk.msra.mxu0 %vm254_vm0, %v1264_v25  ;;  %1626 = vmatprep.mubr.msk.f32.mxu0 %vm1689_vm1, %v1688_v1 }
 0x7f9   : > { %1627 = vmatmul.mubr.msk.f32.vlgmr.msra.gmra.mrb[10].mxu0 %vm254_vm0, %v1262_v26 }
 0x801   : > { %v1238_v27 = vpop.permute.xlu1 %1237  ;;  %v1235_v28 = vpop.permute.xlu0 %1234 }
 0x802   : > { %v1240_v29 = vsel %vm341_vm2, %v1235_v28, %v1238_v27 }
 0x803   : > { %v1241_v30 = vsel %vm1792_vm3, %v1240_v29, %v1229_v19 }
 0x804   : > { %1246 = vrot.lane.b32.xlu1 %v1241_v30, %s1693_s8  ;;  %1243 = vrot.lane.b32.xlu0 %v1241_v30, %s1694_s9  ;;  %s1709_s8 = smov 8  }
 0x876   : > { %v1247_v31 = vpop.permute.xlu1 %1246  ;;  %v1244_v32 = vpop.permute.xlu0 %1243 }
 0x877   : > { %v1249_v34 = vsel %vm355_vm4, %v1244_v32, %v1247_v31 }
 0x878   : > { %v1250_v1 = vsel %vm359_vm5, %v1249_v34, %v1241_v30 }
 0x879   : > { %1255 = vrot.lane.b32.xlu1 %v1250_v1, %s1696_s13  ;;  %1252 = vrot.lane.b32.xlu0 %v1250_v1, %s1697_s14  ;;  %s236_s14 = scalar_lea.vmem %s1992_s5, %s1517_s22 }
 0x8c8   : > { %v1130_v35 = vpop.f32.mrb[8].mxu0 }
 0x8c9   : > { %v1618_v36 = vpop.f32.mrb[9].mxu0 }
 0x8cc   : > { %v1335_v38 = vpop.f32.mrb[10].mxu0 }
 0x8cd   : > { %v1628_v14 = vpop.f32.mrb[11].mxu0 }
 0x8eb   : > { %v1256_v39 = vpop.permute.xlu1 %1255  ;;  %v1253_v40 = vpop.permute.xlu0 %1252 }
 0x8ec   : > { %v1258_v41 = vsel %vm370_vm6, %v1253_v40, %v1256_v39 }
 0x8ed   : > { %v1259_v42 = vsel %vm374_vm7, %v1258_v41, %v1250_v1 }
 0x8ee   : > { %v1336_v43 = vadd.f32 %v1335_v38, %v1259_v42 }
 0x8f0   : > { %v1339_v44 = vmul.f32 0.35355338, %v1336_v43 }
 0x8f2   : > { %v1340_v23 = vsel %vm457_vm8, -1e+30, %v1339_v44 }
 0x8f3   : > { %v1341_v45 = vsel %vm254_vm0, %v1340_v23, -inf }
 0x8f4   : > { %1342 = vmax.xlane.f32.xlu0 %v1341_v45 }
 0x90a   : > { %1352 = vrot.lane.b32.xlu0 %v1773_v3, %s1707_s6 }
 0x90e   : > { %1433 = vrot.lane.b32.xlu0 %v1130_v35, %s1708_s7 }
 0x981   : > { %v1343_v46 = vpop.xlane.xlu0 %1342 }
 0x982   : > { %v1344_v47 = vsub.f32 %v1340_v23, %v1343_v46 }
 0x984   : > { %v1345_v48 = vmul.f32 1.442695, %v1344_v47 }
 0x985   : > { %v1353_v49 = vpop.permute.xlu0 %1352 }
 0x986   : > { %1676 = vpow2.f32 %v1345_v48  ;;  %1630 = vmatpush3.msra.mxu1 %v1353_v49 }
 0x989   : > { %v1434_v56 = vpop.permute.xlu0 %1433 }
 0x990   : > { %v1677_v33 = vpop.eup %1676 }
 0x991   : > { %v1347_v50 = vsel %vm254_vm0, %v1677_v33, 0.0 }
 0x992   : > { %1348 = vadd.xlane.f32.xlu1 %v1347_v50 }
 0x9a3   : > { %1429 = vrot.lane.b32.xlu1 %v1930_v57, %s1709_s8 }
 0xa1f   : > { %v1349_v37 = vpop.xlane.xlu1 %1348 }
 0xa20   : > { %1678 = vrcp.f32 %v1349_v37 }
 0xa23   : > { %v1430_v54 = vpop.permute.xlu1 %1429 }
 0xa24   : > { %v1440_v55 = vsel %vm254_vm0, %v1880_v12, %v1430_v54 }
 0xa25   : > { %v1442_v57 = vsel %vm1441_vm9, %v1440_v55, %v1434_v56 }
 0xa2a   : > { %v1679_v51 = vpop.eup %1678 }
 0xa2b   : > { %v1351_v3 = vmul.f32 %v1679_v51, %v1677_v33 }
 0xa2d   : > { %1632 = vmatmul.mubr.msk.f32.vlgmr.msra.gmra.mrb[10].mxu1 %vm254_vm0, %v1351_v3 }
 0xb00   : > { %v1424_v52 = vpop.f32.mrb[10].mxu1 }
 0xb01   : > { %1437 = vrot.lane.b32.xlu1 %v1424_v52, %s1695_s12  ;;  %v1633_v53 = vpop.f32.mrb[11].mxu1 }
 0xb73   : > { %v1438_v58 = vpop.permute.xlu1 %1437 }
 0xb74   : > { %v1444_v59 = vsel %vm1443_vm10, %v1442_v57, %v1438_v58 }
 0xb75   : > { %1446 = vst.msk [vmem:[%s236_s14] sm:$0xff] %vm1445_vm11, %v1444_v59 }
 0xb76 PF: > { %s15_s18 = sadd.s32 1, %s1686_s18  }
 0xb77   : > { %p12_p4 = scmp.ge.s32.totalorder %s15_s18, 4  }
 0xb79   :  { %14 = sbr.rel (!%p12_p4) target bundleno = 1 (0x1), region = 73 }

// kernel: decoder_layer_forward.14
= control target key start
LH: loop header
LB: loop body
LE: loop exit
PB: predicated region body
PF: predicated region fallthrough
CT: control target
= control target key end

     0   :  { %vm35_vm0 = vcmask 261120   ;;  %vm133_vm1 = vcmask 523264   ;;  %s254_s1 = inlined_call_operand.vmem [shape: f32[1,32], index: 1, kind: input, shape index: {}]   ;;  %s255_s2 = inlined_call_operand.vmem [shape: f32[1,32], index: 2, kind: input, shape index: {}]   ;;  %s256_s3 = inlined_call_operand.vmem [shape: f32[32,64], index: 3, kind: input, shape index: {}]   ;;  %s257_s0 = inlined_call_operand.vmem [shape: f32[32,32], index: 0, kind: input, shape index: {}]   ;;  %s258_s4 = inlined_call_operand.vmem [shape: f32[1,64], index: 4, kind: input, shape index: {}]   ;;  %s259_s5 = inlined_call_operand.vmem [shape: f32[32,64], index: 5, kind: output, shape index: {}]  }
   0x1   :  { %v24_v0 = vld [vmem:[%s256_s3] sm:$0xff]  ;;  %v25_v1 = vld [vmem:[%s256_s3 + $0x8] sm:$0xff]  ;;  %v26_v2 = vld [vmem:[%s256_s3 + $0x10] sm:$0xff] }
   0x2   :  { %v169_v3 = vpack.c.bf16 %v25_v1, %v24_v0  ;;  %v27_v4 = vld [vmem:[%s256_s3 + $0x18] sm:$0xff]  ;;  %v20_v5 = vld [vmem:[%s257_s0] sm:$0xff]  ;;  %v22_v6 = vld [vmem:[%s257_s0 + $0x10] sm:$0xff] }
   0x3   :  { %v173_v7 = vpack.c.bf16 %v27_v4, %v26_v2  ;;  %163 = vmatprep.mubr.msk.f32.mxu0 %vm35_vm0, %v20_v5  ;;  %166 = vmatprep.mubr.msk.f32.mxu1 %vm35_vm0, %v22_v6  ;;  %v21_v8 = vld [vmem:[%s257_s0 + $0x8] sm:$0xff]  ;;  %v23_v9 = vld [vmem:[%s257_s0 + $0x18] sm:$0xff]  ;;  %v142_v10 = vld [vmem:[%s258_s4] ss:$0 sm:$0xff] }
   0x4   :  { %170 = vmatprep.subr.bf16.mxu0 %v169_v3  ;;  %177 = vmatprep.subr.bf16.mxu1 %v169_v3 }
   0x5   :  { %172 = vmatpush3.bf16.msra.mxu0 %v169_v3  ;;  %179 = vmatpush3.bf16.msra.mxu1 %v169_v3 }
   0x6   :  { %174 = vmatprep.subr.bf16.mxu0 %v173_v7  ;;  %178 = vmatprep.subr.bf16.mxu1 %v173_v7 }
   0x9   :  { %176 = vmatpush3.bf16.msra.mxu0 %v173_v7  ;;  %180 = vmatpush3.bf16.msra.mxu1 %v173_v7 }
   0xc   :  { %164 = vmatmul.mubr.msk.f32.vlgmr.msra.gmra.mrb[0].mxu0 %vm35_vm0, %v21_v8  ;;  %167 = vmatmul.mubr.msk.f32.vlgmr.msra.gmra.mrb[0].mxu1 %vm35_vm0, %v23_v9 }
  0xdf   :  { %v165_v11 = vpop.f32.mrb[0].mxu0  ;;  %v168_v12 = vpop.f32.mrb[0].mxu1 }
  0xe0   :  { %v120_v13 = vadd.f32 %v165_v11, %v142_v10  ;;  %v130_v14 = vadd.f32 %v168_v12, %v142_v10  ;;  %v114_v15 = vpop.f32.mrb[1].mxu0  ;;  %v124_v16 = vpop.f32.mrb[1].mxu1 }
  0xe1   :  { %v115_v17 = vadd.f32 %v142_v10, %v114_v15  ;;  %v125_v18 = vadd.f32 %v142_v10, %v124_v16 }
  0xe2   :  { %135 = vst.msk [vmem:[%s259_s5 + $0x8] sm:$0xff] %vm133_vm1, %v120_v13  ;;  %137 = vst.msk [vmem:[%s259_s5 + $0x18] sm:$0xff] %vm133_vm1, %v130_v14 }
  0xe3   :  { %134 = vst.msk [vmem:[%s259_s5] sm:$0xff] %vm133_vm1, %v115_v17  ;;  %136 = vst.msk [vmem:[%s259_s5 + $0x10] sm:$0xff] %vm133_vm1, %v125_v18 }

// kernel: decoder_layer_forward.13
= control target key start
LH: loop header
LB: loop body
LE: loop exit
PB: predicated region body
PF: predicated region fallthrough
CT: control target
= control target key end

     0   :  { %vm22_vm0 = vcmask 261120   ;;  %s271_s0 = inlined_call_operand.vmem [shape: f32[16,32], index: 0, kind: input, shape index: {}]   ;;  %s272_s3 = inlined_call_operand.vmem [shape: f32[32,32], index: 3, kind: input, shape index: {}]   ;;  %s273_s1 = inlined_call_operand.vmem [shape: f32[1,32], index: 1, kind: input, shape index: {}]   ;;  %s274_s2 = inlined_call_operand.vmem [shape: f32[1,32], index: 2, kind: input, shape index: {}]   ;;  %s275_s4 = inlined_call_operand.vmem [shape: f32[1,32], index: 4, kind: input, shape index: {}]   ;;  %s276_s5 = inlined_call_operand.vmem [shape: f32[16,32], index: 5, kind: output, shape index: {}]  }
   0x1   :  { %v20_v0 = vld [vmem:[%s271_s0] sm:$0xff]  ;;  %v21_v1 = vld [vmem:[%s271_s0 + $0x8] sm:$0xff]  ;;  %v70_v16 = vld [vmem:[%s272_s3 + $0x10] sm:$0xff] }
   0x2   :  { %v23_v2 = vsel %vm22_vm0, %v20_v0, 0.0  ;;  %v26_v3 = vsel %vm22_vm0, %v21_v1, 0.0  ;;  %v68_v14 = vld [vmem:[%s272_s3] sm:$0xff]  ;;  %v69_v15 = vld [vmem:[%s272_s3 + $0x8] sm:$0xff]  ;;  %v71_v18 = vld [vmem:[%s272_s3 + $0x18] sm:$0xff] }
   0x3   :  { %24 = vadd.xlane.f32.xlu0 %v23_v2  ;;  %v188_v17 = vpack.c.bf16 %v69_v15, %v68_v14  ;;  %v192_v19 = vpack.c.bf16 %v71_v18, %v70_v16  ;;  %v166_v27 = vld [vmem:[%s273_s1] ss:$0 sm:$0xff] }
   0x4   :  { %v167_v29 = vld [vmem:[%s274_s2] ss:$0 sm:$0xff] }
   0x5   :  { %189 = vmatprep.subr.bf16.mxu0 %v188_v17  ;;  %v168_v36 = vld [vmem:[%s275_s4] ss:$0 sm:$0xff] }
   0x6   :  { %191 = vmatpush3.bf16.msra.mxu0 %v188_v17 }
   0x7   :  { %27 = vadd.xlane.f32.xlu0 %v26_v3  ;;  %193 = vmatprep.subr.bf16.mxu0 %v192_v19 }
   0xa   :  { %195 = vmatpush3.bf16.msra.mxu0 %v192_v19 }
  0x90   :  { %v25_v4 = vpop.xlane.xlu0 %24 }
  0x91   :  { %v30_v5 = vmul.f32 0.03125, %v25_v4 }
  0x93   :  { %v32_v6 = vsub.f32 %v20_v0, %v30_v5 }
  0x94   :  { %v28_v7 = vpop.xlane.xlu0 %27 }
  0x95   :  { %v31_v8 = vmul.f32 0.03125, %v28_v7  ;;  %v34_v9 = vmul.f32 %v32_v6, %v32_v6 }
  0x97   :  { %v33_v10 = vsub.f32 %v21_v1, %v31_v8  ;;  %v36_v11 = vsel %vm22_vm0, %v34_v9, 0.0 }
  0x98   :  { %37 = vadd.xlane.f32.xlu1 %v36_v11 }
  0x99   :  { %v35_v12 = vmul.f32 %v33_v10, %v33_v10 }
  0x9b   :  { %v39_v13 = vsel %vm22_vm0, %v35_v12, 0.0 }
  0x9c   :  { %40 = vadd.xlane.f32.xlu1 %v39_v13 }
 0x125   :  { %v38_v20 = vpop.xlane.xlu1 %37 }
 0x126   :  { %v42_v21 = vmul.f32 0.03125, %v38_v20 }
 0x128   :  { %v44_v22 = vadd.f32 1e-05, %v42_v21 }
 0x129   :  { %v41_v23 = vpop.xlane.xlu1 %40 }
 0x12a   :  { %196 = vrsqrt.f32 %v44_v22  ;;  %v43_v24 = vmul.f32 0.03125, %v41_v23 }
 0x12c   :  { %v45_v25 = vadd.f32 1e-05, %v43_v24 }
 0x12e   :  { %198 = vrsqrt.f32 %v45_v25 }
 0x134   :  { %v197_v26 = vpop.eup %196 }
 0x135   :  { %v48_v28 = vmul.f32 %v197_v26, %v32_v6 }
 0x137   :  { %v57_v30 = vmul.f32 %v166_v27, %v48_v28 }
 0x138   :  { %v199_v31 = vpop.eup %198 }
 0x139   :  { %v49_v32 = vmul.f32 %v199_v31, %v33_v10  ;;  %v66_v33 = vadd.f32 %v167_v29, %v57_v30 }
 0x13b   :  { %v58_v34 = vmul.f32 %v166_v27, %v49_v32  ;;  %185 = vmatprep.mubr.msk.f32.mxu0 %vm22_vm0, %v66_v33 }
 0x13d   :  { %v67_v35 = vadd.f32 %v167_v29, %v58_v34 }
 0x13f   :  { %186 = vmatmul.mubr.msk.f32.vlgmr.msra.gmra.mrb[0].mxu0 %vm22_vm0, %v67_v35 }
 0x212   :  { %v187_v37 = vpop.f32.mrb[0].mxu0 }
 0x213   :  { %v157_v38 = vadd.f32 %v187_v37, %v168_v36  ;;  %v151_v39 = vpop.f32.mrb[1].mxu0 }
 0x214   :  { %v152_v40 = vadd.f32 %v168_v36, %v151_v39 }
 0x215   :  { %161 = vst.msk [vmem:[%s276_s5 + $0x8] sm:$0xff] %vm22_vm0, %v157_v38 }
 0x216   :  { %160 = vst.msk [vmem:[%s276_s5] sm:$0xff] %vm22_vm0, %v152_v40 }

// kernel: decoder_layer_forward.15
= control target key start
LH: loop header
LB: loop body
LE: loop exit
PB: predicated region body
PF: predicated region fallthrough
CT: control target
= control target key end

     0   :  { %10 = vsyncpa [#allocation3], 0  ;;  %s1682_s0 = inlined_call_operand.vmem [shape: f32[2,8,32], index: 0, kind: input, shape index: {}]   ;;  %s1683_s1 = inlined_call_operand.vmem [shape: f32[2,16,64], index: 1, kind: input, shape index: {}]   ;;  %s1684_s2 = inlined_call_operand.vmem [shape: s8[2,1,16], index: 2, kind: input, shape index: {}]   ;;  %s1685_s3 = inlined_call_operand.vmem [shape: f32[2,8,32], index: 3, kind: output, shape index: {0}]   ;;  %s1686_s4 = inlined_call_operand.hbm [shape: f32[2,4,8,16], index: 4, kind: output, shape index: {1}]  }
   0x1   :  { %12 = vsyncpa [#allocation3 + $0x1], 0  ;;  %s1452_s15 = smov 0   ;;  %s1454_s16 = smov 0  }
   0x2   :  { %s1456_s17 = smov 0   ;;  %s1458_s18 = smov 0  }
   0x3 LB: > { %s1473_s19 = sadd.s32 4294967295, %s1409_s18   ;;  %s1099_s20 = sadd.s32 4294967294, %s1409_s18   ;;  %s1409_s18 = sphi %s1458_s18, %s1694_s18   ;;  %s1405_s17 = sphi %s1456_s17, %s1693_s17   ;;  %s1401_s16 = sphi %s1454_s16, %s1692_s16   ;;  %s1397_s15 = sphi %s1452_s15, %s1691_s15  }
   0x4   : > { %s1477_s21 = sadd.s32 1, %s1409_s18   ;;  %s129_s22 = sadd.s32 1, %s1405_s17 }
   0x5   : > { %s126_s23 = ssub.s32 %s1409_s18, %s1477_s21  ;;  %p139_p0 = scmp.ne.s32.totalorder %s1405_s17, %s1401_s16 }
   0x6   : > { %p127_p1 = scmp.eq.s32.totalorder %s126_s23, 0  ;;  %p140_p2 = scmp.eq.s32.totalorder %s1473_s19, 1 }
   0x7   : > { %p145_p3 = scmp.ne.s32.totalorder %s1401_s16, %s1397_s15  ;;  %p146_p4 = scmp.eq.s32.totalorder %s1099_s20, 1 }
   0x8   : > { %s1488_s24 = scalar_select %p127_p1, %s1405_s17, %s129_s22  }
   0x9   : > { %p1490_p5 = por %p140_p2, %p139_p0  ;;  %p1494_p6 = por %p146_p4, %p145_p3 }
   0xa   : > { %p1102_p7 = scmp.ge.s32.totalorder %s1409_s18, 1  ;;  %p185_p8 = scmp.lt.s32.totalorder %s1409_s18, 3 }
   0xc   : > { %p186_p9 = pnand %p1102_p7, %p185_p8 }
   0xd   : > { %p222_p10 = scmp.lt.s32.totalorder (!%p186_p9), %s1473_s19, 1  ;;  %v1411_v0 = vmov (!%p186_p9), 0.0|0.0   ;;  %vm1412_vm0 = vmmov (!%p186_p9), 0   ;;  %v1413_v1 = vmov (!%p186_p9), 0.0   ;;  %vm244_vm1 = vcmask (!%p186_p9), 64512   ;;  %s1415_s13 = smov (!%p186_p9), 120  }
   0xe   : > { %189 = sbr.rel (%p186_p9) target bundleno = 2504 (0x9c8), region = 32  ;;  %1214 = vmatprep.subr.bf16.mxu0 (!%p186_p9), %v1411_v0  ;;  %1162 = vmatprep.mubr.msk.f32.mxu0 (!%p186_p9), %vm1412_vm0, %v1413_v1  ;;  %vm1516_vm2 = vmpackc.low (!%p186_p9), %vm244_vm1, %vm244_vm1  ;;  %v327_v9 = vlaneseq (!%p186_p9)  ;;  %v1414_v13 = vmov (!%p186_p9), 0   ;;  %vm333_vm5 = vcmask (!%p186_p9), 130048   ;;  %s1416_s14 = smov (!%p186_p9), 112  }
   0xf   : > { %1218 = vmatprep.subr.bf16.mxu1 (!%p186_p9), %v1411_v0  ;;  %1169 = vmatprep.mubr.msk.f32.mxu1 (!%p186_p9), %vm1412_vm0, %v1413_v1  ;;  %s219_s20 = sand.u32 (!%p186_p9), 1, %s1401_s16   ;;  %s1418_s29 = smov (!%p186_p9), 96  }
  0x10   : > { %v328_v11 = vshrl.u32 (!%p186_p9), %v327_v9, 7  ;;  %s1103_s22 = sshll.u32 (!%p186_p9), %s219_s20, 5  ;;  %s1419_s30 = smov (!%p186_p9), 88  }
  0x11   : > { %s1556_s23 = scalar_lea.vmem (!%p186_p9), [#allocation2], %s1103_s22  ;;  %s1421_s7 = smov (!%p186_p9), 72  }
  0x12   : > { %v329_v12 = vsub.s32 (!%p186_p9), 0, %v328_v11  ;;  %s1422_s8 = smov (!%p186_p9), 16   ;;  %s1133_s10 = sshll.u32 (!%p186_p9), %s1473_s19, 9 }
  0x13   : > { %s992_s11 = sshll.u32 (!%p186_p9), %s1556_s23, 4  ;;  %s1632_s22 = scalar_lea.sflag (!%p186_p9), [#allocation3], %s219_s20  ;;  %s1628_s11 = int_to_ptr.vmem [resolvable:$true] %s992_s11 }
  0x15   : > { %s1505_s27 = scalar_select %p222_p10, %s1473_s19, 1 }
  0x16   : > { %s1424_s19 = smov [#allocation2]  }
  0x17   : > { %s1132_s28 = sshll.u32 %s1505_s27, 4  ;;  %s1104_s6 = sshll.u32 %s1505_s27, 3 }
  0x18   : > { %s230_s5 = scalar_lea.vmem %s1683_s1, %s1132_s28  ;;  %s225_s9 = scalar_lea.vmem %s1682_s0, %s1104_s6 }
  0x19   : > { %v239_v2 = vld [vmem:[%s230_s5] sm:$0xff]  ;;  %v240_v3 = vld [vmem:[%s230_s5 + $0x8] sm:$0xff]  ;;  %s233_s12 = scalar_lea.vmem %s1684_s2, %s1505_s27  ;;  %s1417_s28 = smov 104  }
  0x1a   : > { %v1215_v5 = vpack.c.bf16 %v240_v3, %v239_v2  ;;  %v1529_v6 = vld [vmem:[%s225_s9] sm:$0xff]  ;;  %v1545_v21 = vpack.i.bf16 %v240_v3, %v239_v2  ;;  %s1420_s5 = smov 80   ;;  %s1423_s9 = smov 8  }
  0x1b   : > { %v241_v7 = vld [vmem:[%s233_s12] sm:$0x1] }
  0x1c   : > { %1217 = vmatpush3.bf16.xpose.msk.msra.mxu0 %vm1516_vm2, %v1215_v5  ;;  %v242_v8 = vunpack.c.0.s8 %v241_v7  ;;  %1297 = vrot.lane.b32.xlu1 %v1545_v21, %s1415_s13 }
  0x1d   : > { %1225 = vmatprep.subr.bf16.mxu0 %v1411_v0 }
  0x1e   : > { %v243_v10 = vcvt.s32.f32 %v242_v8 }
  0x20   : > { %vm325_vm3 = vcmp.gt.f32.partialorder %v243_v10, 0.0  ;;  %1302 = vrot.lane.b32.xlu1 %v1545_v21, %s1416_s14 }
  0x21   : > { %v326_v14 = vsel %vm325_vm3, 1, %v1414_v13 }
  0x22   : > { %v1539_v15 = vrot.slane %v326_v14, %v329_v12 }
  0x23   : > { %1163 = vmatmul.mubr.msk.f32.vlgmr.msra.gmra.mrb[0].mxu0 %vm244_vm1, %v1529_v6 }
  0x24   : > { %1183 = vmatprep.mubr.msk.f32.mxu0 %vm1412_vm0, %v1413_v1  ;;  %vm331_vm4 = vcmp.eq.s32.totalorder %v1539_v15, 1 }
  0x8e   : > { %v1298_v27 = vpop.permute.xlu1 %1297 }
  0x8f   : > { %v1300_v28 = vunpack.i.h.bf16 %v1298_v27  ;;  %v1299_v29 = vunpack.i.l.bf16 %v1298_v27 }
  0x91   : > { %v1219_v30 = vpack.c.bf16 %v1300_v28, %v1299_v29 }
  0x92   : > { %v1303_v32 = vpop.permute.xlu1 %1302 }
  0x93   : > { %1220 = vmatpush3.bf16.msra.mxu1 %v1219_v30  ;;  %v1305_v33 = vunpack.i.h.bf16 %v1303_v32  ;;  %v1304_v34 = vunpack.i.l.bf16 %v1303_v32 }
  0x94   : > { %1221 = vmatprep.subr.bf16.mxu1 %v1411_v0 }
  0x95   : > { %v1222_v36 = vpack.c.bf16 %v1305_v33, %v1304_v34 }
  0xf6   : > { %v320_v16 = vpop.f32.mrb[0].mxu0 }
  0xf7   : > { %v324_v17 = vmul.f32 0.35355338, %v320_v16  ;;  %v1164_v18 = vpop.f32.mrb[1].mxu0 }
  0xf9   : > { %v332_v19 = vsel %vm331_vm4, -1e+30, %v324_v17 }
  0xfa   : > { %v334_v20 = vsel %vm333_vm5, %v332_v19, -inf }
  0xfb   : > { %335 = vmax.xlane.f32.xlu0 %v334_v20 }
 0x188   : > { %v336_v22 = vpop.xlane.xlu0 %335 }
 0x189   : > { %v337_v23 = vsub.f32 %v332_v19, %v336_v22 }
 0x18b   : > { %v338_v24 = vmul.f32 1.442695, %v337_v23 }
 0x18d   : > { %1331 = vpow2.f32 %v338_v24 }
 0x197   : > { %v1332_v25 = vpop.eup %1331 }
 0x198   : > { %v340_v26 = vsel %vm333_vm5, %v1332_v25, 0.0 }
 0x199   : > { %341 = vadd.xlane.f32.xlu0 %v340_v26 }
 0x1af   : > { %425 = vrot.lane.b32.xlu0 %v1529_v6, %s1415_s13 }
 0x226   : > { %v342_v31 = vpop.xlane.xlu0 %341 }
 0x227   : > { %1333 = vrcp.f32 %v342_v31 }
 0x22a   : > { %v426_v38 = vpop.permute.xlu0 %425 }
 0x231   : > { %v1334_v35 = vpop.eup %1333 }
 0x232   : > { %v344_v37 = vmul.f32 %v1334_v35, %v1332_v25 }
 0x234   : > { %345 = vst.msk [vmem:[%s1556_s23] sm:$0xff] %vm333_vm5, %v344_v37  ;;  %1170 = vmatmul.mubr.msk.f32.vlgmr.msra.gmra.mrb[0].mxu1 %vm333_vm5, %v344_v37 }
 0x235   : > { %1224 = vmatpush3.bf16.xpose.msk.msra.mxu1 %vm1516_vm2, %v1222_v36  ;;  %1176 = vmatprep.mubr.msk.f32.mxu1 %vm1412_vm0, %v1413_v1 }
 0x236   : > { %1232 = vmatprep.subr.bf16.mxu1 %v1411_v0 }
 0x23c   : > { %1177 = vmatmul.mubr.msk.f32.vlgmr.msra.gmra.mrb[2].mxu1 %vm244_vm1, %v426_v38 }
 0x23d   : > { %1197 = vmatprep.mubr.msk.f32.mxu1 %vm1412_vm0, %v1413_v1 }
 0x307   : > { %v1569_v39 = vpop.f32.mrb[0].mxu1 }
 0x308   : > { %v1171_v40 = vpop.f32.mrb[1].mxu1 }
 0x30f   : > { %v503_v41 = vpop.f32.mrb[2].mxu1 }
 0x310   : > { %v507_v42 = vmul.f32 0.35355338, %v503_v41  ;;  %v1178_v43 = vpop.f32.mrb[3].mxu1 }
 0x312   : > { %v508_v44 = vsel %vm331_vm4, -1e+30, %v507_v42 }
 0x313   : > { %v509_v45 = vsel %vm333_vm5, %v508_v44, -inf }
 0x314   : > { %510 = vmax.xlane.f32.xlu1 %v509_v45 }
 0x325   : > { %1307 = vrot.lane.b32.xlu1 %v1545_v21, %s1417_s28 }
 0x329   : > { %601 = vrot.lane.b32.xlu1 %v1529_v6, %s1416_s14  ;;  %s1626_s14 = scalar_lea.hbm %s1686_s4, %s1133_s10 }
 0x3a1   : > { %v511_v46 = vpop.xlane.xlu1 %510 }
 0x3a2   : > { %v512_v47 = vsub.f32 %v508_v44, %v511_v46 }
 0x3a4   : > { %v513_v48 = vmul.f32 1.442695, %v512_v47 }
 0x3a5   : > { %v1308_v51 = vpop.permute.xlu1 %1307 }
 0x3a6   : > { %1335 = vpow2.f32 %v513_v48  ;;  %v1310_v52 = vunpack.i.h.bf16 %v1308_v51  ;;  %v1309_v53 = vunpack.i.l.bf16 %v1308_v51 }
 0x3a8   : > { %v1226_v54 = vpack.c.bf16 %v1310_v52, %v1309_v53 }
 0x3a9   : > { %v602_v62 = vpop.permute.xlu1 %601 }
 0x3aa   : > { %1227 = vmatpush3.bf16.msra.mxu0 %v1226_v54 }
 0x3ab   : > { %1228 = vmatprep.subr.bf16.mxu0 %v1411_v0 }
 0x3b0   : > { %v1336_v49 = vpop.eup %1335 }
 0x3b1   : > { %v515_v50 = vsel %vm333_vm5, %v1336_v49, 0.0 }
 0x3b2   : > { %516 = vadd.xlane.f32.xlu0 %v515_v50 }
 0x3c8   : > { %1312 = vrot.lane.b32.xlu0 %v1545_v21, %s1418_s29 }
 0x43f   : > { %v517_v55 = vpop.xlane.xlu0 %516 }
 0x440   : > { %1337 = vrcp.f32 %v517_v55 }
 0x443   : > { %v1313_v56 = vpop.permute.xlu0 %1312 }
 0x444   : > { %v1315_v57 = vunpack.i.h.bf16 %v1313_v56  ;;  %v1314_v58 = vunpack.i.l.bf16 %v1313_v56 }
 0x446   : > { %v1229_v60 = vpack.c.bf16 %v1315_v57, %v1314_v58 }
 0x44a   : > { %v1338_v59 = vpop.eup %1337 }
 0x44b   : > { %v519_v61 = vmul.f32 %v1338_v59, %v1336_v49 }
 0x44d   : > { %1115 = vst.msk [vmem:[%s1556_s23 + $0x8] sm:$0xff] %vm333_vm5, %v519_v61  ;;  %1184 = vmatmul.mubr.msk.f32.vlgmr.msra.gmra.mrb[2].mxu0 %vm333_vm5, %v519_v61 }
 0x44e   : > { %1231 = vmatpush3.bf16.xpose.msk.msra.mxu0 %vm1516_vm2, %v1229_v60  ;;  %1190 = vmatprep.mubr.msk.f32.mxu0 %vm1412_vm0, %v1413_v1 }
 0x44f   : > { %1239 = vmatprep.subr.bf16.mxu0 %v1411_v0 }
 0x455   : > { %1191 = vmatmul.mubr.msk.f32.vlgmr.msra.gmra.mrb[4].mxu0 %vm244_vm1, %v602_v62 }
 0x456   : > { %1211 = vmatprep.mubr.msk.f32.mxu0 %vm1412_vm0, %v1413_v1 }
 0x520   : > { %v1592_v63 = vpop.f32.mrb[2].mxu0 }
 0x521   : > { %v1185_v2 = vpop.f32.mrb[3].mxu0 }
 0x528   : > { %v679_v3 = vpop.f32.mrb[4].mxu0 }
 0x529   : > { %v683_v5 = vmul.f32 0.35355338, %v679_v3  ;;  %v1192_v7 = vpop.f32.mrb[5].mxu0 }
 0x52b   : > { %v684_v8 = vsel %vm331_vm4, -1e+30, %v683_v5 }
 0x52c   : > { %v685_v9 = vsel %vm333_vm5, %v684_v8, -inf }
 0x52d   : > { %686 = vmax.xlane.f32.xlu1 %v685_v9 }
 0x53e   : > { %1317 = vrot.lane.b32.xlu1 %v1545_v21, %s1419_s30 }
 0x542   : > { %777 = vrot.lane.b32.xlu1 %v1529_v6, %s1417_s28  ;;  %s1347_s28 = scalar_lea.vmem %s1628_s11, 512 }
 0x543   : > { %p1348_p11 = scmp.ne.s32.totalorder %s1628_s11, %s1347_s28 }
 0x545   : > { %p1349_p12 = pnand %p1348_p11, %p1490_p5 }
 0x547   : > { %p1350_p13 = pneg %p1349_p12 }
 0x5ba   : > { %v687_v10 = vpop.xlane.xlu1 %686 }
 0x5bb   : > { %v688_v11 = vsub.f32 %v684_v8, %v687_v10 }
 0x5bd   : > { %v689_v12 = vmul.f32 1.442695, %v688_v11 }
 0x5be   : > { %v1318_v16 = vpop.permute.xlu1 %1317 }
 0x5bf   : > { %1339 = vpow2.f32 %v689_v12  ;;  %v1320_v17 = vunpack.i.h.bf16 %v1318_v16  ;;  %v1319_v18 = vunpack.i.l.bf16 %v1318_v16 }
 0x5c1   : > { %v1233_v19 = vpack.c.bf16 %v1320_v17, %v1319_v18 }
 0x5c3   : > { %1234 = vmatpush3.bf16.msra.mxu1 %v1233_v19 }
 0x5c4   : > { %1235 = vmatprep.subr.bf16.mxu1 %v1411_v0  ;;  %v778_v0 = vpop.permute.xlu1 %777 }
 0x5c9   : > { %v1340_v13 = vpop.eup %1339 }
 0x5ca   : > { %v691_v14 = vsel %vm333_vm5, %v1340_v13, 0.0 }
 0x5cb   : > { %692 = vadd.xlane.f32.xlu0 %v691_v14 }
 0x5e1   : > { %1322 = vrot.lane.b32.xlu0 %v1545_v21, %s1420_s5 }
 0x658   : > { %v693_v6 = vpop.xlane.xlu0 %692 }
 0x659   : > { %1341 = vrcp.f32 %v693_v6 }
 0x65c   : > { %v1323_v20 = vpop.permute.xlu0 %1322 }
 0x65d   : > { %v1325_v22 = vunpack.i.h.bf16 %v1323_v20  ;;  %v1324_v23 = vunpack.i.l.bf16 %v1323_v20 }
 0x65f   : > { %v1236_v25 = vpack.c.bf16 %v1325_v22, %v1324_v23 }
 0x663   : > { %v1342_v24 = vpop.eup %1341 }
 0x664   : > { %v695_v26 = vmul.f32 %v1342_v24, %v1340_v13 }
 0x666   : > { %1120 = vst.msk [vmem:[%s1556_s23 + $0x10] sm:$0xff] %vm333_vm5, %v695_v26  ;;  %1198 = vmatmul.mubr.msk.f32.vlgmr.msra.gmra.mrb[4].mxu1 %vm333_vm5, %v695_v26 }
 0x667   : > { %1238 = vmatpush3.bf16.xpose.msk.msra.mxu1 %vm1516_vm2, %v1236_v25  ;;  %1204 = vmatprep.mubr.msk.f32.mxu1 %vm1412_vm0, %v1413_v1 }
 0x66e   : > { %1205 = vmatmul.mubr.msk.f32.vlgmr.msra.gmra.mrb[6].mxu1 %vm244_vm1, %v778_v0 }
 0x739   : > { %v773_v27 = vpop.f32.mrb[4].mxu1 }
 0x73a   : > { %v1199_v28 = vpop.f32.mrb[5].mxu1 }
 0x741   : > { %v855_v29 = vpop.f32.mrb[6].mxu1 }
 0x742   : > { %v859_v30 = vmul.f32 0.35355338, %v855_v29  ;;  %v1206_v31 = vpop.f32.mrb[7].mxu1 }
 0x744   : > { %v860_v32 = vsel %vm331_vm4, -1e+30, %v859_v30 }
 0x745   : > { %v861_v33 = vsel %vm333_vm5, %v860_v32, -inf }
 0x746   : > { %862 = vmax.xlane.f32.xlu1 %v861_v33 }
 0x757   : > { %1327 = vrot.lane.b32.xlu1 %v1545_v21, %s1421_s7 }
 0x75b   : > { %958 = vrot.lane.b32.xlu1 %v773_v27, %s1422_s8 }
 0x7d3   : > { %v863_v1 = vpop.xlane.xlu1 %862 }
 0x7d4   : > { %v864_v4 = vsub.f32 %v860_v32, %v863_v1 }
 0x7d6   : > { %v865_v34 = vmul.f32 1.442695, %v864_v4 }
 0x7d7   : > { %v1328_v35 = vpop.permute.xlu1 %1327 }
 0x7d8   : > { %1343 = vpow2.f32 %v865_v34  ;;  %v1330_v36 = vunpack.i.h.bf16 %v1328_v35  ;;  %v1329_v37 = vunpack.i.l.bf16 %v1328_v35 }
 0x7da   : > { %v1240_v15 = vpack.c.bf16 %v1330_v36, %v1329_v37 }
 0x7dc   : > { %1241 = vmatpush3.bf16.msra.mxu0 %v1240_v15 }
 0x7e2   : > { %v1344_v38 = vpop.eup %1343 }
 0x7e3   : > { %v867_v40 = vsel %vm333_vm5, %v1344_v38, 0.0 }
 0x7e4   : > { %868 = vadd.xlane.f32.xlu0 %v867_v40 }
 0x7fa   : > { %954 = vrot.lane.b32.xlu0 %v1592_v63, %s1423_s9 }
 0x871   : > { %v869_v21 = vpop.xlane.xlu0 %868 }
 0x872   : > { %1345 = vrcp.f32 %v869_v21 }
 0x87c   : > { %v1346_v41 = vpop.eup %1345 }
 0x87d   : > { %v871_v42 = vmul.f32 %v1346_v41, %v1344_v38 }
 0x87f   : > { %1125 = vst.msk [vmem:[%s1556_s23 + $0x18] sm:$0xff] %vm333_vm5, %v871_v42  ;;  %1212 = vmatmul.mubr.msk.f32.vlgmr.msra.gmra.mrb[6].mxu0 %vm333_vm5, %v871_v42  ;;  %s1351_s23 = sshll.u32 %s1424_s19, 4  ;;  %s1352_s23 = int_to_ptr.vmem [resolvable:$false] %s1351_s23 }
 0x880   : > { %s1353_s29 = scalar_lea.vmem %s1352_s23, 1024  ;;  %p1354_p0 = scmp.lt.s32.totalorder %s1628_s11, %s1352_s23 }
 0x881   : > { %p1355_p1 = scmp.lt.s32.totalorder %s1353_s29, %s1347_s28 }
 0x883   : > { %p1356_p2 = por %p1355_p1, %p1354_p0 }
 0x885   : > { %p1357_p3 = pnand %p1356_p2, %p1350_p13 }
 0x887   : > { %1360 = shalt.err (!%p1357_p3)
}
 0x888   : > { %s1361_s20 = scalar_lea.hbm %s1626_s14, 512  ;;  %s1365_s7 = scalar_lea.hbm %s1686_s4, 1024 }
 0x889   : > { %p1362_p4 = scmp.ne.s32.totalorder %s1626_s14, %s1361_s20  ;;  %p1366_p9 = scmp.lt.u32.totalorder %s1626_s14, %s1686_s4 }
 0x88a   : > { %p1367_p10 = scmp.lt.u32.totalorder %s1365_s7, %s1361_s20  ;;  %p1369_p12 = scmp.lt.u32.totalorder %s1361_s20, %s1626_s14 }
 0x88b   : > { %p1363_p7 = pnand %p1362_p4, %p1490_p5 }
 0x88c   : > { %p1368_p11 = por %p1367_p10, %p1366_p9 }
 0x88d   : > { %p1364_p8 = pneg %p1363_p7 }
 0x88e   : > { %p1370_p13 = por %p1369_p12, %p1368_p11 }
 0x890   : > { %p1371_p0 = pnand %p1370_p13, %p1364_p8 }
 0x892   : > { %1374 = shalt.err (!%p1371_p0)
}
 0x893   : > { %s1425_s12 = smov 128   ;;  %s1426_s13 = smov 24   ;;  %v955_v45 = vpop.permute.xlu0 %954  ;;  %v959_v46 = vpop.permute.xlu1 %958  ;;  %vm967_vm6 = vcmask 195584   ;;  %vm969_vm7 = vcmask 261120  }
 0x894   : > { %1242 = dma.vmem_to_hbm [thread:$0]  (%p1490_p5), %s1628_s11, 512, %s1626_s14, %s1632_s22, %s1425_s12, %s1425_s12, %s1423_s9   ;;  %v965_v47 = vsel %vm244_vm1, %v1569_v39, %v955_v45 }
 0x895   : > { %s237_s25 = scalar_lea.vmem %s1685_s3, %s1104_s6  ;;  %v966_v48 = vsel %vm333_vm5, %v965_v47, %v959_v46 }
 0x952   : > { %v949_v43 = vpop.f32.mrb[6].mxu0 }
 0x953   : > { %962 = vrot.lane.b32.xlu1 %v949_v43, %s1426_s13  ;;  %v1213_v44 = vpop.f32.mrb[7].mxu0 }
 0x9c5   : > { %v963_v49 = vpop.permute.xlu1 %962 }
 0x9c6   : > { %v968_v50 = vsel %vm967_vm6, %v966_v48, %v963_v49 }
 0x9c7   : > { %970 = vst.msk [vmem:[%s237_s25] sm:$0xff] %vm969_vm7, %v968_v50 }
 0x9c8 PF: > { %p1248_p5 = scmp.ge.s32.totalorder %s1409_s18, 2  ;;  %s1014_s9 = sand.u32 1, %s1397_s15  }
 0x9c9   : > { %s1015_s11 = scalar_lea.sflag [#allocation3], %s1014_s9 }
 0x9ca   : > { %p1245_p1 = pnand %p1248_p5, %p1494_p6 }
 0x9cc   : > { %1392 = dma.done.wait (!%p1245_p1), %s1015_s11, 512  }
 0x9cd   : > { %1394 = vsyncadd (!%p1245_p1), %s1015_s11, 4294966784  ;;  %p15_p2 = scmp.ge.s32.totalorder %s1477_s21, 4   ;;  %s1691_s15 = smov %s1401_s16 }
 0x9ce   : > { %s1692_s16 = smov %s1405_s17  ;;  %s1693_s17 = smov %s1488_s24 }
 0x9cf   : > { %s1694_s18 = smov %s1477_s21  ;;  %17 = sbr.rel (!%p15_p2) target bundleno = 3 (0x3), region = 88 }
 0x9d6   :  { %1020 = vsyncpa [#allocation3], 1 }
 0x9d7   :  { %1022 = vsyncpa [#allocation3 + $0x1], 1 }

// kernel: decoder_layer_forward.17
= control target key start
LH: loop header
LB: loop body
LE: loop exit
PB: predicated region body
PF: predicated region fallthrough
CT: control target
= control target key end

     0   :  { %vm28_vm0 = vcmask 261120   ;;  %vm183_vm1 = vcmask 523264   ;;  %s473_s0 = inlined_call_operand.vmem [shape: f32[16,32], index: 0, kind: input, shape index: {}]   ;;  %s474_s3 = inlined_call_operand.vmem [shape: f32[32,64], index: 3, kind: input, shape index: {}]   ;;  %s475_s5 = inlined_call_operand.vmem [shape: f32[64,32], index: 5, kind: input, shape index: {}]   ;;  %s476_s1 = inlined_call_operand.vmem [shape: f32[1,32], index: 1, kind: input, shape index: {}]   ;;  %s477_s2 = inlined_call_operand.vmem [shape: f32[1,32], index: 2, kind: input, shape index: {}]   ;;  %s478_s4 = inlined_call_operand.vmem [shape: f32[1,64], index: 4, kind: input, shape index: {}]   ;;  %s479_s6 = inlined_call_operand.vmem [shape: f32[1,32], index: 6, kind: input, shape index: {}]   ;;  %s480_s7 = inlined_call_operand.vmem [shape: f32[16,32], index: 7, kind: output, shape index: {}]  }
   0x1   :  { %v398_v0 = vld [vmem:[%s473_s0] sm:$0xff]  ;;  %v403_v1 = vld [vmem:[%s473_s0 + $0x8] sm:$0xff]  ;;  %v76_v16 = vld [vmem:[%s474_s3 + $0x10] sm:$0xff] }
   0x2   :  { %v29_v2 = vsel %vm28_vm0, %v398_v0, 0.0  ;;  %v32_v3 = vsel %vm28_vm0, %v403_v1, 0.0  ;;  %v74_v14 = vld [vmem:[%s474_s3] sm:$0xff]  ;;  %v75_v15 = vld [vmem:[%s474_s3 + $0x8] sm:$0xff]  ;;  %v77_v18 = vld [vmem:[%s474_s3 + $0x18] sm:$0xff] }
   0x3   :  { %30 = vadd.xlane.f32.xlu0 %v29_v2  ;;  %v327_v17 = vpack.c.bf16 %v75_v15, %v74_v14  ;;  %v331_v19 = vpack.c.bf16 %v77_v18, %v76_v16  ;;  %v168_v20 = vld [vmem:[%s475_s5] sm:$0xff]  ;;  %v169_v21 = vld [vmem:[%s475_s5 + $0x8] sm:$0xff]  ;;  %v170_v22 = vld [vmem:[%s475_s5 + $0x10] sm:$0xff] }
   0x4   :  { %v335_v23 = vpack.c.bf16 %v169_v21, %v168_v20  ;;  %v171_v24 = vld [vmem:[%s475_s5 + $0x18] sm:$0xff]  ;;  %v172_v26 = vld [vmem:[%s475_s5 + $0x20] sm:$0xff]  ;;  %v173_v27 = vld [vmem:[%s475_s5 + $0x28] sm:$0xff] }
   0x5   :  { %328 = vmatprep.subr.bf16.mxu0 %v327_v17  ;;  %v339_v25 = vpack.c.bf16 %v171_v24, %v170_v22  ;;  %v343_v28 = vpack.c.bf16 %v173_v27, %v172_v26  ;;  %v273_v36 = vld [vmem:[%s476_s1] ss:$0 sm:$0xff]  ;;  %v174_v45 = vld [vmem:[%s475_s5 + $0x30] sm:$0xff]  ;;  %v175_v46 = vld [vmem:[%s475_s5 + $0x38] sm:$0xff] }
   0x6   :  { %330 = vmatpush3.bf16.msra.mxu0 %v327_v17  ;;  %336 = vmatprep.subr.bf16.mxu1 %v335_v23  ;;  %v274_v38 = vld [vmem:[%s477_s2] ss:$0 sm:$0xff]  ;;  %v347_v47 = vpack.c.bf16 %v175_v46, %v174_v45 }
   0x7   :  { %33 = vadd.xlane.f32.xlu0 %v32_v3  ;;  %332 = vmatprep.subr.bf16.mxu0 %v331_v19  ;;  %v275_v48 = vld [vmem:[%s478_s4] ss:$0 sm:$0xff] }
   0x8   :  { %338 = vmatpush3.bf16.msra.mxu1 %v335_v23  ;;  %v278_v55 = vld [vmem:[%s479_s6] ss:$0 sm:$0xff] }
   0x9   :  { %340 = vmatprep.subr.bf16.mxu1 %v339_v25 }
   0xa   :  { %334 = vmatpush3.bf16.msra.mxu0 %v331_v19 }
   0xc   :  { %342 = vmatpush3.bf16.msra.mxu1 %v339_v25 }
   0xd   :  { %344 = vmatprep.subr.bf16.mxu1 %v343_v28 }
  0x10   :  { %346 = vmatpush3.bf16.msra.mxu1 %v343_v28 }
  0x11   :  { %348 = vmatprep.subr.bf16.mxu1 %v347_v47 }
  0x14   :  { %350 = vmatpush3.bf16.msra.mxu1 %v347_v47 }
  0x90   :  { %v31_v4 = vpop.xlane.xlu0 %30 }
  0x91   :  { %v36_v5 = vmul.f32 0.03125, %v31_v4 }
  0x93   :  { %v38_v6 = vsub.f32 %v398_v0, %v36_v5 }
  0x94   :  { %v34_v7 = vpop.xlane.xlu0 %33 }
  0x95   :  { %v37_v8 = vmul.f32 0.03125, %v34_v7  ;;  %v40_v9 = vmul.f32 %v38_v6, %v38_v6 }
  0x97   :  { %v39_v10 = vsub.f32 %v403_v1, %v37_v8  ;;  %v42_v11 = vsel %vm28_vm0, %v40_v9, 0.0 }
  0x98   :  { %43 = vadd.xlane.f32.xlu1 %v42_v11 }
  0x99   :  { %v41_v12 = vmul.f32 %v39_v10, %v39_v10 }
  0x9b   :  { %v45_v13 = vsel %vm28_vm0, %v41_v12, 0.0 }
  0x9c   :  { %46 = vadd.xlane.f32.xlu1 %v45_v13 }
 0x125   :  { %v44_v29 = vpop.xlane.xlu1 %43 }
 0x126   :  { %v48_v30 = vmul.f32 0.03125, %v44_v29 }
 0x128   :  { %v50_v31 = vadd.f32 1e-05, %v48_v30 }
 0x129   :  { %v47_v32 = vpop.xlane.xlu1 %46 }
 0x12a   :  { %351 = vrsqrt.f32 %v50_v31  ;;  %v49_v33 = vmul.f32 0.03125, %v47_v32 }
 0x12c   :  { %v51_v34 = vadd.f32 1e-05, %v49_v33 }
 0x12e   :  { %353 = vrsqrt.f32 %v51_v34 }
 0x134   :  { %v352_v35 = vpop.eup %351 }
 0x135   :  { %v54_v37 = vmul.f32 %v352_v35, %v38_v6 }
 0x137   :  { %v63_v39 = vmul.f32 %v273_v36, %v54_v37 }
 0x138   :  { %v354_v40 = vpop.eup %353 }
 0x139   :  { %v55_v41 = vmul.f32 %v354_v40, %v39_v10  ;;  %v72_v42 = vadd.f32 %v274_v38, %v63_v39 }
 0x13b   :  { %v64_v43 = vmul.f32 %v273_v36, %v55_v41  ;;  %305 = vmatprep.mubr.msk.f32.mxu0 %vm28_vm0, %v72_v42 }
 0x13d   :  { %v73_v44 = vadd.f32 %v274_v38, %v64_v43 }
 0x13f   :  { %306 = vmatmul.mubr.msk.f32.vlgmr.msra.gmra.mrb[0].mxu0 %vm28_vm0, %v73_v44 }
 0x212   :  { %v307_v49 = vpop.f32.mrb[0].mxu0 }
 0x213   :  { %v163_v50 = vadd.f32 %v307_v49, %v275_v48  ;;  %v157_v51 = vpop.f32.mrb[1].mxu0 }
 0x214   :  { %v158_v52 = vadd.f32 %v275_v48, %v157_v51 }
 0x215   :  { %v167_v54 = vmax.f32 %v163_v50, 0.0 }
 0x216   :  { %v166_v53 = vmax.f32 %v158_v52, 0.0 }
 0x218   :  { %324 = vmatprep.mubr.msk.f32.mxu1 %vm183_vm1, %v166_v53 }
 0x219   :  { %325 = vmatmul.mubr.msk.f32.vlgmr.msra.gmra.mrb[0].mxu1 %vm183_vm1, %v167_v54 }
 0x2ec   :  { %v326_v56 = vpop.f32.mrb[0].mxu1 }
 0x2ed   :  { %v262_v57 = vadd.f32 %v326_v56, %v278_v55  ;;  %v256_v58 = vpop.f32.mrb[1].mxu1 }
 0x2ee   :  { %v257_v59 = vadd.f32 %v278_v55, %v256_v58 }
 0x2ef   :  { %v266_v60 = vadd.f32 %v262_v57, %v403_v1 }
 0x2f0   :  { %v265_v61 = vadd.f32 %v257_v59, %v398_v0 }
 0x2f1   :  { %268 = vst.msk [vmem:[%s480_s7 + $0x8] sm:$0xff] %vm28_vm0, %v266_v60 }
 0x2f2   :  { %267 = vst.msk [vmem:[%s480_s7] sm:$0xff] %vm28_vm0, %v265_v61 }

</bundles_post_ra>
